<compile_context>
chip_gen: v5e
topology: v5e:2x2
jax: 0.10.0
libtpu: 0.0.40
codegen_flags: <defaults>
</compile_context>

<pallas_src>
import functools

import jax
import jax.numpy as jnp
from jax import lax
from jax.experimental import pallas as pl
from jax.experimental.pallas import tpu as pltpu


def _round_up(n, m):
    return ((n + m - 1) // m) * m


def _sigmoid_via_tanh(x):
    # sigmoid(x) == 0.5 * tanh(0.5 * x) + 0.5  -> one EUP push per vreg.
    return 0.5 * jnp.tanh(0.5 * x) + 0.5


def _make_encoder_kernel(num_layers, seq_len, BP, FP, HP, compute_dtype):
    L, T = num_layers, seq_len
    G = 4 * HP

    def kernel(*refs):
        # refs = [x, (wx_0, whh_0, b_0), ..., (wx_{L-1}, whh_{L-1}, b_{L-1}),
        #         out, gates_scratch, hseq_scratch]
        x_ref = refs[0]
        out_ref = refs[1 + 3 * L]
        gates_ref = refs[2 + 3 * L]          # (T, BP, 4*HP) f32 scratch
        hseq_ref = refs[3 + 3 * L]           # (T, BP, HP)   f32 scratch

        h_fin = None
        for l in range(L):
            wx_ref = refs[1 + 3 * l]
            whh_ref = refs[2 + 3 * l]
            b_ref = refs[3 + 3 * l]

            # ---- One big input projection for the whole sequence (off the serial path). ----
            if l == 0:
                inp = x_ref[...]                                       # (T*BP, FP) bf16
            else:
                inp = hseq_ref[...].reshape(T * BP, HP).astype(compute_dtype)
            xg = jnp.dot(inp, wx_ref[...], preferred_element_type=jnp.float32)
            xg = xg + b_ref[...]                                       # bias folded here
            gates_ref[...] = xg.reshape(T, BP, G)

            whh = whh_ref[...]                                         # (HP, 4*HP) bf16
            write_hseq = (l != L - 1)                                  # last layer: skip store

            def step(t, carry, whh=whh, write_hseq=write_hseq):
                h, c = carry                                           # (BP, HP) f32
                # Only the hidden matmul remains on the serial chain.
                g = gates_ref[t] + jnp.dot(h.astype(compute_dtype), whh,
                                           preferred_element_type=jnp.float32)
                # Host-packed gate order: i | f | o | g  (three sigmoids contiguous).
                sig = _sigmoid_via_tanh(g[:, 0:3 * HP])
                i_g = sig[:, 0 * HP:1 * HP]
                f_g = sig[:, 1 * HP:2 * HP]
                o_g = sig[:, 2 * HP:3 * HP]
                g_g = jnp.tanh(g[:, 3 * HP:4 * HP])
                c_new = f_g * c + i_g * g_g                            # f32 VPU math
                h_new = o_g * jnp.tanh(c_new)
                if write_hseq:
                    hseq_ref[t] = h_new                                # feeds next layer
                return h_new, c_new

            zero = jnp.zeros((BP, HP), jnp.float32)
            # Partial unroll exposes cross-step MXU/EUP overlap to the scheduler without
            # blowing the 64-vreg file at HP=128.
            h_fin, _ = lax.fori_loop(0, T, step, (zero, zero), unroll=min(T, 8))

        out_ref[...] = h_fin

    return kernel


def _encoder_forward_impl(x, params, compute_dtype):
    """params: list per layer of (w_ih (4H,in), w_hh (4H,H), b_ih (4H,), b_hh (4H,))."""
    T, B, F = x.shape
    L = len(params)
    H = params[0][1].shape[1]

    BP = _round_up(B, 8)        # sublane multiple
    FP = _round_up(F, 128)      # lane multiple
    HP = _round_up(H, 128)      # per-gate lane-dense width
    G = 4 * HP

    # Pad x to (T, BP, FP), flatten to (T*BP, FP), cast matmul operand to bf16.
    x_p = jnp.zeros((T, BP, FP), jnp.float32)
    x_p = x_p.at[:, :B, :F].set(jnp.asarray(x, jnp.float32))
    x_flat = x_p.reshape(T * BP, FP).astype(compute_dtype)

    # PyTorch gate order is (i, f, g, o); repack to (i, f, o, g) so the three sigmoid
    # gates form one contiguous 3*HP lane slab in the kernel.
    gate_src = (0, 1, 3, 2)     # dst block 0,1,2,3  <-  src gate i, f, o, g

    weight_args = []
    flops = 0
    for l, (w_ih, w_hh, b_ih, b_hh) in enumerate(params):
        in_l = F if l == 0 else H
        in_lp = FP if l == 0 else HP
        w_ih = jnp.asarray(w_ih, jnp.float32)
        w_hh = jnp.asarray(w_hh, jnp.float32)
        b = jnp.asarray(b_ih, jnp.float32) + jnp.asarray(b_hh, jnp.float32)

        # Zero-padded per-gate columns keep padded h/c lanes exactly zero through the
        # recurrence (sigmoid(0)*tanh(0) contributions cancel).
        wx = jnp.zeros((in_lp, G), jnp.float32)      # input projection  (big matmul)
        wh = jnp.zeros((HP, G), jnp.float32)         # hidden projection (per-step matmul)
        bb = jnp.zeros((1, G), jnp.float32)          # folded into the big matmul result
        for dst, src in enumerate(gate_src):
            wx = wx.at[:in_l, dst * HP:dst * HP + H].set(w_ih[src * H:(src + 1) * H, :].T)
            wh = wh.at[:H, dst * HP:dst * HP + H].set(w_hh[src * H:(src + 1) * H, :].T)
            bb = bb.at[0, dst * HP:dst * HP + H].set(b[src * H:(src + 1) * H])

        weight_args += [wx.astype(compute_dtype), wh.astype(compute_dtype), bb]
        flops += 2 * T * BP * in_lp * G          # sequence-wide input projection
        flops += 2 * T * BP * HP * G             # per-step hidden matmul

    transcendentals = T * L * 5 * BP * HP
    bytes_accessed = int(x_flat.size * x_flat.dtype.itemsize
                         + sum(int(w.size) * w.dtype.itemsize for w in weight_args)
                         + BP * HP * 4)
    cost = pl.CostEstimate(flops=int(flops), transcendentals=int(transcendentals),
                           bytes_accessed=bytes_accessed)

    # VMEM budget (single-buffered residents + scratch), with headroom; v7x-aware.
    resident = (x_flat.size * x_flat.dtype.itemsize
                + sum(int(w.size) * w.dtype.itemsize for w in weight_args)
                + T * BP * G * 4                 # gates scratch
                + T * BP * HP * 4                # hseq scratch
                + BP * HP * 4)                   # output
    vmem_limit = int(min(128 << 20, max(16 << 20, 2 * resident + (4 << 20))))

    kernel = _make_encoder_kernel(L, T, BP, FP, HP, compute_dtype)
    n_in = 1 + 3 * L
    out = pl.pallas_call(
        kernel,
        out_shape=jax.ShapeDtypeStruct((BP, HP), jnp.float32),
        in_specs=[pl.BlockSpec(memory_space=pltpu.MemorySpace.VMEM)] * n_in,
        out_specs=pl.BlockSpec(memory_space=pltpu.MemorySpace.VMEM),
        scratch_shapes=[pltpu.VMEM((T, BP, G), jnp.float32),
                        pltpu.VMEM((T, BP, HP), jnp.float32)],
        compiler_params=pltpu.CompilerParams(vmem_limit_bytes=vmem_limit),
        cost_estimate=cost,
    )(x_flat, *weight_args)

    return out[:B, :H]


@functools.partial(jax.jit, static_argnames=("compute_dtype",))
def encoder_forward(x, params, compute_dtype=jnp.bfloat16):
    # jit so the host-side packing/padding is traced & fused (not eager per-call dispatch).
    return _encoder_forward_impl(x, params, compute_dtype)


def encoder_reference(x, params, compute_dtype=jnp.bfloat16):
    """Pure-JAX reference with the same bf16 matmul / f32 gate-math semantics."""
    T, B, F = x.shape
    H = params[0][1].shape[1]
    seq = jnp.asarray(x, jnp.float32)
    h_last = None
    for (w_ih, w_hh, b_ih, b_hh) in params:
        w_fused = jnp.concatenate(
            [jnp.asarray(w_ih, jnp.float32).T, jnp.asarray(w_hh, jnp.float32).T],
            axis=0).astype(compute_dtype)                      # (in+H, 4H), gate order i,f,g,o
        b = jnp.asarray(b_ih, jnp.float32) + jnp.asarray(b_hh, jnp.float32)

        def step(carry, x_t, w_fused=w_fused, b=b):
            h, c = carry
            cat = jnp.concatenate(
                [x_t.astype(compute_dtype), h.astype(compute_dtype)], axis=-1)
            gates = jnp.dot(cat, w_fused, preferred_element_type=jnp.float32) + b
            i = jax.nn.sigmoid(gates[:, 0:H])
            f = jax.nn.sigmoid(gates[:, H:2 * H])
            g = jnp.tanh(gates[:, 2 * H:3 * H])
            o = jax.nn.sigmoid(gates[:, 3 * H:4 * H])
            c = f * c + i * g
            h = o * jnp.tanh(c)
            return (h, c), h

        init = (jnp.zeros((B, H), jnp.float32), jnp.zeros((B, H), jnp.float32))
        (h_fin, _), outs = jax.lax.scan(step, init, seq)
        seq = outs
        h_last = h_fin
    return h_last


def init_lstm_params(key, number_of_features, hidden_size, hidden_layer_depth):
    """Deterministic init mimicking PyTorch's U(-1/sqrt(H), 1/sqrt(H))."""
    params = []
    bound = 1.0 / jnp.sqrt(jnp.float32(hidden_size))
    for l in range(hidden_layer_depth):
        in_size = number_of_features if l == 0 else hidden_size
        key, k1, k2, k3, k4 = jax.random.split(key, 5)
        w_ih = jax.random.uniform(k1, (4 * hidden_size, in_size), jnp.float32, -bound, bound)
        w_hh = jax.random.uniform(k2, (4 * hidden_size, hidden_size), jnp.float32, -bound, bound)
        b_ih = jax.random.uniform(k3, (4 * hidden_size,), jnp.float32, -bound, bound)
        b_hh = jax.random.uniform(k4, (4 * hidden_size,), jnp.float32, -bound, bound)
        params.append((w_ih, w_hh, b_ih, b_hh))
    return params


if __name__ == "__main__":
    # Encoder(number_of_features=8, hidden_size=16, hidden_layer_depth=2,
    #         latent_length=..., dropout=0.0, block='LSTM')
    seq_len, batch, number_of_features = 8, 4, 8
    hidden_size, hidden_layer_depth = 16, 2

    key = jax.random.PRNGKey(0)
    key, kx = jax.random.split(key)
    x = jax.random.normal(kx, (seq_len, batch, number_of_features), jnp.float32)
    params = init_lstm_params(key, number_of_features, hidden_size, hidden_layer_depth)

    h_end = jax.block_until_ready(encoder_forward(x, params))
    h_ref = jax.block_until_ready(encoder_reference(x, params))

    assert h_end.shape == (batch, hidden_size)
    max_diff = float(jnp.max(jnp.abs(h_end - h_ref)))
    assert jnp.allclose(h_end, h_ref, rtol=1e-3, atol=1e-3), (
        f"mismatch vs reference, max|diff|={max_diff}")

    print("KERNEL_OK")
</pallas_src>

<mosaic_0001>
module attributes {stable_mosaic.version = 11 : i64} {
  func.func @kernel(%arg0: memref<64x128xbf16, #tpu.memory_space<vmem>>, %arg1: memref<128x512xbf16, #tpu.memory_space<vmem>>, %arg2: memref<128x512xbf16, #tpu.memory_space<vmem>>, %arg3: memref<1x512xf32, #tpu.memory_space<vmem>>, %arg4: memref<128x512xbf16, #tpu.memory_space<vmem>>, %arg5: memref<128x512xbf16, #tpu.memory_space<vmem>>, %arg6: memref<1x512xf32, #tpu.memory_space<vmem>>, %arg7: memref<8x128xf32, #tpu.memory_space<vmem>>, %arg8: memref<8x8x512xf32, #tpu.memory_space<vmem>>, %arg9: memref<8x8x128xf32, #tpu.memory_space<vmem>>) attributes {dimension_semantics = [], scalar_prefetch = 0 : i64, scratch_operands = 2 : i64, tpu.core_type = #tpu.core_type<tc>} {
    %c0 = arith.constant 0 : index
    %c0_0 = arith.constant 0 : index
    %0 = vector.load %arg0[%c0, %c0_0] : memref<64x128xbf16, #tpu.memory_space<vmem>>, vector<64x128xbf16>
    %c0_1 = arith.constant 0 : index
    %c0_2 = arith.constant 0 : index
    %1 = vector.load %arg1[%c0_1, %c0_2] : memref<128x512xbf16, #tpu.memory_space<vmem>>, vector<128x512xbf16>
    %cst = arith.constant dense<0.000000e+00> : vector<64x512xf32>
    %2 = tpu.matmul %0, %1, %cst {dimension_numbers = #tpu.dot_dimension_numbers<[1], [0], [0], [1], [0, 0, 1, 1], [], []>} : vector<64x128xbf16>, vector<128x512xbf16>, vector<64x512xf32> -> vector<64x512xf32>
    %c0_3 = arith.constant 0 : index
    %c0_4 = arith.constant 0 : index
    %3 = vector.load %arg3[%c0_3, %c0_4] : memref<1x512xf32, #tpu.memory_space<vmem>>, vector<1x512xf32>
    %4 = vector.broadcast %3 : vector<1x512xf32> to vector<64x512xf32>
    %5 = arith.addf %2, %4 : vector<64x512xf32>
    %6 = vector.shape_cast %5 : vector<64x512xf32> to vector<8x8x512xf32>
    %c0_5 = arith.constant 0 : index
    %c0_6 = arith.constant 0 : index
    %c0_7 = arith.constant 0 : index
    %7 = vector.load %arg8[%c0_5, %c0_6, %c0_7] : memref<8x8x512xf32, #tpu.memory_space<vmem>>, vector<8x8x512xf32>
    tpu.vector_store %arg8[%c0_5, %c0_6, %c0_7], %6 {strides = array<i32>} : memref<8x8x512xf32, #tpu.memory_space<vmem>>, vector<8x8x512xf32>,
    %c0_8 = arith.constant 0 : index
    %c0_9 = arith.constant 0 : index
    %8 = vector.load %arg2[%c0_8, %c0_9] : memref<128x512xbf16, #tpu.memory_space<vmem>>, vector<128x512xbf16>
    %cst_10 = arith.constant 0.000000e+00 : f32
    %9 = vector.broadcast %cst_10 : f32 to vector<8x128xf32>
    %c0_i32 = arith.constant 0 : i32
    %10 = arith.index_cast %c0_i32 : i32 to index
    %c0_11 = arith.constant 0 : index
    %c0_12 = arith.constant 0 : index
    %11 = vector.load %arg8[%10, %c0_11, %c0_12] : memref<8x8x512xf32, #tpu.memory_space<vmem>>, vector<1x8x512xf32>
    %12 = vector.shape_cast %11 : vector<1x8x512xf32> to vector<8x512xf32>
    %13 = arith.truncf %9 : vector<8x128xf32> to vector<8x128xbf16>
    %cst_13 = arith.constant dense<0.000000e+00> : vector<8x512xf32>
    %14 = tpu.matmul %13, %8, %cst_13 {dimension_numbers = #tpu.dot_dimension_numbers<[1], [0], [0], [1], [0, 0, 1, 1], [], []>} : vector<8x128xbf16>, vector<128x512xbf16>, vector<8x512xf32> -> vector<8x512xf32>
    %15 = arith.addf %12, %14 : vector<8x512xf32>
    %16 = vector.extract_strided_slice %15 {offsets = [0, 0], sizes = [8, 384], strides = [1, 1]} : vector<8x512xf32> to vector<8x384xf32>
    %cst_14 = arith.constant 5.000000e-01 : f32
    %17 = vector.broadcast %cst_14 : f32 to vector<8x384xf32>
    %18 = arith.mulf %17, %16 : vector<8x384xf32>
    %19 = math.tanh %18 : vector<8x384xf32>
    %cst_15 = arith.constant 5.000000e-01 : f32
    %20 = vector.broadcast %cst_15 : f32 to vector<8x384xf32>
    %21 = arith.mulf %20, %19 : vector<8x384xf32>
    %cst_16 = arith.constant 5.000000e-01 : f32
    %22 = vector.broadcast %cst_16 : f32 to vector<8x384xf32>
    %23 = arith.addf %21, %22 : vector<8x384xf32>
    %24 = vector.extract_strided_slice %23 {offsets = [0, 0], sizes = [8, 128], strides = [1, 1]} : vector<8x384xf32> to vector<8x128xf32>
    %25 = vector.extract_strided_slice %23 {offsets = [0, 128], sizes = [8, 128], strides = [1, 1]} : vector<8x384xf32> to vector<8x128xf32>
    %26 = vector.extract_strided_slice %23 {offsets = [0, 256], sizes = [8, 128], strides = [1, 1]} : vector<8x384xf32> to vector<8x128xf32>
    %27 = vector.extract_strided_slice %15 {offsets = [0, 384], sizes = [8, 128], strides = [1, 1]} : vector<8x512xf32> to vector<8x128xf32>
    %28 = math.tanh %27 : vector<8x128xf32>
    %29 = arith.mulf %25, %9 : vector<8x128xf32>
    %30 = arith.mulf %24, %28 : vector<8x128xf32>
    %31 = arith.addf %29, %30 : vector<8x128xf32>
    %32 = math.tanh %31 : vector<8x128xf32>
    %33 = arith.mulf %26, %32 : vector<8x128xf32>
    %34 = arith.index_cast %c0_i32 : i32 to index
    %c0_17 = arith.constant 0 : index
    %c0_18 = arith.constant 0 : index
    %35 = vector.load %arg9[%34, %c0_17, %c0_18] : memref<8x8x128xf32, #tpu.memory_space<vmem>>, vector<1x8x128xf32>
    %36 = vector.shape_cast %35 : vector<1x8x128xf32> to vector<8x128xf32>
    %37 = vector.shape_cast %33 : vector<8x128xf32> to vector<1x8x128xf32>
    tpu.vector_store %arg9[%34, %c0_17, %c0_18], %37 {strides = array<i32>} : memref<8x8x128xf32, #tpu.memory_space<vmem>>, vector<1x8x128xf32>,
    %c1_i32 = arith.constant 1 : i32
    %38 = arith.index_cast %c1_i32 : i32 to index
    %c0_19 = arith.constant 0 : index
    %c0_20 = arith.constant 0 : index
    %39 = vector.load %arg8[%38, %c0_19, %c0_20] : memref<8x8x512xf32, #tpu.memory_space<vmem>>, vector<1x8x512xf32>
    %40 = vector.shape_cast %39 : vector<1x8x512xf32> to vector<8x512xf32>
    %41 = arith.truncf %33 : vector<8x128xf32> to vector<8x128xbf16>
    %cst_21 = arith.constant dense<0.000000e+00> : vector<8x512xf32>
    %42 = tpu.matmul %41, %8, %cst_21 {dimension_numbers = #tpu.dot_dimension_numbers<[1], [0], [0], [1], [0, 0, 1, 1], [], []>} : vector<8x128xbf16>, vector<128x512xbf16>, vector<8x512xf32> -> vector<8x512xf32>
    %43 = arith.addf %40, %42 : vector<8x512xf32>
    %44 = vector.extract_strided_slice %43 {offsets = [0, 0], sizes = [8, 384], strides = [1, 1]} : vector<8x512xf32> to vector<8x384xf32>
    %cst_22 = arith.constant 5.000000e-01 : f32
    %45 = vector.broadcast %cst_22 : f32 to vector<8x384xf32>
    %46 = arith.mulf %45, %44 : vector<8x384xf32>
    %47 = math.tanh %46 : vector<8x384xf32>
    %cst_23 = arith.constant 5.000000e-01 : f32
    %48 = vector.broadcast %cst_23 : f32 to vector<8x384xf32>
    %49 = arith.mulf %48, %47 : vector<8x384xf32>
    %cst_24 = arith.constant 5.000000e-01 : f32
    %50 = vector.broadcast %cst_24 : f32 to vector<8x384xf32>
    %51 = arith.addf %49, %50 : vector<8x384xf32>
    %52 = vector.extract_strided_slice %51 {offsets = [0, 0], sizes = [8, 128], strides = [1, 1]} : vector<8x384xf32> to vector<8x128xf32>
    %53 = vector.extract_strided_slice %51 {offsets = [0, 128], sizes = [8, 128], strides = [1, 1]} : vector<8x384xf32> to vector<8x128xf32>
    %54 = vector.extract_strided_slice %51 {offsets = [0, 256], sizes = [8, 128], strides = [1, 1]} : vector<8x384xf32> to vector<8x128xf32>
    %55 = vector.extract_strided_slice %43 {offsets = [0, 384], sizes = [8, 128], strides = [1, 1]} : vector<8x512xf32> to vector<8x128xf32>
    %56 = math.tanh %55 : vector<8x128xf32>
    %57 = arith.mulf %53, %31 : vector<8x128xf32>
    %58 = arith.mulf %52, %56 : vector<8x128xf32>
    %59 = arith.addf %57, %58 : vector<8x128xf32>
    %60 = math.tanh %59 : vector<8x128xf32>
    %61 = arith.mulf %54, %60 : vector<8x128xf32>
    %62 = arith.index_cast %c1_i32 : i32 to index
    %c0_25 = arith.constant 0 : index
    %c0_26 = arith.constant 0 : index
    %63 = vector.load %arg9[%62, %c0_25, %c0_26] : memref<8x8x128xf32, #tpu.memory_space<vmem>>, vector<1x8x128xf32>
    %64 = vector.shape_cast %63 : vector<1x8x128xf32> to vector<8x128xf32>
    %65 = vector.shape_cast %61 : vector<8x128xf32> to vector<1x8x128xf32>
    tpu.vector_store %arg9[%62, %c0_25, %c0_26], %65 {strides = array<i32>} : memref<8x8x128xf32, #tpu.memory_space<vmem>>, vector<1x8x128xf32>,
    %c2_i32 = arith.constant 2 : i32
    %66 = arith.index_cast %c2_i32 : i32 to index
    %c0_27 = arith.constant 0 : index
    %c0_28 = arith.constant 0 : index
    %67 = vector.load %arg8[%66, %c0_27, %c0_28] : memref<8x8x512xf32, #tpu.memory_space<vmem>>, vector<1x8x512xf32>
    %68 = vector.shape_cast %67 : vector<1x8x512xf32> to vector<8x512xf32>
    %69 = arith.truncf %61 : vector<8x128xf32> to vector<8x128xbf16>
    %cst_29 = arith.constant dense<0.000000e+00> : vector<8x512xf32>
    %70 = tpu.matmul %69, %8, %cst_29 {dimension_numbers = #tpu.dot_dimension_numbers<[1], [0], [0], [1], [0, 0, 1, 1], [], []>} : vector<8x128xbf16>, vector<128x512xbf16>, vector<8x512xf32> -> vector<8x512xf32>
    %71 = arith.addf %68, %70 : vector<8x512xf32>
    %72 = vector.extract_strided_slice %71 {offsets = [0, 0], sizes = [8, 384], strides = [1, 1]} : vector<8x512xf32> to vector<8x384xf32>
    %cst_30 = arith.constant 5.000000e-01 : f32
    %73 = vector.broadcast %cst_30 : f32 to vector<8x384xf32>
    %74 = arith.mulf %73, %72 : vector<8x384xf32>
    %75 = math.tanh %74 : vector<8x384xf32>
    %cst_31 = arith.constant 5.000000e-01 : f32
    %76 = vector.broadcast %cst_31 : f32 to vector<8x384xf32>
    %77 = arith.mulf %76, %75 : vector<8x384xf32>
    %cst_32 = arith.constant 5.000000e-01 : f32
    %78 = vector.broadcast %cst_32 : f32 to vector<8x384xf32>
    %79 = arith.addf %77, %78 : vector<8x384xf32>
    %80 = vector.extract_strided_slice %79 {offsets = [0, 0], sizes = [8, 128], strides = [1, 1]} : vector<8x384xf32> to vector<8x128xf32>
    %81 = vector.extract_strided_slice %79 {offsets = [0, 128], sizes = [8, 128], strides = [1, 1]} : vector<8x384xf32> to vector<8x128xf32>
    %82 = vector.extract_strided_slice %79 {offsets = [0, 256], sizes = [8, 128], strides = [1, 1]} : vector<8x384xf32> to vector<8x128xf32>
    %83 = vector.extract_strided_slice %71 {offsets = [0, 384], sizes = [8, 128], strides = [1, 1]} : vector<8x512xf32> to vector<8x128xf32>
    %84 = math.tanh %83 : vector<8x128xf32>
    %85 = arith.mulf %81, %59 : vector<8x128xf32>
    %86 = arith.mulf %80, %84 : vector<8x128xf32>
    %87 = arith.addf %85, %86 : vector<8x128xf32>
    %88 = math.tanh %87 : vector<8x128xf32>
    %89 = arith.mulf %82, %88 : vector<8x128xf32>
    %90 = arith.index_cast %c2_i32 : i32 to index
    %c0_33 = arith.constant 0 : index
    %c0_34 = arith.constant 0 : index
    %91 = vector.load %arg9[%90, %c0_33, %c0_34] : memref<8x8x128xf32, #tpu.memory_space<vmem>>, vector<1x8x128xf32>
    %92 = vector.shape_cast %91 : vector<1x8x128xf32> to vector<8x128xf32>
    %93 = vector.shape_cast %89 : vector<8x128xf32> to vector<1x8x128xf32>
    tpu.vector_store %arg9[%90, %c0_33, %c0_34], %93 {strides = array<i32>} : memref<8x8x128xf32, #tpu.memory_space<vmem>>, vector<1x8x128xf32>,
    %c3_i32 = arith.constant 3 : i32
    %94 = arith.index_cast %c3_i32 : i32 to index
    %c0_35 = arith.constant 0 : index
    %c0_36 = arith.constant 0 : index
    %95 = vector.load %arg8[%94, %c0_35, %c0_36] : memref<8x8x512xf32, #tpu.memory_space<vmem>>, vector<1x8x512xf32>
    %96 = vector.shape_cast %95 : vector<1x8x512xf32> to vector<8x512xf32>
    %97 = arith.truncf %89 : vector<8x128xf32> to vector<8x128xbf16>
    %cst_37 = arith.constant dense<0.000000e+00> : vector<8x512xf32>
    %98 = tpu.matmul %97, %8, %cst_37 {dimension_numbers = #tpu.dot_dimension_numbers<[1], [0], [0], [1], [0, 0, 1, 1], [], []>} : vector<8x128xbf16>, vector<128x512xbf16>, vector<8x512xf32> -> vector<8x512xf32>
    %99 = arith.addf %96, %98 : vector<8x512xf32>
    %100 = vector.extract_strided_slice %99 {offsets = [0, 0], sizes = [8, 384], strides = [1, 1]} : vector<8x512xf32> to vector<8x384xf32>
    %cst_38 = arith.constant 5.000000e-01 : f32
    %101 = vector.broadcast %cst_38 : f32 to vector<8x384xf32>
    %102 = arith.mulf %101, %100 : vector<8x384xf32>
    %103 = math.tanh %102 : vector<8x384xf32>
    %cst_39 = arith.constant 5.000000e-01 : f32
    %104 = vector.broadcast %cst_39 : f32 to vector<8x384xf32>
    %105 = arith.mulf %104, %103 : vector<8x384xf32>
    %cst_40 = arith.constant 5.000000e-01 : f32
    %106 = vector.broadcast %cst_40 : f32 to vector<8x384xf32>
    %107 = arith.addf %105, %106 : vector<8x384xf32>
    %108 = vector.extract_strided_slice %107 {offsets = [0, 0], sizes = [8, 128], strides = [1, 1]} : vector<8x384xf32> to vector<8x128xf32>
    %109 = vector.extract_strided_slice %107 {offsets = [0, 128], sizes = [8, 128], strides = [1, 1]} : vector<8x384xf32> to vector<8x128xf32>
    %110 = vector.extract_strided_slice %107 {offsets = [0, 256], sizes = [8, 128], strides = [1, 1]} : vector<8x384xf32> to vector<8x128xf32>
    %111 = vector.extract_strided_slice %99 {offsets = [0, 384], sizes = [8, 128], strides = [1, 1]} : vector<8x512xf32> to vector<8x128xf32>
    %112 = math.tanh %111 : vector<8x128xf32>
    %113 = arith.mulf %109, %87 : vector<8x128xf32>
    %114 = arith.mulf %108, %112 : vector<8x128xf32>
    %115 = arith.addf %113, %114 : vector<8x128xf32>
    %116 = math.tanh %115 : vector<8x128xf32>
    %117 = arith.mulf %110, %116 : vector<8x128xf32>
    %118 = arith.index_cast %c3_i32 : i32 to index
    %c0_41 = arith.constant 0 : index
    %c0_42 = arith.constant 0 : index
    %119 = vector.load %arg9[%118, %c0_41, %c0_42] : memref<8x8x128xf32, #tpu.memory_space<vmem>>, vector<1x8x128xf32>
    %120 = vector.shape_cast %119 : vector<1x8x128xf32> to vector<8x128xf32>
    %121 = vector.shape_cast %117 : vector<8x128xf32> to vector<1x8x128xf32>
    tpu.vector_store %arg9[%118, %c0_41, %c0_42], %121 {strides = array<i32>} : memref<8x8x128xf32, #tpu.memory_space<vmem>>, vector<1x8x128xf32>,
    %c4_i32 = arith.constant 4 : i32
    %122 = arith.index_cast %c4_i32 : i32 to index
    %c0_43 = arith.constant 0 : index
    %c0_44 = arith.constant 0 : index
    %123 = vector.load %arg8[%122, %c0_43, %c0_44] : memref<8x8x512xf32, #tpu.memory_space<vmem>>, vector<1x8x512xf32>
    %124 = vector.shape_cast %123 : vector<1x8x512xf32> to vector<8x512xf32>
    %125 = arith.truncf %117 : vector<8x128xf32> to vector<8x128xbf16>
    %cst_45 = arith.constant dense<0.000000e+00> : vector<8x512xf32>
    %126 = tpu.matmul %125, %8, %cst_45 {dimension_numbers = #tpu.dot_dimension_numbers<[1], [0], [0], [1], [0, 0, 1, 1], [], []>} : vector<8x128xbf16>, vector<128x512xbf16>, vector<8x512xf32> -> vector<8x512xf32>
    %127 = arith.addf %124, %126 : vector<8x512xf32>
    %128 = vector.extract_strided_slice %127 {offsets = [0, 0], sizes = [8, 384], strides = [1, 1]} : vector<8x512xf32> to vector<8x384xf32>
    %cst_46 = arith.constant 5.000000e-01 : f32
    %129 = vector.broadcast %cst_46 : f32 to vector<8x384xf32>
    %130 = arith.mulf %129, %128 : vector<8x384xf32>
    %131 = math.tanh %130 : vector<8x384xf32>
    %cst_47 = arith.constant 5.000000e-01 : f32
    %132 = vector.broadcast %cst_47 : f32 to vector<8x384xf32>
    %133 = arith.mulf %132, %131 : vector<8x384xf32>
    %cst_48 = arith.constant 5.000000e-01 : f32
    %134 = vector.broadcast %cst_48 : f32 to vector<8x384xf32>
    %135 = arith.addf %133, %134 : vector<8x384xf32>
    %136 = vector.extract_strided_slice %135 {offsets = [0, 0], sizes = [8, 128], strides = [1, 1]} : vector<8x384xf32> to vector<8x128xf32>
    %137 = vector.extract_strided_slice %135 {offsets = [0, 128], sizes = [8, 128], strides = [1, 1]} : vector<8x384xf32> to vector<8x128xf32>
    %138 = vector.extract_strided_slice %135 {offsets = [0, 256], sizes = [8, 128], strides = [1, 1]} : vector<8x384xf32> to vector<8x128xf32>
    %139 = vector.extract_strided_slice %127 {offsets = [0, 384], sizes = [8, 128], strides = [1, 1]} : vector<8x512xf32> to vector<8x128xf32>
    %140 = math.tanh %139 : vector<8x128xf32>
    %141 = arith.mulf %137, %115 : vector<8x128xf32>
    %142 = arith.mulf %136, %140 : vector<8x128xf32>
    %143 = arith.addf %141, %142 : vector<8x128xf32>
    %144 = math.tanh %143 : vector<8x128xf32>
    %145 = arith.mulf %138, %144 : vector<8x128xf32>
    %146 = arith.index_cast %c4_i32 : i32 to index
    %c0_49 = arith.constant 0 : index
    %c0_50 = arith.constant 0 : index
    %147 = vector.load %arg9[%146, %c0_49, %c0_50] : memref<8x8x128xf32, #tpu.memory_space<vmem>>, vector<1x8x128xf32>
    %148 = vector.shape_cast %147 : vector<1x8x128xf32> to vector<8x128xf32>
    %149 = vector.shape_cast %145 : vector<8x128xf32> to vector<1x8x128xf32>
    tpu.vector_store %arg9[%146, %c0_49, %c0_50], %149 {strides = array<i32>} : memref<8x8x128xf32, #tpu.memory_space<vmem>>, vector<1x8x128xf32>,
    %c5_i32 = arith.constant 5 : i32
    %150 = arith.index_cast %c5_i32 : i32 to index
    %c0_51 = arith.constant 0 : index
    %c0_52 = arith.constant 0 : index
    %151 = vector.load %arg8[%150, %c0_51, %c0_52] : memref<8x8x512xf32, #tpu.memory_space<vmem>>, vector<1x8x512xf32>
    %152 = vector.shape_cast %151 : vector<1x8x512xf32> to vector<8x512xf32>
    %153 = arith.truncf %145 : vector<8x128xf32> to vector<8x128xbf16>
    %cst_53 = arith.constant dense<0.000000e+00> : vector<8x512xf32>
    %154 = tpu.matmul %153, %8, %cst_53 {dimension_numbers = #tpu.dot_dimension_numbers<[1], [0], [0], [1], [0, 0, 1, 1], [], []>} : vector<8x128xbf16>, vector<128x512xbf16>, vector<8x512xf32> -> vector<8x512xf32>
    %155 = arith.addf %152, %154 : vector<8x512xf32>
    %156 = vector.extract_strided_slice %155 {offsets = [0, 0], sizes = [8, 384], strides = [1, 1]} : vector<8x512xf32> to vector<8x384xf32>
    %cst_54 = arith.constant 5.000000e-01 : f32
    %157 = vector.broadcast %cst_54 : f32 to vector<8x384xf32>
    %158 = arith.mulf %157, %156 : vector<8x384xf32>
    %159 = math.tanh %158 : vector<8x384xf32>
    %cst_55 = arith.constant 5.000000e-01 : f32
    %160 = vector.broadcast %cst_55 : f32 to vector<8x384xf32>
    %161 = arith.mulf %160, %159 : vector<8x384xf32>
    %cst_56 = arith.constant 5.000000e-01 : f32
    %162 = vector.broadcast %cst_56 : f32 to vector<8x384xf32>
    %163 = arith.addf %161, %162 : vector<8x384xf32>
    %164 = vector.extract_strided_slice %163 {offsets = [0, 0], sizes = [8, 128], strides = [1, 1]} : vector<8x384xf32> to vector<8x128xf32>
    %165 = vector.extract_strided_slice %163 {offsets = [0, 128], sizes = [8, 128], strides = [1, 1]} : vector<8x384xf32> to vector<8x128xf32>
    %166 = vector.extract_strided_slice %163 {offsets = [0, 256], sizes = [8, 128], strides = [1, 1]} : vector<8x384xf32> to vector<8x128xf32>
    %167 = vector.extract_strided_slice %155 {offsets = [0, 384], sizes = [8, 128], strides = [1, 1]} : vector<8x512xf32> to vector<8x128xf32>
    %168 = math.tanh %167 : vector<8x128xf32>
    %169 = arith.mulf %165, %143 : vector<8x128xf32>
    %170 = arith.mulf %164, %168 : vector<8x128xf32>
    %171 = arith.addf %169, %170 : vector<8x128xf32>
    %172 = math.tanh %171 : vector<8x128xf32>
    %173 = arith.mulf %166, %172 : vector<8x128xf32>
    %174 = arith.index_cast %c5_i32 : i32 to index
    %c0_57 = arith.constant 0 : index
    %c0_58 = arith.constant 0 : index
    %175 = vector.load %arg9[%174, %c0_57, %c0_58] : memref<8x8x128xf32, #tpu.memory_space<vmem>>, vector<1x8x128xf32>
    %176 = vector.shape_cast %175 : vector<1x8x128xf32> to vector<8x128xf32>
    %177 = vector.shape_cast %173 : vector<8x128xf32> to vector<1x8x128xf32>
    tpu.vector_store %arg9[%174, %c0_57, %c0_58], %177 {strides = array<i32>} : memref<8x8x128xf32, #tpu.memory_space<vmem>>, vector<1x8x128xf32>,
    %c6_i32 = arith.constant 6 : i32
    %178 = arith.index_cast %c6_i32 : i32 to index
    %c0_59 = arith.constant 0 : index
    %c0_60 = arith.constant 0 : index
    %179 = vector.load %arg8[%178, %c0_59, %c0_60] : memref<8x8x512xf32, #tpu.memory_space<vmem>>, vector<1x8x512xf32>
    %180 = vector.shape_cast %179 : vector<1x8x512xf32> to vector<8x512xf32>
    %181 = arith.truncf %173 : vector<8x128xf32> to vector<8x128xbf16>
    %cst_61 = arith.constant dense<0.000000e+00> : vector<8x512xf32>
    %182 = tpu.matmul %181, %8, %cst_61 {dimension_numbers = #tpu.dot_dimension_numbers<[1], [0], [0], [1], [0, 0, 1, 1], [], []>} : vector<8x128xbf16>, vector<128x512xbf16>, vector<8x512xf32> -> vector<8x512xf32>
    %183 = arith.addf %180, %182 : vector<8x512xf32>
    %184 = vector.extract_strided_slice %183 {offsets = [0, 0], sizes = [8, 384], strides = [1, 1]} : vector<8x512xf32> to vector<8x384xf32>
    %cst_62 = arith.constant 5.000000e-01 : f32
    %185 = vector.broadcast %cst_62 : f32 to vector<8x384xf32>
    %186 = arith.mulf %185, %184 : vector<8x384xf32>
    %187 = math.tanh %186 : vector<8x384xf32>
    %cst_63 = arith.constant 5.000000e-01 : f32
    %188 = vector.broadcast %cst_63 : f32 to vector<8x384xf32>
    %189 = arith.mulf %188, %187 : vector<8x384xf32>
    %cst_64 = arith.constant 5.000000e-01 : f32
    %190 = vector.broadcast %cst_64 : f32 to vector<8x384xf32>
    %191 = arith.addf %189, %190 : vector<8x384xf32>
    %192 = vector.extract_strided_slice %191 {offsets = [0, 0], sizes = [8, 128], strides = [1, 1]} : vector<8x384xf32> to vector<8x128xf32>
    %193 = vector.extract_strided_slice %191 {offsets = [0, 128], sizes = [8, 128], strides = [1, 1]} : vector<8x384xf32> to vector<8x128xf32>
    %194 = vector.extract_strided_slice %191 {offsets = [0, 256], sizes = [8, 128], strides = [1, 1]} : vector<8x384xf32> to vector<8x128xf32>
    %195 = vector.extract_strided_slice %183 {offsets = [0, 384], sizes = [8, 128], strides = [1, 1]} : vector<8x512xf32> to vector<8x128xf32>
    %196 = math.tanh %195 : vector<8x128xf32>
    %197 = arith.mulf %193, %171 : vector<8x128xf32>
    %198 = arith.mulf %192, %196 : vector<8x128xf32>
    %199 = arith.addf %197, %198 : vector<8x128xf32>
    %200 = math.tanh %199 : vector<8x128xf32>
    %201 = arith.mulf %194, %200 : vector<8x128xf32>
    %202 = arith.index_cast %c6_i32 : i32 to index
    %c0_65 = arith.constant 0 : index
    %c0_66 = arith.constant 0 : index
    %203 = vector.load %arg9[%202, %c0_65, %c0_66] : memref<8x8x128xf32, #tpu.memory_space<vmem>>, vector<1x8x128xf32>
    %204 = vector.shape_cast %203 : vector<1x8x128xf32> to vector<8x128xf32>
    %205 = vector.shape_cast %201 : vector<8x128xf32> to vector<1x8x128xf32>
    tpu.vector_store %arg9[%202, %c0_65, %c0_66], %205 {strides = array<i32>} : memref<8x8x128xf32, #tpu.memory_space<vmem>>, vector<1x8x128xf32>,
    %c7_i32 = arith.constant 7 : i32
    %206 = arith.index_cast %c7_i32 : i32 to index
    %c0_67 = arith.constant 0 : index
    %c0_68 = arith.constant 0 : index
    %207 = vector.load %arg8[%206, %c0_67, %c0_68] : memref<8x8x512xf32, #tpu.memory_space<vmem>>, vector<1x8x512xf32>
    %208 = vector.shape_cast %207 : vector<1x8x512xf32> to vector<8x512xf32>
    %209 = arith.truncf %201 : vector<8x128xf32> to vector<8x128xbf16>
    %cst_69 = arith.constant dense<0.000000e+00> : vector<8x512xf32>
    %210 = tpu.matmul %209, %8, %cst_69 {dimension_numbers = #tpu.dot_dimension_numbers<[1], [0], [0], [1], [0, 0, 1, 1], [], []>} : vector<8x128xbf16>, vector<128x512xbf16>, vector<8x512xf32> -> vector<8x512xf32>
    %211 = arith.addf %208, %210 : vector<8x512xf32>
    %212 = vector.extract_strided_slice %211 {offsets = [0, 0], sizes = [8, 384], strides = [1, 1]} : vector<8x512xf32> to vector<8x384xf32>
    %cst_70 = arith.constant 5.000000e-01 : f32
    %213 = vector.broadcast %cst_70 : f32 to vector<8x384xf32>
    %214 = arith.mulf %213, %212 : vector<8x384xf32>
    %215 = math.tanh %214 : vector<8x384xf32>
    %cst_71 = arith.constant 5.000000e-01 : f32
    %216 = vector.broadcast %cst_71 : f32 to vector<8x384xf32>
    %217 = arith.mulf %216, %215 : vector<8x384xf32>
    %cst_72 = arith.constant 5.000000e-01 : f32
    %218 = vector.broadcast %cst_72 : f32 to vector<8x384xf32>
    %219 = arith.addf %217, %218 : vector<8x384xf32>
    %220 = vector.extract_strided_slice %219 {offsets = [0, 0], sizes = [8, 128], strides = [1, 1]} : vector<8x384xf32> to vector<8x128xf32>
    %221 = vector.extract_strided_slice %219 {offsets = [0, 128], sizes = [8, 128], strides = [1, 1]} : vector<8x384xf32> to vector<8x128xf32>
    %222 = vector.extract_strided_slice %219 {offsets = [0, 256], sizes = [8, 128], strides = [1, 1]} : vector<8x384xf32> to vector<8x128xf32>
    %223 = vector.extract_strided_slice %211 {offsets = [0, 384], sizes = [8, 128], strides = [1, 1]} : vector<8x512xf32> to vector<8x128xf32>
    %224 = math.tanh %223 : vector<8x128xf32>
    %225 = arith.mulf %221, %199 : vector<8x128xf32>
    %226 = arith.mulf %220, %224 : vector<8x128xf32>
    %227 = arith.addf %225, %226 : vector<8x128xf32>
    %228 = math.tanh %227 : vector<8x128xf32>
    %229 = arith.mulf %222, %228 : vector<8x128xf32>
    %230 = arith.index_cast %c7_i32 : i32 to index
    %c0_73 = arith.constant 0 : index
    %c0_74 = arith.constant 0 : index
    %231 = vector.load %arg9[%230, %c0_73, %c0_74] : memref<8x8x128xf32, #tpu.memory_space<vmem>>, vector<1x8x128xf32>
    %232 = vector.shape_cast %231 : vector<1x8x128xf32> to vector<8x128xf32>
    %233 = vector.shape_cast %229 : vector<8x128xf32> to vector<1x8x128xf32>
    tpu.vector_store %arg9[%230, %c0_73, %c0_74], %233 {strides = array<i32>} : memref<8x8x128xf32, #tpu.memory_space<vmem>>, vector<1x8x128xf32>,
    %c8_i32 = arith.constant 8 : i32
    %c0_75 = arith.constant 0 : index
    %c0_76 = arith.constant 0 : index
    %c0_77 = arith.constant 0 : index
    %234 = vector.load %arg9[%c0_75, %c0_76, %c0_77] : memref<8x8x128xf32, #tpu.memory_space<vmem>>, vector<8x8x128xf32>
    %235 = vector.shape_cast %234 : vector<8x8x128xf32> to vector<64x128xf32>
    %236 = arith.truncf %235 : vector<64x128xf32> to vector<64x128xbf16>
    %c0_78 = arith.constant 0 : index
    %c0_79 = arith.constant 0 : index
    %237 = vector.load %arg4[%c0_78, %c0_79] : memref<128x512xbf16, #tpu.memory_space<vmem>>, vector<128x512xbf16>
    %cst_80 = arith.constant dense<0.000000e+00> : vector<64x512xf32>
    %238 = tpu.matmul %236, %237, %cst_80 {dimension_numbers = #tpu.dot_dimension_numbers<[1], [0], [0], [1], [0, 0, 1, 1], [], []>} : vector<64x128xbf16>, vector<128x512xbf16>, vector<64x512xf32> -> vector<64x512xf32>
    %c0_81 = arith.constant 0 : index
    %c0_82 = arith.constant 0 : index
    %239 = vector.load %arg6[%c0_81, %c0_82] : memref<1x512xf32, #tpu.memory_space<vmem>>, vector<1x512xf32>
    %240 = vector.broadcast %239 : vector<1x512xf32> to vector<64x512xf32>
    %241 = arith.addf %238, %240 : vector<64x512xf32>
    %242 = vector.shape_cast %241 : vector<64x512xf32> to vector<8x8x512xf32>
    %c0_83 = arith.constant 0 : index
    %c0_84 = arith.constant 0 : index
    %c0_85 = arith.constant 0 : index
    %243 = vector.load %arg8[%c0_83, %c0_84, %c0_85] : memref<8x8x512xf32, #tpu.memory_space<vmem>>, vector<8x8x512xf32>
    tpu.vector_store %arg8[%c0_83, %c0_84, %c0_85], %242 {strides = array<i32>} : memref<8x8x512xf32, #tpu.memory_space<vmem>>, vector<8x8x512xf32>,
    %c0_86 = arith.constant 0 : index
    %c0_87 = arith.constant 0 : index
    %244 = vector.load %arg5[%c0_86, %c0_87] : memref<128x512xbf16, #tpu.memory_space<vmem>>, vector<128x512xbf16>
    %cst_88 = arith.constant 0.000000e+00 : f32
    %245 = vector.broadcast %cst_88 : f32 to vector<8x128xf32>
    %c0_i32_89 = arith.constant 0 : i32
    %246 = arith.index_cast %c0_i32_89 : i32 to index
    %c0_90 = arith.constant 0 : index
    %c0_91 = arith.constant 0 : index
    %247 = vector.load %arg8[%246, %c0_90, %c0_91] : memref<8x8x512xf32, #tpu.memory_space<vmem>>, vector<1x8x512xf32>
    %248 = vector.shape_cast %247 : vector<1x8x512xf32> to vector<8x512xf32>
    %249 = arith.truncf %245 : vector<8x128xf32> to vector<8x128xbf16>
    %cst_92 = arith.constant dense<0.000000e+00> : vector<8x512xf32>
    %250 = tpu.matmul %249, %244, %cst_92 {dimension_numbers = #tpu.dot_dimension_numbers<[1], [0], [0], [1], [0, 0, 1, 1], [], []>} : vector<8x128xbf16>, vector<128x512xbf16>, vector<8x512xf32> -> vector<8x512xf32>
    %251 = arith.addf %248, %250 : vector<8x512xf32>
    %252 = vector.extract_strided_slice %251 {offsets = [0, 0], sizes = [8, 384], strides = [1, 1]} : vector<8x512xf32> to vector<8x384xf32>
    %cst_93 = arith.constant 5.000000e-01 : f32
    %253 = vector.broadcast %cst_93 : f32 to vector<8x384xf32>
    %254 = arith.mulf %253, %252 : vector<8x384xf32>
    %255 = math.tanh %254 : vector<8x384xf32>
    %cst_94 = arith.constant 5.000000e-01 : f32
    %256 = vector.broadcast %cst_94 : f32 to vector<8x384xf32>
    %257 = arith.mulf %256, %255 : vector<8x384xf32>
    %cst_95 = arith.constant 5.000000e-01 : f32
    %258 = vector.broadcast %cst_95 : f32 to vector<8x384xf32>
    %259 = arith.addf %257, %258 : vector<8x384xf32>
    %260 = vector.extract_strided_slice %259 {offsets = [0, 0], sizes = [8, 128], strides = [1, 1]} : vector<8x384xf32> to vector<8x128xf32>
    %261 = vector.extract_strided_slice %259 {offsets = [0, 128], sizes = [8, 128], strides = [1, 1]} : vector<8x384xf32> to vector<8x128xf32>
    %262 = vector.extract_strided_slice %259 {offsets = [0, 256], sizes = [8, 128], strides = [1, 1]} : vector<8x384xf32> to vector<8x128xf32>
    %263 = vector.extract_strided_slice %251 {offsets = [0, 384], sizes = [8, 128], strides = [1, 1]} : vector<8x512xf32> to vector<8x128xf32>
    %264 = math.tanh %263 : vector<8x128xf32>
    %265 = arith.mulf %261, %245 : vector<8x128xf32>
    %266 = arith.mulf %260, %264 : vector<8x128xf32>
    %267 = arith.addf %265, %266 : vector<8x128xf32>
    %268 = math.tanh %267 : vector<8x128xf32>
    %269 = arith.mulf %262, %268 : vector<8x128xf32>
    %c1_i32_96 = arith.constant 1 : i32
    %270 = arith.index_cast %c1_i32_96 : i32 to index
    %c0_97 = arith.constant 0 : index
    %c0_98 = arith.constant 0 : index
    %271 = vector.load %arg8[%270, %c0_97, %c0_98] : memref<8x8x512xf32, #tpu.memory_space<vmem>>, vector<1x8x512xf32>
    %272 = vector.shape_cast %271 : vector<1x8x512xf32> to vector<8x512xf32>
    %273 = arith.truncf %269 : vector<8x128xf32> to vector<8x128xbf16>
    %cst_99 = arith.constant dense<0.000000e+00> : vector<8x512xf32>
    %274 = tpu.matmul %273, %244, %cst_99 {dimension_numbers = #tpu.dot_dimension_numbers<[1], [0], [0], [1], [0, 0, 1, 1], [], []>} : vector<8x128xbf16>, vector<128x512xbf16>, vector<8x512xf32> -> vector<8x512xf32>
    %275 = arith.addf %272, %274 : vector<8x512xf32>
    %276 = vector.extract_strided_slice %275 {offsets = [0, 0], sizes = [8, 384], strides = [1, 1]} : vector<8x512xf32> to vector<8x384xf32>
    %cst_100 = arith.constant 5.000000e-01 : f32
    %277 = vector.broadcast %cst_100 : f32 to vector<8x384xf32>
    %278 = arith.mulf %277, %276 : vector<8x384xf32>
    %279 = math.tanh %278 : vector<8x384xf32>
    %cst_101 = arith.constant 5.000000e-01 : f32
    %280 = vector.broadcast %cst_101 : f32 to vector<8x384xf32>
    %281 = arith.mulf %280, %279 : vector<8x384xf32>
    %cst_102 = arith.constant 5.000000e-01 : f32
    %282 = vector.broadcast %cst_102 : f32 to vector<8x384xf32>
    %283 = arith.addf %281, %282 : vector<8x384xf32>
    %284 = vector.extract_strided_slice %283 {offsets = [0, 0], sizes = [8, 128], strides = [1, 1]} : vector<8x384xf32> to vector<8x128xf32>
    %285 = vector.extract_strided_slice %283 {offsets = [0, 128], sizes = [8, 128], strides = [1, 1]} : vector<8x384xf32> to vector<8x128xf32>
    %286 = vector.extract_strided_slice %283 {offsets = [0, 256], sizes = [8, 128], strides = [1, 1]} : vector<8x384xf32> to vector<8x128xf32>
    %287 = vector.extract_strided_slice %275 {offsets = [0, 384], sizes = [8, 128], strides = [1, 1]} : vector<8x512xf32> to vector<8x128xf32>
    %288 = math.tanh %287 : vector<8x128xf32>
    %289 = arith.mulf %285, %267 : vector<8x128xf32>
    %290 = arith.mulf %284, %288 : vector<8x128xf32>
    %291 = arith.addf %289, %290 : vector<8x128xf32>
    %292 = math.tanh %291 : vector<8x128xf32>
    %293 = arith.mulf %286, %292 : vector<8x128xf32>
    %c2_i32_103 = arith.constant 2 : i32
    %294 = arith.index_cast %c2_i32_103 : i32 to index
    %c0_104 = arith.constant 0 : index
    %c0_105 = arith.constant 0 : index
    %295 = vector.load %arg8[%294, %c0_104, %c0_105] : memref<8x8x512xf32, #tpu.memory_space<vmem>>, vector<1x8x512xf32>
    %296 = vector.shape_cast %295 : vector<1x8x512xf32> to vector<8x512xf32>
    %297 = arith.truncf %293 : vector<8x128xf32> to vector<8x128xbf16>
    %cst_106 = arith.constant dense<0.000000e+00> : vector<8x512xf32>
    %298 = tpu.matmul %297, %244, %cst_106 {dimension_numbers = #tpu.dot_dimension_numbers<[1], [0], [0], [1], [0, 0, 1, 1], [], []>} : vector<8x128xbf16>, vector<128x512xbf16>, vector<8x512xf32> -> vector<8x512xf32>
    %299 = arith.addf %296, %298 : vector<8x512xf32>
    %300 = vector.extract_strided_slice %299 {offsets = [0, 0], sizes = [8, 384], strides = [1, 1]} : vector<8x512xf32> to vector<8x384xf32>
    %cst_107 = arith.constant 5.000000e-01 : f32
    %301 = vector.broadcast %cst_107 : f32 to vector<8x384xf32>
    %302 = arith.mulf %301, %300 : vector<8x384xf32>
    %303 = math.tanh %302 : vector<8x384xf32>
    %cst_108 = arith.constant 5.000000e-01 : f32
    %304 = vector.broadcast %cst_108 : f32 to vector<8x384xf32>
    %305 = arith.mulf %304, %303 : vector<8x384xf32>
    %cst_109 = arith.constant 5.000000e-01 : f32
    %306 = vector.broadcast %cst_109 : f32 to vector<8x384xf32>
    %307 = arith.addf %305, %306 : vector<8x384xf32>
    %308 = vector.extract_strided_slice %307 {offsets = [0, 0], sizes = [8, 128], strides = [1, 1]} : vector<8x384xf32> to vector<8x128xf32>
    %309 = vector.extract_strided_slice %307 {offsets = [0, 128], sizes = [8, 128], strides = [1, 1]} : vector<8x384xf32> to vector<8x128xf32>
    %310 = vector.extract_strided_slice %307 {offsets = [0, 256], sizes = [8, 128], strides = [1, 1]} : vector<8x384xf32> to vector<8x128xf32>
    %311 = vector.extract_strided_slice %299 {offsets = [0, 384], sizes = [8, 128], strides = [1, 1]} : vector<8x512xf32> to vector<8x128xf32>
    %312 = math.tanh %311 : vector<8x128xf32>
    %313 = arith.mulf %309, %291 : vector<8x128xf32>
    %314 = arith.mulf %308, %312 : vector<8x128xf32>
    %315 = arith.addf %313, %314 : vector<8x128xf32>
    %316 = math.tanh %315 : vector<8x128xf32>
    %317 = arith.mulf %310, %316 : vector<8x128xf32>
    %c3_i32_110 = arith.constant 3 : i32
    %318 = arith.index_cast %c3_i32_110 : i32 to index
    %c0_111 = arith.constant 0 : index
    %c0_112 = arith.constant 0 : index
    %319 = vector.load %arg8[%318, %c0_111, %c0_112] : memref<8x8x512xf32, #tpu.memory_space<vmem>>, vector<1x8x512xf32>
    %320 = vector.shape_cast %319 : vector<1x8x512xf32> to vector<8x512xf32>
    %321 = arith.truncf %317 : vector<8x128xf32> to vector<8x128xbf16>
    %cst_113 = arith.constant dense<0.000000e+00> : vector<8x512xf32>
    %322 = tpu.matmul %321, %244, %cst_113 {dimension_numbers = #tpu.dot_dimension_numbers<[1], [0], [0], [1], [0, 0, 1, 1], [], []>} : vector<8x128xbf16>, vector<128x512xbf16>, vector<8x512xf32> -> vector<8x512xf32>
    %323 = arith.addf %320, %322 : vector<8x512xf32>
    %324 = vector.extract_strided_slice %323 {offsets = [0, 0], sizes = [8, 384], strides = [1, 1]} : vector<8x512xf32> to vector<8x384xf32>
    %cst_114 = arith.constant 5.000000e-01 : f32
    %325 = vector.broadcast %cst_114 : f32 to vector<8x384xf32>
    %326 = arith.mulf %325, %324 : vector<8x384xf32>
    %327 = math.tanh %326 : vector<8x384xf32>
    %cst_115 = arith.constant 5.000000e-01 : f32
    %328 = vector.broadcast %cst_115 : f32 to vector<8x384xf32>
    %329 = arith.mulf %328, %327 : vector<8x384xf32>
    %cst_116 = arith.constant 5.000000e-01 : f32
    %330 = vector.broadcast %cst_116 : f32 to vector<8x384xf32>
    %331 = arith.addf %329, %330 : vector<8x384xf32>
    %332 = vector.extract_strided_slice %331 {offsets = [0, 0], sizes = [8, 128], strides = [1, 1]} : vector<8x384xf32> to vector<8x128xf32>
    %333 = vector.extract_strided_slice %331 {offsets = [0, 128], sizes = [8, 128], strides = [1, 1]} : vector<8x384xf32> to vector<8x128xf32>
    %334 = vector.extract_strided_slice %331 {offsets = [0, 256], sizes = [8, 128], strides = [1, 1]} : vector<8x384xf32> to vector<8x128xf32>
    %335 = vector.extract_strided_slice %323 {offsets = [0, 384], sizes = [8, 128], strides = [1, 1]} : vector<8x512xf32> to vector<8x128xf32>
    %336 = math.tanh %335 : vector<8x128xf32>
    %337 = arith.mulf %333, %315 : vector<8x128xf32>
    %338 = arith.mulf %332, %336 : vector<8x128xf32>
    %339 = arith.addf %337, %338 : vector<8x128xf32>
    %340 = math.tanh %339 : vector<8x128xf32>
    %341 = arith.mulf %334, %340 : vector<8x128xf32>
    %c4_i32_117 = arith.constant 4 : i32
    %342 = arith.index_cast %c4_i32_117 : i32 to index
    %c0_118 = arith.constant 0 : index
    %c0_119 = arith.constant 0 : index
    %343 = vector.load %arg8[%342, %c0_118, %c0_119] : memref<8x8x512xf32, #tpu.memory_space<vmem>>, vector<1x8x512xf32>
    %344 = vector.shape_cast %343 : vector<1x8x512xf32> to vector<8x512xf32>
    %345 = arith.truncf %341 : vector<8x128xf32> to vector<8x128xbf16>
    %cst_120 = arith.constant dense<0.000000e+00> : vector<8x512xf32>
    %346 = tpu.matmul %345, %244, %cst_120 {dimension_numbers = #tpu.dot_dimension_numbers<[1], [0], [0], [1], [0, 0, 1, 1], [], []>} : vector<8x128xbf16>, vector<128x512xbf16>, vector<8x512xf32> -> vector<8x512xf32>
    %347 = arith.addf %344, %346 : vector<8x512xf32>
    %348 = vector.extract_strided_slice %347 {offsets = [0, 0], sizes = [8, 384], strides = [1, 1]} : vector<8x512xf32> to vector<8x384xf32>
    %cst_121 = arith.constant 5.000000e-01 : f32
    %349 = vector.broadcast %cst_121 : f32 to vector<8x384xf32>
    %350 = arith.mulf %349, %348 : vector<8x384xf32>
    %351 = math.tanh %350 : vector<8x384xf32>
    %cst_122 = arith.constant 5.000000e-01 : f32
    %352 = vector.broadcast %cst_122 : f32 to vector<8x384xf32>
    %353 = arith.mulf %352, %351 : vector<8x384xf32>
    %cst_123 = arith.constant 5.000000e-01 : f32
    %354 = vector.broadcast %cst_123 : f32 to vector<8x384xf32>
    %355 = arith.addf %353, %354 : vector<8x384xf32>
    %356 = vector.extract_strided_slice %355 {offsets = [0, 0], sizes = [8, 128], strides = [1, 1]} : vector<8x384xf32> to vector<8x128xf32>
    %357 = vector.extract_strided_slice %355 {offsets = [0, 128], sizes = [8, 128], strides = [1, 1]} : vector<8x384xf32> to vector<8x128xf32>
    %358 = vector.extract_strided_slice %355 {offsets = [0, 256], sizes = [8, 128], strides = [1, 1]} : vector<8x384xf32> to vector<8x128xf32>
    %359 = vector.extract_strided_slice %347 {offsets = [0, 384], sizes = [8, 128], strides = [1, 1]} : vector<8x512xf32> to vector<8x128xf32>
    %360 = math.tanh %359 : vector<8x128xf32>
    %361 = arith.mulf %357, %339 : vector<8x128xf32>
    %362 = arith.mulf %356, %360 : vector<8x128xf32>
    %363 = arith.addf %361, %362 : vector<8x128xf32>
    %364 = math.tanh %363 : vector<8x128xf32>
    %365 = arith.mulf %358, %364 : vector<8x128xf32>
    %c5_i32_124 = arith.constant 5 : i32
    %366 = arith.index_cast %c5_i32_124 : i32 to index
    %c0_125 = arith.constant 0 : index
    %c0_126 = arith.constant 0 : index
    %367 = vector.load %arg8[%366, %c0_125, %c0_126] : memref<8x8x512xf32, #tpu.memory_space<vmem>>, vector<1x8x512xf32>
    %368 = vector.shape_cast %367 : vector<1x8x512xf32> to vector<8x512xf32>
    %369 = arith.truncf %365 : vector<8x128xf32> to vector<8x128xbf16>
    %cst_127 = arith.constant dense<0.000000e+00> : vector<8x512xf32>
    %370 = tpu.matmul %369, %244, %cst_127 {dimension_numbers = #tpu.dot_dimension_numbers<[1], [0], [0], [1], [0, 0, 1, 1], [], []>} : vector<8x128xbf16>, vector<128x512xbf16>, vector<8x512xf32> -> vector<8x512xf32>
    %371 = arith.addf %368, %370 : vector<8x512xf32>
    %372 = vector.extract_strided_slice %371 {offsets = [0, 0], sizes = [8, 384], strides = [1, 1]} : vector<8x512xf32> to vector<8x384xf32>
    %cst_128 = arith.constant 5.000000e-01 : f32
    %373 = vector.broadcast %cst_128 : f32 to vector<8x384xf32>
    %374 = arith.mulf %373, %372 : vector<8x384xf32>
    %375 = math.tanh %374 : vector<8x384xf32>
    %cst_129 = arith.constant 5.000000e-01 : f32
    %376 = vector.broadcast %cst_129 : f32 to vector<8x384xf32>
    %377 = arith.mulf %376, %375 : vector<8x384xf32>
    %cst_130 = arith.constant 5.000000e-01 : f32
    %378 = vector.broadcast %cst_130 : f32 to vector<8x384xf32>
    %379 = arith.addf %377, %378 : vector<8x384xf32>
    %380 = vector.extract_strided_slice %379 {offsets = [0, 0], sizes = [8, 128], strides = [1, 1]} : vector<8x384xf32> to vector<8x128xf32>
    %381 = vector.extract_strided_slice %379 {offsets = [0, 128], sizes = [8, 128], strides = [1, 1]} : vector<8x384xf32> to vector<8x128xf32>
    %382 = vector.extract_strided_slice %379 {offsets = [0, 256], sizes = [8, 128], strides = [1, 1]} : vector<8x384xf32> to vector<8x128xf32>
    %383 = vector.extract_strided_slice %371 {offsets = [0, 384], sizes = [8, 128], strides = [1, 1]} : vector<8x512xf32> to vector<8x128xf32>
    %384 = math.tanh %383 : vector<8x128xf32>
    %385 = arith.mulf %381, %363 : vector<8x128xf32>
    %386 = arith.mulf %380, %384 : vector<8x128xf32>
    %387 = arith.addf %385, %386 : vector<8x128xf32>
    %388 = math.tanh %387 : vector<8x128xf32>
    %389 = arith.mulf %382, %388 : vector<8x128xf32>
    %c6_i32_131 = arith.constant 6 : i32
    %390 = arith.index_cast %c6_i32_131 : i32 to index
    %c0_132 = arith.constant 0 : index
    %c0_133 = arith.constant 0 : index
    %391 = vector.load %arg8[%390, %c0_132, %c0_133] : memref<8x8x512xf32, #tpu.memory_space<vmem>>, vector<1x8x512xf32>
    %392 = vector.shape_cast %391 : vector<1x8x512xf32> to vector<8x512xf32>
    %393 = arith.truncf %389 : vector<8x128xf32> to vector<8x128xbf16>
    %cst_134 = arith.constant dense<0.000000e+00> : vector<8x512xf32>
    %394 = tpu.matmul %393, %244, %cst_134 {dimension_numbers = #tpu.dot_dimension_numbers<[1], [0], [0], [1], [0, 0, 1, 1], [], []>} : vector<8x128xbf16>, vector<128x512xbf16>, vector<8x512xf32> -> vector<8x512xf32>
    %395 = arith.addf %392, %394 : vector<8x512xf32>
    %396 = vector.extract_strided_slice %395 {offsets = [0, 0], sizes = [8, 384], strides = [1, 1]} : vector<8x512xf32> to vector<8x384xf32>
    %cst_135 = arith.constant 5.000000e-01 : f32
    %397 = vector.broadcast %cst_135 : f32 to vector<8x384xf32>
    %398 = arith.mulf %397, %396 : vector<8x384xf32>
    %399 = math.tanh %398 : vector<8x384xf32>
    %cst_136 = arith.constant 5.000000e-01 : f32
    %400 = vector.broadcast %cst_136 : f32 to vector<8x384xf32>
    %401 = arith.mulf %400, %399 : vector<8x384xf32>
    %cst_137 = arith.constant 5.000000e-01 : f32
    %402 = vector.broadcast %cst_137 : f32 to vector<8x384xf32>
    %403 = arith.addf %401, %402 : vector<8x384xf32>
    %404 = vector.extract_strided_slice %403 {offsets = [0, 0], sizes = [8, 128], strides = [1, 1]} : vector<8x384xf32> to vector<8x128xf32>
    %405 = vector.extract_strided_slice %403 {offsets = [0, 128], sizes = [8, 128], strides = [1, 1]} : vector<8x384xf32> to vector<8x128xf32>
    %406 = vector.extract_strided_slice %403 {offsets = [0, 256], sizes = [8, 128], strides = [1, 1]} : vector<8x384xf32> to vector<8x128xf32>
    %407 = vector.extract_strided_slice %395 {offsets = [0, 384], sizes = [8, 128], strides = [1, 1]} : vector<8x512xf32> to vector<8x128xf32>
    %408 = math.tanh %407 : vector<8x128xf32>
    %409 = arith.mulf %405, %387 : vector<8x128xf32>
    %410 = arith.mulf %404, %408 : vector<8x128xf32>
    %411 = arith.addf %409, %410 : vector<8x128xf32>
    %412 = math.tanh %411 : vector<8x128xf32>
    %413 = arith.mulf %406, %412 : vector<8x128xf32>
    %c7_i32_138 = arith.constant 7 : i32
    %414 = arith.index_cast %c7_i32_138 : i32 to index
    %c0_139 = arith.constant 0 : index
    %c0_140 = arith.constant 0 : index
    %415 = vector.load %arg8[%414, %c0_139, %c0_140] : memref<8x8x512xf32, #tpu.memory_space<vmem>>, vector<1x8x512xf32>
    %416 = vector.shape_cast %415 : vector<1x8x512xf32> to vector<8x512xf32>
    %417 = arith.truncf %413 : vector<8x128xf32> to vector<8x128xbf16>
    %cst_141 = arith.constant dense<0.000000e+00> : vector<8x512xf32>
    %418 = tpu.matmul %417, %244, %cst_141 {dimension_numbers = #tpu.dot_dimension_numbers<[1], [0], [0], [1], [0, 0, 1, 1], [], []>} : vector<8x128xbf16>, vector<128x512xbf16>, vector<8x512xf32> -> vector<8x512xf32>
    %419 = arith.addf %416, %418 : vector<8x512xf32>
    %420 = vector.extract_strided_slice %419 {offsets = [0, 0], sizes = [8, 384], strides = [1, 1]} : vector<8x512xf32> to vector<8x384xf32>
    %cst_142 = arith.constant 5.000000e-01 : f32
    %421 = vector.broadcast %cst_142 : f32 to vector<8x384xf32>
    %422 = arith.mulf %421, %420 : vector<8x384xf32>
    %423 = math.tanh %422 : vector<8x384xf32>
    %cst_143 = arith.constant 5.000000e-01 : f32
    %424 = vector.broadcast %cst_143 : f32 to vector<8x384xf32>
    %425 = arith.mulf %424, %423 : vector<8x384xf32>
    %cst_144 = arith.constant 5.000000e-01 : f32
    %426 = vector.broadcast %cst_144 : f32 to vector<8x384xf32>
    %427 = arith.addf %425, %426 : vector<8x384xf32>
    %428 = vector.extract_strided_slice %427 {offsets = [0, 0], sizes = [8, 128], strides = [1, 1]} : vector<8x384xf32> to vector<8x128xf32>
    %429 = vector.extract_strided_slice %427 {offsets = [0, 128], sizes = [8, 128], strides = [1, 1]} : vector<8x384xf32> to vector<8x128xf32>
    %430 = vector.extract_strided_slice %427 {offsets = [0, 256], sizes = [8, 128], strides = [1, 1]} : vector<8x384xf32> to vector<8x128xf32>
    %431 = vector.extract_strided_slice %419 {offsets = [0, 384], sizes = [8, 128], strides = [1, 1]} : vector<8x512xf32> to vector<8x128xf32>
    %432 = math.tanh %431 : vector<8x128xf32>
    %433 = arith.mulf %429, %411 : vector<8x128xf32>
    %434 = arith.mulf %428, %432 : vector<8x128xf32>
    %435 = arith.addf %433, %434 : vector<8x128xf32>
    %436 = math.tanh %435 : vector<8x128xf32>
    %437 = arith.mulf %430, %436 : vector<8x128xf32>
    %c8_i32_145 = arith.constant 8 : i32
    %c0_146 = arith.constant 0 : index
    %c0_147 = arith.constant 0 : index
    %438 = vector.load %arg7[%c0_146, %c0_147] : memref<8x128xf32, #tpu.memory_space<vmem>>, vector<8x128xf32>
    tpu.vector_store %arg7[%c0_146, %c0_147], %437 {strides = array<i32>} : memref<8x128xf32, #tpu.memory_space<vmem>>, vector<8x128xf32>,
    return
  }
}

</mosaic_0001>

<bundles_post_ra>
// kernel: encoder_forward.1
= control target key start
LH: loop header
LB: loop body
LE: loop exit
PB: predicated region body
PF: predicated region fallthrough
CT: control target
= control target key end

     0   :  { %s5074_s1 = inlined_call_operand.vmem [shape: bf16[128,512], index: 1, kind: input, shape index: {}]   ;;  %s5075_s2 = inlined_call_operand.vmem [shape: bf16[128,512], index: 2, kind: input, shape index: {}]   ;;  %s5076_s0 = inlined_call_operand.vmem [shape: bf16[64,128], index: 0, kind: input, shape index: {}]   ;;  %s5077_s3 = inlined_call_operand.vmem [shape: f32[1,512], index: 3, kind: input, shape index: {}]   ;;  %s5078_s4 = inlined_call_operand.vmem [shape: bf16[128,512], index: 4, kind: input, shape index: {}]   ;;  %s5079_s5 = inlined_call_operand.vmem [shape: bf16[128,512], index: 5, kind: input, shape index: {}]   ;;  %s5080_s6 = inlined_call_operand.vmem [shape: f32[1,512], index: 6, kind: input, shape index: {}]   ;;  %s5081_s7 = inlined_call_operand.vmem [shape: f32[8,128], index: 7, kind: output, shape index: {}]  }
   0x1   :  { %v2574_v0 = vld [vmem:[%s5074_s1 + $0xe0] sm:$0xf]  ;;  %v3006_v1 = vld [vmem:[%s5074_s1 + $0xec] sm:$0xf0]  ;;  %v3004_v2 = vld [vmem:[%s5074_s1 + $0xe4] sm:$0xf] }
   0x2   :  { %v2575_v3 = vor.u32 %v3006_v1, %v2574_v0  ;;  %v2576_v4 = vld [vmem:[%s5074_s1 + $0xf0] sm:$0xf0]  ;;  %v2582_v5 = vld [vmem:[%s5074_s1 + $0xe8] sm:$0xf]  ;;  %v3007_v6 = vld [vmem:[%s5074_s1 + $0xf4] sm:$0xf0] }
   0x3   :  { %v2579_v7 = vor.u32 %v3004_v2, %v2576_v4  ;;  %v2583_v8 = vor.u32 %v3007_v6, %v2582_v5  ;;  %v3005_v9 = vld [vmem:[%s5074_s1 + $0xec] sm:$0xf]  ;;  %v2584_v10 = vld [vmem:[%s5074_s1 + $0xf8] sm:$0xf0]  ;;  %v2558_v11 = vld [vmem:[%s5074_s1 + $0xc0] sm:$0xf] }
   0x4   :  { %261 = vmatpush.bf16.msra.mxu0 %v2575_v3  ;;  %v2587_v12 = vor.u32 %v3005_v9, %v2584_v10  ;;  %v3002_v13 = vld [vmem:[%s5074_s1 + $0xcc] sm:$0xf0]  ;;  %v3000_v14 = vld [vmem:[%s5074_s1 + $0xc4] sm:$0xf]  ;;  %v2560_v15 = vld [vmem:[%s5074_s1 + $0xd0] sm:$0xf0] }
   0x5   :  { %290 = vmatpush.bf16.msra.mxu1 %v2579_v7  ;;  %319 = vmatpush.bf16.msra.mxu2 %v2583_v8  ;;  %v2559_v16 = vor.u32 %v3002_v13, %v2558_v11  ;;  %v2563_v17 = vor.u32 %v3000_v14, %v2560_v15  ;;  %v2566_v18 = vld [vmem:[%s5074_s1 + $0xc8] sm:$0xf]  ;;  %v3003_v19 = vld [vmem:[%s5074_s1 + $0xd4] sm:$0xf0]  ;;  %v3001_v20 = vld [vmem:[%s5074_s1 + $0xcc] sm:$0xf] }
   0x6   :  { %348 = vmatpush.bf16.msra.mxu3 %v2587_v12  ;;  %v2567_v21 = vor.u32 %v3003_v19, %v2566_v18  ;;  %v2568_v22 = vld [vmem:[%s5074_s1 + $0xd8] sm:$0xf0]  ;;  %v2542_v23 = vld [vmem:[%s5074_s1 + $0xa0] sm:$0xf]  ;;  %v2998_v24 = vld [vmem:[%s5074_s1 + $0xac] sm:$0xf0] }
   0x7   :  { %v2571_v25 = vor.u32 %v3001_v20, %v2568_v22  ;;  %v2996_v26 = vld [vmem:[%s5074_s1 + $0xa4] sm:$0xf]  ;;  %v2544_v27 = vld [vmem:[%s5074_s1 + $0xb0] sm:$0xf0]  ;;  %v2550_v28 = vld [vmem:[%s5074_s1 + $0xa8] sm:$0xf]  ;;  %v2543_v29 = vor.u32 %v2998_v24, %v2542_v23 }
   0x8   :  { %262 = vmatpush.bf16.msra.mxu0 %v2559_v16  ;;  %v2999_v30 = vld [vmem:[%s5074_s1 + $0xb4] sm:$0xf0]  ;;  %v2997_v31 = vld [vmem:[%s5074_s1 + $0xac] sm:$0xf]  ;;  %v2552_v32 = vld [vmem:[%s5074_s1 + $0xb8] sm:$0xf0]  ;;  %v2547_v33 = vor.u32 %v2996_v26, %v2544_v27 }
   0x9   :  { %291 = vmatpush.bf16.msra.mxu1 %v2563_v17  ;;  %320 = vmatpush.bf16.msra.mxu2 %v2567_v21  ;;  %v2551_v34 = vor.u32 %v2999_v30, %v2550_v28  ;;  %v2526_v35 = vld [vmem:[%s5074_s1 + $0x80] sm:$0xf]  ;;  %v2994_v36 = vld [vmem:[%s5074_s1 + $0x8c] sm:$0xf0]  ;;  %v2992_v37 = vld [vmem:[%s5074_s1 + $0x84] sm:$0xf]  ;;  %v2555_v38 = vor.u32 %v2997_v31, %v2552_v32 }
   0xa   :  { %349 = vmatpush.bf16.msra.mxu3 %v2571_v25  ;;  %v2528_v39 = vld [vmem:[%s5074_s1 + $0x90] sm:$0xf0]  ;;  %v2534_v40 = vld [vmem:[%s5074_s1 + $0x88] sm:$0xf]  ;;  %v2995_v41 = vld [vmem:[%s5074_s1 + $0x94] sm:$0xf0]  ;;  %v2527_v44 = vor.u32 %v2994_v36, %v2526_v35 }
   0xb   :  { %v2993_v42 = vld [vmem:[%s5074_s1 + $0x8c] sm:$0xf]  ;;  %v2536_v43 = vld [vmem:[%s5074_s1 + $0x98] sm:$0xf0]  ;;  %v2531_v45 = vor.u32 %v2992_v37, %v2528_v39  ;;  %v2535_v46 = vor.u32 %v2995_v41, %v2534_v40  ;;  %v2510_v47 = vld [vmem:[%s5074_s1 + $0x60] sm:$0xf] }
   0xc   :  { %263 = vmatpush.bf16.msra.mxu0 %v2543_v29  ;;  %v2990_v48 = vld [vmem:[%s5074_s1 + $0x6c] sm:$0xf0]  ;;  %v2988_v49 = vld [vmem:[%s5074_s1 + $0x64] sm:$0xf]  ;;  %v2539_v50 = vor.u32 %v2993_v42, %v2536_v43  ;;  %v2512_v51 = vld [vmem:[%s5074_s1 + $0x70] sm:$0xf0] }
   0xd   :  { %292 = vmatpush.bf16.msra.mxu1 %v2547_v33  ;;  %321 = vmatpush.bf16.msra.mxu2 %v2551_v34  ;;  %v2518_v52 = vld [vmem:[%s5074_s1 + $0x68] sm:$0xf]  ;;  %v2991_v53 = vld [vmem:[%s5074_s1 + $0x74] sm:$0xf0]  ;;  %v2989_v54 = vld [vmem:[%s5074_s1 + $0x6c] sm:$0xf]  ;;  %v2511_v56 = vor.u32 %v2990_v48, %v2510_v47  ;;  %v2515_v57 = vor.u32 %v2988_v49, %v2512_v51 }
   0xe   :  { %350 = vmatpush.bf16.msra.mxu3 %v2555_v38  ;;  %v2520_v55 = vld [vmem:[%s5074_s1 + $0x78] sm:$0xf0]  ;;  %v2519_v58 = vor.u32 %v2991_v53, %v2518_v52  ;;  %v2494_v59 = vld [vmem:[%s5074_s1 + $0x40] sm:$0xf]  ;;  %v2986_v60 = vld [vmem:[%s5074_s1 + $0x4c] sm:$0xf0] }
   0xf   :  { %v2984_v61 = vld [vmem:[%s5074_s1 + $0x44] sm:$0xf]  ;;  %v2523_v62 = vor.u32 %v2989_v54, %v2520_v55  ;;  %v2496_v63 = vld [vmem:[%s5074_s1 + $0x50] sm:$0xf0]  ;;  %v2502_v0 = vld [vmem:[%s5074_s1 + $0x48] sm:$0xf]  ;;  %v2495_v4 = vor.u32 %v2986_v60, %v2494_v59 }
  0x10   :  { %264 = vmatpush.bf16.msra.mxu0 %v2527_v44  ;;  %v2987_v1 = vld [vmem:[%s5074_s1 + $0x54] sm:$0xf0]  ;;  %v2985_v2 = vld [vmem:[%s5074_s1 + $0x4c] sm:$0xf]  ;;  %v2504_v3 = vld [vmem:[%s5074_s1 + $0x58] sm:$0xf0]  ;;  %v2499_v5 = vor.u32 %v2984_v61, %v2496_v63 }
  0x11   :  { %293 = vmatpush.bf16.msra.mxu1 %v2531_v45  ;;  %322 = vmatpush.bf16.msra.mxu2 %v2535_v46  ;;  %v2503_v6 = vor.u32 %v2987_v1, %v2502_v0  ;;  %v2478_v7 = vld [vmem:[%s5074_s1 + $0x20] sm:$0xf]  ;;  %v2982_v8 = vld [vmem:[%s5074_s1 + $0x2c] sm:$0xf0]  ;;  %v2980_v9 = vld [vmem:[%s5074_s1 + $0x24] sm:$0xf]  ;;  %v2507_v10 = vor.u32 %v2985_v2, %v2504_v3 }
  0x12   :  { %351 = vmatpush.bf16.msra.mxu3 %v2539_v50  ;;  %v2480_v11 = vld [vmem:[%s5074_s1 + $0x30] sm:$0xf0]  ;;  %v2486_v12 = vld [vmem:[%s5074_s1 + $0x28] sm:$0xf]  ;;  %v2983_v13 = vld [vmem:[%s5074_s1 + $0x34] sm:$0xf0]  ;;  %v2479_v16 = vor.u32 %v2982_v8, %v2478_v7 }
  0x13   :  { %v2981_v14 = vld [vmem:[%s5074_s1 + $0x2c] sm:$0xf]  ;;  %v2488_v15 = vld [vmem:[%s5074_s1 + $0x38] sm:$0xf0]  ;;  %v2462_v17 = vld [vmem:[%s5074_s1] sm:$0xf]  ;;  %v2483_v18 = vor.u32 %v2980_v9, %v2480_v11  ;;  %v2487_v19 = vor.u32 %v2983_v13, %v2486_v12 }
  0x14   :  { %265 = vmatpush.bf16.msra.mxu0 %v2511_v56  ;;  %v2978_v20 = vld [vmem:[%s5074_s1 + $0xc] sm:$0xf0]  ;;  %v2976_v21 = vld [vmem:[%s5074_s1 + $0x4] sm:$0xf]  ;;  %v2464_v22 = vld [vmem:[%s5074_s1 + $0x10] sm:$0xf0]  ;;  %v2491_v23 = vor.u32 %v2981_v14, %v2488_v15 }
  0x15   :  { %294 = vmatpush.bf16.msra.mxu1 %v2515_v57  ;;  %323 = vmatpush.bf16.msra.mxu2 %v2519_v58  ;;  %v2470_v24 = vld [vmem:[%s5074_s1 + $0x8] sm:$0xf]  ;;  %v2979_v25 = vld [vmem:[%s5074_s1 + $0x14] sm:$0xf0]  ;;  %v2977_v26 = vld [vmem:[%s5074_s1 + $0xc] sm:$0xf]  ;;  %v2463_v30 = vor.u32 %v2978_v20, %v2462_v17  ;;  %v2467_v33 = vor.u32 %v2976_v21, %v2464_v22 }
  0x16   :  { %352 = vmatpush.bf16.msra.mxu3 %v2523_v62  ;;  %v2472_v27 = vld [vmem:[%s5074_s1 + $0x18] sm:$0xf0]  ;;  %v2702_v28 = vld [vmem:[%s5075_s2 + $0xe0] sm:$0xf]  ;;  %v3038_v29 = vld [vmem:[%s5075_s2 + $0xec] sm:$0xf0]  ;;  %v2471_v34 = vor.u32 %v2979_v25, %v2470_v24 }
  0x17   :  { %v3036_v31 = vld [vmem:[%s5075_s2 + $0xe4] sm:$0xf]  ;;  %v2704_v32 = vld [vmem:[%s5075_s2 + $0xf0] sm:$0xf0]  ;;  %v2475_v36 = vor.u32 %v2977_v26, %v2472_v27  ;;  %v3513_v37 = vor.u32 %v3038_v29, %v2702_v28  ;;  %v3037_v38 = vld [vmem:[%s5075_s2 + $0xec] sm:$0xf] }
  0x18   :  { %266 = vmatpush.bf16.msra.mxu0 %v2495_v4  ;;  %v2972_v35 = vld [vmem:[%s5076_s0] sm:$0xff]  ;;  %v2710_v39 = vld [vmem:[%s5075_s2 + $0xe8] sm:$0xf]  ;;  %v3039_v40 = vld [vmem:[%s5075_s2 + $0xf4] sm:$0xf0]  ;;  %v3524_v41 = vor.u32 %v3036_v31, %v2704_v32 }
  0x19   :  { %295 = vmatpush.bf16.msra.mxu1 %v2499_v5  ;;  %324 = vmatpush.bf16.msra.mxu2 %v2503_v6  ;;  %v2712_v42 = vld [vmem:[%s5075_s2 + $0xf8] sm:$0xf0]  ;;  %v2686_v43 = vld [vmem:[%s5075_s2 + $0xc0] sm:$0xf]  ;;  %v3034_v44 = vld [vmem:[%s5075_s2 + $0xcc] sm:$0xf0]  ;;  %v3541_v47 = vor.u32 %v3039_v40, %v2710_v39 }
  0x1a   :  { %353 = vmatpush.bf16.msra.mxu3 %v2507_v10  ;;  %v3032_v45 = vld [vmem:[%s5075_s2 + $0xc4] sm:$0xf]  ;;  %v2688_v46 = vld [vmem:[%s5075_s2 + $0xd0] sm:$0xf0]  ;;  %v3544_v48 = vor.u32 %v3037_v38, %v2712_v42  ;;  %v3546_v49 = vor.u32 %v3034_v44, %v2686_v43  ;;  %v3033_v50 = vld [vmem:[%s5075_s2 + $0xcc] sm:$0xf] }
  0x1b   :  { %v2694_v51 = vld [vmem:[%s5075_s2 + $0xc8] sm:$0xf]  ;;  %v3035_v52 = vld [vmem:[%s5075_s2 + $0xd4] sm:$0xf0]  ;;  %v3558_v53 = vor.u32 %v3032_v45, %v2688_v46  ;;  %v2696_v54 = vld [vmem:[%s5075_s2 + $0xd8] sm:$0xf0] }
  0x1c   :  { %267 = vmatpush.bf16.msra.mxu0 %v2479_v16  ;;  %v2670_v55 = vld [vmem:[%s5075_s2 + $0xa0] sm:$0xf]  ;;  %v3030_v56 = vld [vmem:[%s5075_s2 + $0xac] sm:$0xf0]  ;;  %v3028_v57 = vld [vmem:[%s5075_s2 + $0xa4] sm:$0xf]  ;;  %v3576_v59 = vor.u32 %v3035_v52, %v2694_v51  ;;  %v3580_v60 = vor.u32 %v3033_v50, %v2696_v54 }
  0x1d   :  { %296 = vmatpush.bf16.msra.mxu1 %v2483_v18  ;;  %325 = vmatpush.bf16.msra.mxu2 %v2487_v19  ;;  %v2672_v58 = vld [vmem:[%s5075_s2 + $0xb0] sm:$0xf0]  ;;  %v3582_v61 = vor.u32 %v3030_v56, %v2670_v55  ;;  %v3029_v62 = vld [vmem:[%s5075_s2 + $0xac] sm:$0xf]  ;;  %v2678_v63 = vld [vmem:[%s5075_s2 + $0xa8] sm:$0xf] }
  0x1e   :  { %354 = vmatpush.bf16.msra.mxu3 %v2491_v23  ;;  %v3031_v0 = vld [vmem:[%s5075_s2 + $0xb4] sm:$0xf0]  ;;  %v3594_v1 = vor.u32 %v3028_v57, %v2672_v58  ;;  %v2680_v2 = vld [vmem:[%s5075_s2 + $0xb8] sm:$0xf0]  ;;  %v2654_v3 = vld [vmem:[%s5075_s2 + $0x80] sm:$0xf] }
  0x1f   :  { %v3026_v4 = vld [vmem:[%s5075_s2 + $0x8c] sm:$0xf0]  ;;  %v3024_v5 = vld [vmem:[%s5075_s2 + $0x84] sm:$0xf]  ;;  %v2656_v6 = vld [vmem:[%s5075_s2 + $0x90] sm:$0xf0]  ;;  %v3612_v7 = vor.u32 %v3031_v0, %v2678_v63  ;;  %v3616_v8 = vor.u32 %v3029_v62, %v2680_v2 }
  0x20   :  { %268 = vmatpush.bf16.msra.mxu0 %v2463_v30  ;;  %v3618_v9 = vor.u32 %v3026_v4, %v2654_v3  ;;  %v3025_v10 = vld [vmem:[%s5075_s2 + $0x8c] sm:$0xf]  ;;  %v2662_v11 = vld [vmem:[%s5075_s2 + $0x88] sm:$0xf]  ;;  %v3027_v12 = vld [vmem:[%s5075_s2 + $0x94] sm:$0xf0]  ;;  %v3630_v13 = vor.u32 %v3024_v5, %v2656_v6 }
  0x21   :  { %297 = vmatpush.bf16.msra.mxu1 %v2467_v33  ;;  %326 = vmatpush.bf16.msra.mxu2 %v2471_v34  ;;  %v2664_v14 = vld [vmem:[%s5075_s2 + $0x98] sm:$0xf0]  ;;  %v2638_v15 = vld [vmem:[%s5075_s2 + $0x60] sm:$0xf]  ;;  %v3022_v16 = vld [vmem:[%s5075_s2 + $0x6c] sm:$0xf0]  ;;  %v3651_v20 = vor.u32 %v3027_v12, %v2662_v11 }
  0x22   :  { %355 = vmatpush.bf16.msra.mxu3 %v2475_v36  ;;  %v3020_v17 = vld [vmem:[%s5075_s2 + $0x64] sm:$0xf]  ;;  %v2640_v18 = vld [vmem:[%s5075_s2 + $0x70] sm:$0xf0]  ;;  %v2973_v19 = vld [vmem:[%s5076_s0 + $0x8] sm:$0xff]  ;;  %v3655_v21 = vor.u32 %v3025_v10, %v2664_v14  ;;  %v3657_v22 = vor.u32 %v3022_v16, %v2638_v15 }
  0x23   :  { %269 = vmatmul.bf16.vlgmr.msra.gmra.mxu0 %v2972_v35  ;;  %v3021_v23 = vld [vmem:[%s5075_s2 + $0x6c] sm:$0xf]  ;;  %v2646_v24 = vld [vmem:[%s5075_s2 + $0x68] sm:$0xf]  ;;  %v3023_v25 = vld [vmem:[%s5075_s2 + $0x74] sm:$0xf0]  ;;  %v3669_v26 = vor.u32 %v3020_v17, %v2640_v18 }
  0x24   :  { %605 = vmatpush.bf16.msrb.mxu0 %v3513_v37  ;;  %298 = vmatmul.bf16.vlgmr.msra.gmra.mxu1 %v2972_v35  ;;  %v2648_v27 = vld [vmem:[%s5075_s2 + $0x78] sm:$0xf0]  ;;  %v2622_v28 = vld [vmem:[%s5075_s2 + $0x40] sm:$0xf]  ;;  %v3018_v29 = vld [vmem:[%s5075_s2 + $0x4c] sm:$0xf0]  ;;  %v3687_v32 = vor.u32 %v3023_v25, %v2646_v24 }
  0x25   :  { %618 = vmatpush.bf16.msrb.mxu1 %v3524_v41  ;;  %327 = vmatmul.bf16.vlgmr.msra.gmra.mxu2 %v2972_v35  ;;  %v3016_v30 = vld [vmem:[%s5075_s2 + $0x44] sm:$0xf]  ;;  %v2624_v31 = vld [vmem:[%s5075_s2 + $0x50] sm:$0xf0]  ;;  %v3691_v33 = vor.u32 %v3021_v23, %v2648_v27  ;;  %v3693_v34 = vor.u32 %v3018_v29, %v2622_v28  ;;  %v3019_v36 = vld [vmem:[%s5075_s2 + $0x54] sm:$0xf0] }
  0x26   :  { %356 = vmatmul.bf16.vlgmr.msra.gmra.mxu3 %v2972_v35  ;;  %631 = vmatpush.bf16.msrb.mxu2 %v3541_v47  ;;  %v2630_v35 = vld [vmem:[%s5075_s2 + $0x48] sm:$0xf]  ;;  %v3702_v38 = vor.u32 %v3016_v30, %v2624_v31  ;;  %v3017_v39 = vld [vmem:[%s5075_s2 + $0x4c] sm:$0xf]  ;;  %v2632_v40 = vld [vmem:[%s5075_s2 + $0x58] sm:$0xf0] }
  0x27   :  { %644 = vmatpush.bf16.msrb.mxu3 %v3544_v48  ;;  %v3711_v42 = vor.u32 %v3019_v36, %v2630_v35  ;;  %v2606_v43 = vld [vmem:[%s5075_s2 + $0x20] sm:$0xf]  ;;  %v3014_v44 = vld [vmem:[%s5075_s2 + $0x2c] sm:$0xf0]  ;;  %v3012_v45 = vld [vmem:[%s5075_s2 + $0x24] sm:$0xf]  ;;  %v3724_v46 = vor.u32 %v3017_v39, %v2632_v40 }
  0x28   :  { %606 = vmatpush.bf16.msrb.mxu0 %v3546_v49  ;;  %v3726_v50 = vor.u32 %v3014_v44, %v2606_v43  ;;  %v2608_v51 = vld [vmem:[%s5075_s2 + $0x30] sm:$0xf0]  ;;  %v3013_v52 = vld [vmem:[%s5075_s2 + $0x2c] sm:$0xf]  ;;  %v2616_v54 = vld [vmem:[%s5075_s2 + $0x38] sm:$0xf0] }
  0x29   :  { %619 = vmatpush.bf16.msrb.mxu1 %v3558_v53  ;;  %v3738_v55 = vor.u32 %v3012_v45, %v2608_v51  ;;  %v2614_v56 = vld [vmem:[%s5075_s2 + $0x28] sm:$0xf]  ;;  %v3015_v57 = vld [vmem:[%s5075_s2 + $0x34] sm:$0xf0]  ;;  %v2590_v58 = vld [vmem:[%s5075_s2] sm:$0xf]  ;;  %v3763_v3 = vor.u32 %v3013_v52, %v2616_v54 }
  0x2a   :  { %632 = vmatpush.bf16.msrb.mxu2 %v3576_v59  ;;  %v3010_v62 = vld [vmem:[%s5075_s2 + $0xc] sm:$0xf0]  ;;  %v3008_v63 = vld [vmem:[%s5075_s2 + $0x4] sm:$0xf]  ;;  %v2592_v0 = vld [vmem:[%s5075_s2 + $0x10] sm:$0xf0]  ;;  %v3759_v2 = vor.u32 %v3015_v57, %v2614_v56 }
  0x2b   :  { %645 = vmatpush.bf16.msrb.mxu3 %v3580_v60  ;;  %v3765_v4 = vor.u32 %v3010_v62, %v2590_v58  ;;  %v2598_v5 = vld [vmem:[%s5075_s2 + $0x8] sm:$0xf]  ;;  %v3011_v6 = vld [vmem:[%s5075_s2 + $0x14] sm:$0xf0]  ;;  %v3774_v10 = vor.u32 %v3008_v63, %v2592_v0  ;;  %v3009_v11 = vld [vmem:[%s5075_s2 + $0xc] sm:$0xf] }
  0x2c   :  { %607 = vmatpush.bf16.msrb.mxu0 %v3582_v61  ;;  %v2600_v12 = vld [vmem:[%s5075_s2 + $0x18] sm:$0xf0]  ;;  %v3783_v14 = vor.u32 %v3011_v6, %v2598_v5  ;;  %v2974_v16 = vld [vmem:[%s5076_s0 + $0x10] sm:$0xff]  ;;  %v5082_v18 = vmov 0   ;;  %v67_v29 = vld [vmem:[%s5077_s3] sm:$0xf] }
  0x2d   :  { %620 = vmatpush.bf16.msrb.mxu1 %v3594_v1  ;;  %v3787_v15 = vor.u32 %v3009_v11, %v2600_v12  ;;  %v2975_v17 = vld [vmem:[%s5076_s0 + $0x18] sm:$0xff]  ;;  %v3873_v30 = vperm.slane %v67_v29, 0  ;;  %v3877_v35 = vperm.slane %v67_v29, 1  ;;  %v3887_v45 = vperm.slane %v67_v29, 2 }
  0x2e   :  { %633 = vmatpush.bf16.msrb.mxu2 %v3612_v7  ;;  %v3889_v51 = vperm.slane %v67_v29, 3 }
  0x2f   :  { %646 = vmatpush.bf16.msrb.mxu3 %v3616_v8 }
  0x30   :  { %608 = vmatpush.bf16.msrb.mxu0 %v3618_v9 }
  0x31   :  { %621 = vmatpush.bf16.msrb.mxu1 %v3630_v13 }
  0x32   :  { %634 = vmatpush.bf16.msrb.mxu2 %v3651_v20 }
  0x33   :  { %647 = vmatpush.bf16.msrb.mxu3 %v3655_v21  ;;  %274 = vmatmul.bf16.gmra.mxu0 %v2973_v19 }
  0x34   :  { %609 = vmatpush.bf16.msrb.mxu0 %v3657_v22  ;;  %303 = vmatmul.bf16.gmra.mxu1 %v2973_v19 }
  0x35   :  { %622 = vmatpush.bf16.msrb.mxu1 %v3669_v26  ;;  %332 = vmatmul.bf16.gmra.mxu2 %v2973_v19 }
  0x36   :  { %361 = vmatmul.bf16.gmra.mxu3 %v2973_v19  ;;  %635 = vmatpush.bf16.msrb.mxu2 %v3687_v32 }
  0x37   :  { %648 = vmatpush.bf16.msrb.mxu3 %v3691_v33 }
  0x38   :  { %610 = vmatpush.bf16.msrb.mxu0 %v3693_v34 }
  0x39   :  { %623 = vmatpush.bf16.msrb.mxu1 %v3702_v38 }
  0x3a   :  { %636 = vmatpush.bf16.msrb.mxu2 %v3711_v42 }
  0x3b   :  { %649 = vmatpush.bf16.msrb.mxu3 %v3724_v46 }
  0x3c   :  { %611 = vmatpush.bf16.msrb.mxu0 %v3726_v50 }
  0x3d   :  { %624 = vmatpush.bf16.msrb.mxu1 %v3738_v55 }
  0x3e   :  { %637 = vmatpush.bf16.msrb.mxu2 %v3759_v2 }
  0x3f   :  { %650 = vmatpush.bf16.msrb.mxu3 %v3763_v3 }
  0x40   :  { %612 = vmatpush.bf16.msrb.mxu0 %v3765_v4 }
  0x41   :  { %625 = vmatpush.bf16.msrb.mxu1 %v3774_v10 }
  0x42   :  { %638 = vmatpush.bf16.msrb.mxu2 %v3783_v14 }
  0x43   :  { %651 = vmatpush.bf16.msrb.mxu3 %v3787_v15  ;;  %279 = vmatmul.bf16.gmra.mxu0 %v2974_v16 }
  0x44   :  { %686 = vmatpush.bf16.msra.mxu0 %v3513_v37  ;;  %308 = vmatmul.bf16.gmra.mxu1 %v2974_v16 }
  0x45   :  { %699 = vmatpush.bf16.msra.mxu1 %v3524_v41  ;;  %337 = vmatmul.bf16.gmra.mxu2 %v2974_v16 }
  0x46   :  { %712 = vmatpush.bf16.msra.mxu2 %v3541_v47  ;;  %366 = vmatmul.bf16.gmra.mxu3 %v2974_v16 }
  0x47   :  { %725 = vmatpush.bf16.msra.mxu3 %v3544_v48 }
  0x48   :  { %687 = vmatpush.bf16.msra.mxu0 %v3546_v49 }
  0x49   :  { %700 = vmatpush.bf16.msra.mxu1 %v3558_v53 }
  0x4a   :  { %713 = vmatpush.bf16.msra.mxu2 %v3576_v59 }
  0x4b   :  { %726 = vmatpush.bf16.msra.mxu3 %v3580_v60 }
  0x4c   :  { %688 = vmatpush.bf16.msra.mxu0 %v3582_v61 }
  0x4d   :  { %701 = vmatpush.bf16.msra.mxu1 %v3594_v1 }
  0x4e   :  { %714 = vmatpush.bf16.msra.mxu2 %v3612_v7 }
  0x4f   :  { %727 = vmatpush.bf16.msra.mxu3 %v3616_v8 }
  0x50   :  { %689 = vmatpush.bf16.msra.mxu0 %v3618_v9 }
  0x51   :  { %702 = vmatpush.bf16.msra.mxu1 %v3630_v13 }
  0x52   :  { %715 = vmatpush.bf16.msra.mxu2 %v3651_v20 }
  0x53   :  { %728 = vmatpush.bf16.msra.mxu3 %v3655_v21  ;;  %284 = vmatmul.bf16.gmra.mxu0 %v2975_v17 }
  0x54   :  { %690 = vmatpush.bf16.msra.mxu0 %v3657_v22  ;;  %313 = vmatmul.bf16.gmra.mxu1 %v2975_v17 }
  0x55   :  { %703 = vmatpush.bf16.msra.mxu1 %v3669_v26  ;;  %342 = vmatmul.bf16.gmra.mxu2 %v2975_v17 }
  0x56   :  { %716 = vmatpush.bf16.msra.mxu2 %v3687_v32  ;;  %371 = vmatmul.bf16.gmra.mxu3 %v2975_v17 }
  0x57   :  { %729 = vmatpush.bf16.msra.mxu3 %v3691_v33 }
  0x58   :  { %691 = vmatpush.bf16.msra.mxu0 %v3693_v34 }
  0x59   :  { %704 = vmatpush.bf16.msra.mxu1 %v3702_v38 }
  0x5a   :  { %717 = vmatpush.bf16.msra.mxu2 %v3711_v42 }
  0x5b   :  { %730 = vmatpush.bf16.msra.mxu3 %v3724_v46 }
  0x5c   :  { %692 = vmatpush.bf16.msra.mxu0 %v3726_v50 }
  0x5d   :  { %705 = vmatpush.bf16.msra.mxu1 %v3738_v55 }
  0x5e   :  { %718 = vmatpush.bf16.msra.mxu2 %v3759_v2 }
  0x5f   :  { %731 = vmatpush.bf16.msra.mxu3 %v3763_v3 }
  0x60   :  { %693 = vmatpush.bf16.msra.mxu0 %v3765_v4 }
  0x61   :  { %706 = vmatpush.bf16.msra.mxu1 %v3774_v10 }
  0x62   :  { %719 = vmatpush.bf16.msra.mxu2 %v3783_v14 }
  0x63   :  { %732 = vmatpush.bf16.msra.mxu3 %v3787_v15  ;;  %613 = vmatmul.bf16.vlgmr.msrb.gmra.mxu0 %v5082_v18 }
  0x64   :  { %626 = vmatmul.bf16.vlgmr.msrb.gmra.mxu1 %v5082_v18  ;;  %768 = vmatpush.bf16.msrb.mxu0 %v3513_v37 }
  0x65   :  { %639 = vmatmul.bf16.vlgmr.msrb.gmra.mxu2 %v5082_v18  ;;  %781 = vmatpush.bf16.msrb.mxu1 %v3524_v41 }
  0x66   :  { %652 = vmatmul.bf16.vlgmr.msrb.gmra.mxu3 %v5082_v18  ;;  %794 = vmatpush.bf16.msrb.mxu2 %v3541_v47 }
  0x67   :  { %807 = vmatpush.bf16.msrb.mxu3 %v3544_v48 }
  0x68   :  { %769 = vmatpush.bf16.msrb.mxu0 %v3546_v49 }
  0x69   :  { %782 = vmatpush.bf16.msrb.mxu1 %v3558_v53 }
  0x6a   :  { %795 = vmatpush.bf16.msrb.mxu2 %v3576_v59 }
  0x6b   :  { %808 = vmatpush.bf16.msrb.mxu3 %v3580_v60 }
  0x6c   :  { %770 = vmatpush.bf16.msrb.mxu0 %v3582_v61 }
  0x6d   :  { %783 = vmatpush.bf16.msrb.mxu1 %v3594_v1 }
  0x6e   :  { %796 = vmatpush.bf16.msrb.mxu2 %v3612_v7 }
  0x6f   :  { %809 = vmatpush.bf16.msrb.mxu3 %v3616_v8 }
  0x70   :  { %771 = vmatpush.bf16.msrb.mxu0 %v3618_v9 }
  0x71   :  { %784 = vmatpush.bf16.msrb.mxu1 %v3630_v13 }
  0x72   :  { %797 = vmatpush.bf16.msrb.mxu2 %v3651_v20 }
  0x73   :  { %810 = vmatpush.bf16.msrb.mxu3 %v3655_v21 }
  0x74   :  { %772 = vmatpush.bf16.msrb.mxu0 %v3657_v22 }
  0x75   :  { %785 = vmatpush.bf16.msrb.mxu1 %v3669_v26 }
  0x76   :  { %798 = vmatpush.bf16.msrb.mxu2 %v3687_v32 }
  0x77   :  { %811 = vmatpush.bf16.msrb.mxu3 %v3691_v33 }
  0x78   :  { %773 = vmatpush.bf16.msrb.mxu0 %v3693_v34 }
  0x79   :  { %786 = vmatpush.bf16.msrb.mxu1 %v3702_v38 }
  0x7a   :  { %799 = vmatpush.bf16.msrb.mxu2 %v3711_v42 }
  0x7b   :  { %812 = vmatpush.bf16.msrb.mxu3 %v3724_v46 }
  0x7c   :  { %774 = vmatpush.bf16.msrb.mxu0 %v3726_v50 }
  0x7d   :  { %787 = vmatpush.bf16.msrb.mxu1 %v3738_v55 }
  0x7e   :  { %800 = vmatpush.bf16.msrb.mxu2 %v3759_v2 }
  0x7f   :  { %813 = vmatpush.bf16.msrb.mxu3 %v3763_v3 }
  0x80   :  { %775 = vmatpush.bf16.msrb.mxu0 %v3765_v4 }
  0x81   :  { %788 = vmatpush.bf16.msrb.mxu1 %v3774_v10 }
  0x82   :  { %801 = vmatpush.bf16.msrb.mxu2 %v3783_v14 }
  0x83   :  { %814 = vmatpush.bf16.msrb.mxu3 %v3787_v15 }
  0xa0   :  { %v270_v19 = vpop.f32.mrf.mxu0 }
  0xa1   :  { %v299_v23 = vpop.f32.mrf.mxu1 }
  0xa8   :  { %v328_v24 = vpop.f32.mrf.mxu2  ;;  %v3866_v27 = vpop.f32.mrf.mxu0 }
  0xa9   :  { %v357_v25 = vpop.f32.mrf.mxu3  ;;  %v3868_v28 = vpop.f32.mrf.mxu1 }
  0xb0   :  { %v3875_v31 = vpop.f32.mrf.mxu2  ;;  %v275_v39 = vpop.f32.mrf.mxu0 }
  0xb1   :  { %v3879_v36 = vpop.f32.mrf.mxu3  ;;  %v3882_v40 = vadd.f32 %v275_v39, %v3873_v30  ;;  %v304_v43 = vpop.f32.mrf.mxu1 }
  0xb2   :  { %v3885_v44 = vadd.f32 %v304_v43, %v3877_v35 }
  0xb8   :  { %v333_v52 = vpop.f32.mrf.mxu2  ;;  %v3894_v57 = vpop.f32.mrf.mxu0 }
  0xb9   :  { %v3892_v54 = vadd.f32 %v333_v52, %v3887_v45  ;;  %v362_v56 = vpop.f32.mrf.mxu3  ;;  %5084 = vst [vmem:[#allocation4_spill] sm:$0xff] %v3894_v57  ;;  %v3899_v62 = vpop.f32.mrf.mxu1 }
  0xba   :  { %v3897_v58 = vadd.f32 %v362_v56, %v3889_v51  ;;  %5086 = vst [vmem:[#allocation6_spill] sm:$0xff] %v3899_v62 }
  0xbc   :  { %5085 = vst [vmem:[#allocation5_spill] sm:$0xff] %v3897_v58 }
  0xc0   :  { %v3901_v63 = vpop.f32.mrf.mxu2  ;;  %v280_v5 = vpop.f32.mrf.mxu0 }
  0xc1   :  { %5087 = vst [vmem:[#allocation7_spill] sm:$0xff] %v3901_v63  ;;  %v3903_v0 = vpop.f32.mrf.mxu3  ;;  %v3906_v6 = vadd.f32 %v280_v5, %v3873_v30  ;;  %v309_v11 = vpop.f32.mrf.mxu1 }
  0xc2   :  { %5088 = vst [vmem:[#allocation8_spill] sm:$0xff] %v3903_v0  ;;  %v3909_v12 = vadd.f32 %v309_v11, %v3877_v35 }
  0xc3   :  { %5089 = vst [vmem:[#allocation9_spill] sm:$0xff] %v3906_v6 }
  0xc4   :  { %5090 = vst [vmem:[#allocation10_spill] sm:$0xff] %v3909_v12 }
  0xc8   :  { %v338_v16 = vpop.f32.mrf.mxu2  ;;  %v3914_v39 = vpop.f32.mrf.mxu0 }
  0xc9   :  { %v3912_v17 = vadd.f32 %v338_v16, %v3887_v45  ;;  %v367_v29 = vpop.f32.mrf.mxu3  ;;  %5092 = vst [vmem:[#allocation12_spill] sm:$0xff] %v3914_v39  ;;  %v3919_v52 = vpop.f32.mrf.mxu1 }
  0xca   :  { %v3917_v43 = vadd.f32 %v367_v29, %v3889_v51  ;;  %5094 = vst [vmem:[#allocation14_spill] sm:$0xff] %v3919_v52 }
  0xcb   :  { %5091 = vst [vmem:[#allocation11_spill] sm:$0xff] %v3912_v17 }
  0xcc   :  { %5093 = vst [vmem:[#allocation13_spill] sm:$0xff] %v3917_v43 }
  0xd0   :  { %v3921_v56 = vpop.f32.mrf.mxu2  ;;  %v285_v18 = vpop.f32.mrf.mxu0 }
  0xd1   :  { %5095 = vst [vmem:[#allocation15_spill] sm:$0xff] %v3921_v56  ;;  %v3923_v5 = vpop.f32.mrf.mxu3  ;;  %v3926_v11 = vadd.f32 %v285_v18, %v3873_v30  ;;  %v314_v12 = vpop.f32.mrf.mxu1 }
  0xd2   :  { %5096 = vst [vmem:[#allocation16_spill] sm:$0xff] %v3923_v5  ;;  %v3929_v16 = vadd.f32 %v314_v12, %v3877_v35  ;;  %v271_v5 = vadd.f32 %v270_v19, %v3873_v30 }
  0xd3   :  { %5097 = vst [vmem:[#allocation17_spill] sm:$0xff] %v3926_v11  ;;  %v300_v11 = vadd.f32 %v299_v23, %v3877_v35 }
  0xd4   :  { %5098 = vst [vmem:[#allocation18_spill] sm:$0xff] %v3929_v16 }
  0xd8   :  { %v343_v17 = vpop.f32.mrf.mxu2  ;;  %v3934_v43 = vpop.f32.mrf.mxu0 }
  0xd9   :  { %v3932_v39 = vadd.f32 %v343_v17, %v3887_v45  ;;  %v372_v29 = vpop.f32.mrf.mxu3  ;;  %5100 = vst [vmem:[#allocation20_spill] sm:$0xff] %v3934_v43  ;;  %v3939_v56 = vpop.f32.mrf.mxu1 }
  0xda   :  { %v3937_v52 = vadd.f32 %v372_v29, %v3889_v51  ;;  %5102 = vst [vmem:[#allocation22_spill] sm:$0xff] %v3939_v56  ;;  %v329_v29 = vadd.f32 %v328_v24, %v3887_v45  ;;  %v358_v56 = vadd.f32 %v357_v25, %v3889_v51 }
  0xdb   :  { %5099 = vst [vmem:[#allocation19_spill] sm:$0xff] %v3932_v39 }
  0xdc   :  { %5101 = vst [vmem:[#allocation21_spill] sm:$0xff] %v3937_v52 }
  0xe0   :  { %v3942_v18 = vpop.f32.mrf.mxu2  ;;  %v614_v16 = vpop.f32.mrf.mxu0 }
  0xe1   :  { %5103 = vst [vmem:[#allocation23_spill] sm:$0xff] %v3942_v18  ;;  %v3945_v12 = vpop.f32.mrf.mxu3  ;;  %v657_v6 = vadd.f32 %v614_v16, %v271_v5  ;;  %v627_v17 = vpop.f32.mrf.mxu1 }
  0xe2   :  { %5104 = vst [vmem:[#allocation24_spill] sm:$0xff] %v3945_v12  ;;  %v658_v39 = vadd.f32 %v627_v17, %v300_v11 }
  0xe3   :  { %v661_v0 = vmul.f32 0.5, %v657_v6 }
  0xe4   :  { %v662_v63 = vmul.f32 0.5, %v658_v39 }
  0xe5   :  { %3105 = vtanh.f32 %v661_v0 }
  0xe6   :  { %3107 = vtanh.f32 %v662_v63 }
  0xe8   :  { %v640_v43 = vpop.f32.mrf.mxu2  ;;  %v616_v18 = vpop.f32.mrf.mxu0 }
  0xe9   :  { %v659_v19 = vadd.f32 %v640_v43, %v329_v29  ;;  %v653_v52 = vpop.f32.mrf.mxu3  ;;  %v629_v23 = vpop.f32.mrf.mxu1 }
  0xea   :  { %v660_v62 = vadd.f32 %v653_v52, %v358_v56 }
  0xeb   :  { %v663_v57 = vmul.f32 0.5, %v659_v19  ;;  %v3106_v12 = vpop.eup %3105 }
  0xec   :  { %3109 = vtanh.f32 %v660_v62  ;;  %v3108_v5 = vpop.eup %3107  ;;  %v667_v16 = vmul.f32 0.5, %v3106_v12 }
  0xed   :  { %v668_v11 = vmul.f32 0.5, %v3108_v5  ;;  %3111 = vtanh.f32 %v663_v57  ;;  %v273_v57 = vadd.f32 %v3866_v27, %v3873_v30 }
  0xee   :  { %v670_v6 = vadd.f32 0.5, %v667_v16 }
  0xef   :  { %v671_v0 = vadd.f32 0.5, %v668_v11 }
  0xf0   :  { %v642_v39 = vpop.f32.mrf.mxu2 }
  0xf1   :  { %v655_v24 = vpop.f32.mrf.mxu3  ;;  %v674_v17 = vmul.f32 0.0, %v671_v0  ;;  %v360_v0 = vadd.f32 %v3879_v36, %v3889_v51 }
  0xf2   :  { %v3110_v63 = vpop.eup %3109 }
  0xf3   :  { %v675_v25 = vmul.f32 %v3110_v63, %v670_v6  ;;  %v3112_v58 = vpop.eup %3111  ;;  %v331_v6 = vadd.f32 %v3875_v31, %v3887_v45 }
  0xf4   :  { %v669_v52 = vmul.f32 0.5, %v3112_v58  ;;  %v302_v58 = vadd.f32 %v3868_v28, %v3877_v35 }
  0xf5   :  { %v3949_v43 = vadd.f32 %v675_v25, %v674_v17 }
  0xf6   :  { %v672_v56 = vadd.f32 0.5, %v669_v52 }
  0xf7   :  { %3113 = vtanh.f32 %v3949_v43 }
  0xfd   :  { %v3114_v18 = vpop.eup %3113 }
  0xfe   :  { %v3952_v62 = vmul.f32 %v3114_v18, %v672_v56 }
 0x100   :  { %v685_v12 = vpack.c.bf16 %v3952_v62, %v3952_v62 }
 0x102   :  { %694 = vmatmul.bf16.vlgmr.msra.gmra.mxu0 %v685_v12  ;;  %707 = vmatmul.bf16.vlgmr.msra.gmra.mxu1 %v685_v12 }
 0x103   :  { %720 = vmatmul.bf16.vlgmr.msra.gmra.mxu2 %v685_v12  ;;  %733 = vmatmul.bf16.vlgmr.msra.gmra.mxu3 %v685_v12 }
 0x104   :  { %850 = vmatpush.bf16.msra.mxu0 %v3513_v37  ;;  %863 = vmatpush.bf16.msra.mxu1 %v3524_v41 }
 0x105   :  { %876 = vmatpush.bf16.msra.mxu2 %v3541_v47  ;;  %889 = vmatpush.bf16.msra.mxu3 %v3544_v48 }
 0x108   :  { %851 = vmatpush.bf16.msra.mxu0 %v3546_v49  ;;  %864 = vmatpush.bf16.msra.mxu1 %v3558_v53 }
 0x109   :  { %877 = vmatpush.bf16.msra.mxu2 %v3576_v59  ;;  %890 = vmatpush.bf16.msra.mxu3 %v3580_v60 }
 0x10c   :  { %852 = vmatpush.bf16.msra.mxu0 %v3582_v61  ;;  %865 = vmatpush.bf16.msra.mxu1 %v3594_v1 }
 0x10d   :  { %878 = vmatpush.bf16.msra.mxu2 %v3612_v7  ;;  %891 = vmatpush.bf16.msra.mxu3 %v3616_v8 }
 0x110   :  { %853 = vmatpush.bf16.msra.mxu0 %v3618_v9  ;;  %866 = vmatpush.bf16.msra.mxu1 %v3630_v13 }
 0x111   :  { %879 = vmatpush.bf16.msra.mxu2 %v3651_v20  ;;  %892 = vmatpush.bf16.msra.mxu3 %v3655_v21 }
 0x114   :  { %854 = vmatpush.bf16.msra.mxu0 %v3657_v22  ;;  %867 = vmatpush.bf16.msra.mxu1 %v3669_v26 }
 0x115   :  { %880 = vmatpush.bf16.msra.mxu2 %v3687_v32  ;;  %893 = vmatpush.bf16.msra.mxu3 %v3691_v33 }
 0x118   :  { %855 = vmatpush.bf16.msra.mxu0 %v3693_v34  ;;  %868 = vmatpush.bf16.msra.mxu1 %v3702_v38 }
 0x119   :  { %881 = vmatpush.bf16.msra.mxu2 %v3711_v42  ;;  %894 = vmatpush.bf16.msra.mxu3 %v3724_v46 }
 0x11c   :  { %856 = vmatpush.bf16.msra.mxu0 %v3726_v50  ;;  %869 = vmatpush.bf16.msra.mxu1 %v3738_v55 }
 0x11d   :  { %882 = vmatpush.bf16.msra.mxu2 %v3759_v2  ;;  %895 = vmatpush.bf16.msra.mxu3 %v3763_v3 }
 0x120   :  { %857 = vmatpush.bf16.msra.mxu0 %v3765_v4  ;;  %870 = vmatpush.bf16.msra.mxu1 %v3774_v10 }
 0x121   :  { %883 = vmatpush.bf16.msra.mxu2 %v3783_v14  ;;  %896 = vmatpush.bf16.msra.mxu3 %v3787_v15 }
 0x17f   :  { %v695_v29 = vpop.f32.mrf.mxu0  ;;  %v708_v19 = vpop.f32.mrf.mxu1 }
 0x180   :  { %v738_v23 = vadd.f32 %v695_v29, %v273_v57  ;;  %v739_v5 = vadd.f32 %v708_v19, %v302_v58 }
 0x182   :  { %v742_v16 = vmul.f32 0.5, %v738_v23  ;;  %v743_v11 = vmul.f32 0.5, %v739_v5 }
 0x184   :  { %3115 = vtanh.f32 %v742_v16 }
 0x185   :  { %3117 = vtanh.f32 %v743_v11 }
 0x186   :  { %v721_v39 = vpop.f32.mrf.mxu2  ;;  %v734_v24 = vpop.f32.mrf.mxu3 }
 0x187   :  { %v740_v27 = vadd.f32 %v721_v39, %v331_v6  ;;  %v741_v63 = vadd.f32 %v734_v24, %v360_v0  ;;  %v697_v17 = vpop.f32.mrf.mxu0  ;;  %v710_v28 = vpop.f32.mrf.mxu1 }
 0x189   :  { %v744_v25 = vmul.f32 0.5, %v740_v27  ;;  %3119 = vtanh.f32 %v741_v63 }
 0x18a   :  { %v3116_v52 = vpop.eup %3115 }
 0x18b   :  { %v3118_v56 = vpop.eup %3117  ;;  %v748_v18 = vmul.f32 0.5, %v3116_v52  ;;  %3121 = vtanh.f32 %v744_v25 }
 0x18c   :  { %v749_v12 = vmul.f32 0.5, %v3118_v56 }
 0x18d   :  { %v751_v57 = vadd.f32 0.5, %v748_v18 }
 0x18e   :  { %v752_v58 = vadd.f32 0.5, %v749_v12  ;;  %v723_v31 = vpop.f32.mrf.mxu2  ;;  %v736_v29 = vpop.f32.mrf.mxu3  ;;  %v5105_v12 = vld [vmem:[#allocation5_spill] sm:$0xff] }
 0x18f   :  { %v3120_v19 = vpop.eup %3119 }
 0x190   :  { %v755_v36 = vmul.f32 %v752_v58, %v3949_v43  ;;  %v756_v23 = vmul.f32 %v3120_v19, %v751_v57 }
 0x191   :  { %v3122_v5 = vpop.eup %3121 }
 0x192   :  { %v3997_v16 = vadd.f32 %v756_v23, %v755_v36  ;;  %v750_v11 = vmul.f32 0.5, %v3122_v5 }
 0x194   :  { %3123 = vtanh.f32 %v3997_v16  ;;  %v753_v6 = vadd.f32 0.5, %v750_v11 }
 0x19a   :  { %v3124_v0 = vpop.eup %3123 }
 0x19b   :  { %v4000_v39 = vmul.f32 %v3124_v0, %v753_v6 }
 0x19d   :  { %v767_v24 = vpack.c.bf16 %v4000_v39, %v4000_v39 }
 0x19f   :  { %776 = vmatmul.bf16.vlgmr.msrb.gmra.mxu0 %v767_v24  ;;  %789 = vmatmul.bf16.vlgmr.msrb.gmra.mxu1 %v767_v24 }
 0x1a0   :  { %802 = vmatmul.bf16.vlgmr.msrb.gmra.mxu2 %v767_v24  ;;  %815 = vmatmul.bf16.vlgmr.msrb.gmra.mxu3 %v767_v24 }
 0x1a1   :  { %932 = vmatpush.bf16.msrb.mxu0 %v3513_v37  ;;  %945 = vmatpush.bf16.msrb.mxu1 %v3524_v41 }
 0x1a2   :  { %958 = vmatpush.bf16.msrb.mxu2 %v3541_v47  ;;  %971 = vmatpush.bf16.msrb.mxu3 %v3544_v48 }
 0x1a5   :  { %933 = vmatpush.bf16.msrb.mxu0 %v3546_v49  ;;  %946 = vmatpush.bf16.msrb.mxu1 %v3558_v53 }
 0x1a6   :  { %959 = vmatpush.bf16.msrb.mxu2 %v3576_v59  ;;  %972 = vmatpush.bf16.msrb.mxu3 %v3580_v60 }
 0x1a9   :  { %934 = vmatpush.bf16.msrb.mxu0 %v3582_v61  ;;  %947 = vmatpush.bf16.msrb.mxu1 %v3594_v1 }
 0x1aa   :  { %960 = vmatpush.bf16.msrb.mxu2 %v3612_v7  ;;  %973 = vmatpush.bf16.msrb.mxu3 %v3616_v8 }
 0x1ad   :  { %935 = vmatpush.bf16.msrb.mxu0 %v3618_v9  ;;  %948 = vmatpush.bf16.msrb.mxu1 %v3630_v13 }
 0x1ae   :  { %961 = vmatpush.bf16.msrb.mxu2 %v3651_v20  ;;  %974 = vmatpush.bf16.msrb.mxu3 %v3655_v21 }
 0x1b1   :  { %936 = vmatpush.bf16.msrb.mxu0 %v3657_v22  ;;  %949 = vmatpush.bf16.msrb.mxu1 %v3669_v26 }
 0x1b2   :  { %962 = vmatpush.bf16.msrb.mxu2 %v3687_v32  ;;  %975 = vmatpush.bf16.msrb.mxu3 %v3691_v33 }
 0x1b5   :  { %937 = vmatpush.bf16.msrb.mxu0 %v3693_v34  ;;  %950 = vmatpush.bf16.msrb.mxu1 %v3702_v38 }
 0x1b6   :  { %963 = vmatpush.bf16.msrb.mxu2 %v3711_v42  ;;  %976 = vmatpush.bf16.msrb.mxu3 %v3724_v46 }
 0x1b9   :  { %938 = vmatpush.bf16.msrb.mxu0 %v3726_v50  ;;  %951 = vmatpush.bf16.msrb.mxu1 %v3738_v55 }
 0x1ba   :  { %964 = vmatpush.bf16.msrb.mxu2 %v3759_v2  ;;  %977 = vmatpush.bf16.msrb.mxu3 %v3763_v3 }
 0x1bd   :  { %939 = vmatpush.bf16.msrb.mxu0 %v3765_v4  ;;  %952 = vmatpush.bf16.msrb.mxu1 %v3774_v10 }
 0x1be   :  { %965 = vmatpush.bf16.msrb.mxu2 %v3783_v14  ;;  %978 = vmatpush.bf16.msrb.mxu3 %v3787_v15 }
 0x21c   :  { %v777_v43 = vpop.f32.mrf.mxu0  ;;  %v790_v27 = vpop.f32.mrf.mxu1 }
 0x21d   :  { %v820_v63 = vadd.f32 %v777_v43, %v3882_v40  ;;  %v821_v17 = vadd.f32 %v790_v27, %v3885_v44 }
 0x21f   :  { %v824_v28 = vmul.f32 0.5, %v820_v63  ;;  %v825_v25 = vmul.f32 0.5, %v821_v17 }
 0x221   :  { %3125 = vtanh.f32 %v824_v28 }
 0x222   :  { %3127 = vtanh.f32 %v825_v25 }
 0x223   :  { %v803_v52 = vpop.f32.mrf.mxu2  ;;  %v816_v56 = vpop.f32.mrf.mxu3 }
 0x224   :  { %v822_v18 = vadd.f32 %v803_v52, %v3892_v54  ;;  %v823_v57 = vadd.f32 %v816_v56, %v5105_v12  ;;  %v779_v58 = vpop.f32.mrf.mxu0  ;;  %v792_v31 = vpop.f32.mrf.mxu1 }
 0x226   :  { %v826_v29 = vmul.f32 0.5, %v822_v18  ;;  %3129 = vtanh.f32 %v823_v57  ;;  %v5107_v18 = vld [vmem:[#allocation6_spill] sm:$0xff] }
 0x227   :  { %v3126_v19 = vpop.eup %3125  ;;  %v307_v12 = vadd.f32 %v5107_v18, %v3877_v35 }
 0x228   :  { %v3128_v36 = vpop.eup %3127  ;;  %v830_v23 = vmul.f32 0.5, %v3126_v19  ;;  %3131 = vtanh.f32 %v826_v29 }
 0x229   :  { %v831_v40 = vmul.f32 0.5, %v3128_v36 }
 0x22a   :  { %v833_v44 = vadd.f32 0.5, %v830_v23  ;;  %v5108_v23 = vld [vmem:[#allocation7_spill] sm:$0xff] }
 0x22b   :  { %v834_v5 = vadd.f32 0.5, %v831_v40  ;;  %v805_v11 = vpop.f32.mrf.mxu2  ;;  %v818_v6 = vpop.f32.mrf.mxu3  ;;  %v336_v40 = vadd.f32 %v5108_v23, %v3887_v45 }
 0x22c   :  { %v3130_v0 = vpop.eup %3129 }
 0x22d   :  { %v837_v24 = vmul.f32 %v834_v5, %v3997_v16  ;;  %v838_v43 = vmul.f32 %v3130_v0, %v833_v44  ;;  %v5106_v16 = vld [vmem:[#allocation4_spill] sm:$0xff] }
 0x22e   :  { %v3132_v54 = vpop.eup %3131  ;;  %v278_v56 = vadd.f32 %v5106_v16, %v3873_v30  ;;  %v5109_v44 = vld [vmem:[#allocation8_spill] sm:$0xff] }
 0x22f   :  { %v4041_v27 = vadd.f32 %v838_v43, %v837_v24  ;;  %v832_v63 = vmul.f32 0.5, %v3132_v54  ;;  %v365_v5 = vadd.f32 %v5109_v44, %v3889_v51 }
 0x231   :  { %3133 = vtanh.f32 %v4041_v27  ;;  %v835_v17 = vadd.f32 0.5, %v832_v63 }
 0x237   :  { %v3134_v28 = vpop.eup %3133 }
 0x238   :  { %v4044_v25 = vmul.f32 %v3134_v28, %v835_v17 }
 0x23a   :  { %v849_v52 = vpack.c.bf16 %v4044_v25, %v4044_v25 }
 0x23c   :  { %858 = vmatmul.bf16.vlgmr.msra.gmra.mxu0 %v849_v52  ;;  %871 = vmatmul.bf16.vlgmr.msra.gmra.mxu1 %v849_v52 }
 0x23d   :  { %884 = vmatmul.bf16.vlgmr.msra.gmra.mxu2 %v849_v52  ;;  %897 = vmatmul.bf16.vlgmr.msra.gmra.mxu3 %v849_v52 }
 0x23e   :  { %1014 = vmatpush.bf16.msra.mxu0 %v3513_v37  ;;  %1027 = vmatpush.bf16.msra.mxu1 %v3524_v41 }
 0x23f   :  { %1040 = vmatpush.bf16.msra.mxu2 %v3541_v47  ;;  %1053 = vmatpush.bf16.msra.mxu3 %v3544_v48 }
 0x242   :  { %1015 = vmatpush.bf16.msra.mxu0 %v3546_v49  ;;  %1028 = vmatpush.bf16.msra.mxu1 %v3558_v53 }
 0x243   :  { %1041 = vmatpush.bf16.msra.mxu2 %v3576_v59  ;;  %1054 = vmatpush.bf16.msra.mxu3 %v3580_v60 }
 0x246   :  { %1016 = vmatpush.bf16.msra.mxu0 %v3582_v61  ;;  %1029 = vmatpush.bf16.msra.mxu1 %v3594_v1 }
 0x247   :  { %1042 = vmatpush.bf16.msra.mxu2 %v3612_v7  ;;  %1055 = vmatpush.bf16.msra.mxu3 %v3616_v8 }
 0x24a   :  { %1017 = vmatpush.bf16.msra.mxu0 %v3618_v9  ;;  %1030 = vmatpush.bf16.msra.mxu1 %v3630_v13 }
 0x24b   :  { %1043 = vmatpush.bf16.msra.mxu2 %v3651_v20  ;;  %1056 = vmatpush.bf16.msra.mxu3 %v3655_v21 }
 0x24e   :  { %1018 = vmatpush.bf16.msra.mxu0 %v3657_v22  ;;  %1031 = vmatpush.bf16.msra.mxu1 %v3669_v26 }
 0x24f   :  { %1044 = vmatpush.bf16.msra.mxu2 %v3687_v32  ;;  %1057 = vmatpush.bf16.msra.mxu3 %v3691_v33 }
 0x252   :  { %1019 = vmatpush.bf16.msra.mxu0 %v3693_v34  ;;  %1032 = vmatpush.bf16.msra.mxu1 %v3702_v38 }
 0x253   :  { %1045 = vmatpush.bf16.msra.mxu2 %v3711_v42  ;;  %1058 = vmatpush.bf16.msra.mxu3 %v3724_v46 }
 0x256   :  { %1020 = vmatpush.bf16.msra.mxu0 %v3726_v50  ;;  %1033 = vmatpush.bf16.msra.mxu1 %v3738_v55 }
 0x257   :  { %1046 = vmatpush.bf16.msra.mxu2 %v3759_v2  ;;  %1059 = vmatpush.bf16.msra.mxu3 %v3763_v3 }
 0x25a   :  { %1021 = vmatpush.bf16.msra.mxu0 %v3765_v4  ;;  %1034 = vmatpush.bf16.msra.mxu1 %v3774_v10 }
 0x25b   :  { %1047 = vmatpush.bf16.msra.mxu2 %v3783_v14  ;;  %1060 = vmatpush.bf16.msra.mxu3 %v3787_v15 }
 0x2b9   :  { %v859_v57 = vpop.f32.mrf.mxu0  ;;  %v872_v58 = vpop.f32.mrf.mxu1 }
 0x2ba   :  { %v902_v31 = vadd.f32 %v859_v57, %v278_v56  ;;  %v903_v29 = vadd.f32 %v872_v58, %v307_v12 }
 0x2bc   :  { %v906_v19 = vmul.f32 0.5, %v902_v31  ;;  %v907_v36 = vmul.f32 0.5, %v903_v29 }
 0x2be   :  { %3135 = vtanh.f32 %v906_v19 }
 0x2bf   :  { %3137 = vtanh.f32 %v907_v36 }
 0x2c0   :  { %v885_v11 = vpop.f32.mrf.mxu2  ;;  %v898_v6 = vpop.f32.mrf.mxu3 }
 0x2c1   :  { %v904_v0 = vadd.f32 %v885_v11, %v336_v40  ;;  %v905_v24 = vadd.f32 %v898_v6, %v365_v5  ;;  %v861_v43 = vpop.f32.mrf.mxu0  ;;  %v874_v54 = vpop.f32.mrf.mxu1 }
 0x2c2   :  { %v5111_v43 = vld [vmem:[#allocation10_spill] sm:$0xff] }
 0x2c3   :  { %v908_v63 = vmul.f32 0.5, %v904_v0  ;;  %3139 = vtanh.f32 %v905_v24  ;;  %v5110_v0 = vld [vmem:[#allocation9_spill] sm:$0xff] }
 0x2c4   :  { %v3136_v17 = vpop.eup %3135 }
 0x2c5   :  { %v3138_v28 = vpop.eup %3137  ;;  %v912_v52 = vmul.f32 0.5, %v3136_v17  ;;  %3141 = vtanh.f32 %v908_v63 }
 0x2c6   :  { %v913_v16 = vmul.f32 0.5, %v3138_v28 }
 0x2c7   :  { %v915_v56 = vadd.f32 0.5, %v912_v52 }
 0x2c8   :  { %v916_v18 = vadd.f32 0.5, %v913_v16  ;;  %v887_v12 = vpop.f32.mrf.mxu2  ;;  %v900_v57 = vpop.f32.mrf.mxu3  ;;  %v5112_v16 = vld [vmem:[#allocation11_spill] sm:$0xff] }
 0x2c9   :  { %v3140_v58 = vpop.eup %3139 }
 0x2ca   :  { %v919_v31 = vmul.f32 %v916_v18, %v4041_v27  ;;  %v920_v29 = vmul.f32 %v3140_v58, %v915_v56  ;;  %v5113_v18 = vld [vmem:[#allocation13_spill] sm:$0xff] }
 0x2cb   :  { %v3142_v19 = vpop.eup %3141 }
 0x2cc   :  { %v4089_v36 = vadd.f32 %v920_v29, %v919_v31  ;;  %v914_v23 = vmul.f32 0.5, %v3142_v19 }
 0x2ce   :  { %3143 = vtanh.f32 %v4089_v36  ;;  %v917_v40 = vadd.f32 0.5, %v914_v23 }
 0x2d4   :  { %v3144_v44 = vpop.eup %3143 }
 0x2d5   :  { %v4092_v5 = vmul.f32 %v3144_v44, %v917_v40 }
 0x2d7   :  { %v931_v11 = vpack.c.bf16 %v4092_v5, %v4092_v5 }
 0x2d9   :  { %940 = vmatmul.bf16.vlgmr.msrb.gmra.mxu0 %v931_v11  ;;  %953 = vmatmul.bf16.vlgmr.msrb.gmra.mxu1 %v931_v11 }
 0x2da   :  { %966 = vmatmul.bf16.vlgmr.msrb.gmra.mxu2 %v931_v11  ;;  %979 = vmatmul.bf16.vlgmr.msrb.gmra.mxu3 %v931_v11 }
 0x2db   :  { %1096 = vmatpush.bf16.msrb.mxu0 %v3513_v37  ;;  %1109 = vmatpush.bf16.msrb.mxu1 %v3524_v41 }
 0x2dc   :  { %1122 = vmatpush.bf16.msrb.mxu2 %v3541_v47  ;;  %1135 = vmatpush.bf16.msrb.mxu3 %v3544_v48 }
 0x2df   :  { %1097 = vmatpush.bf16.msrb.mxu0 %v3546_v49  ;;  %1110 = vmatpush.bf16.msrb.mxu1 %v3558_v53 }
 0x2e0   :  { %1123 = vmatpush.bf16.msrb.mxu2 %v3576_v59  ;;  %1136 = vmatpush.bf16.msrb.mxu3 %v3580_v60 }
 0x2e3   :  { %1098 = vmatpush.bf16.msrb.mxu0 %v3582_v61  ;;  %1111 = vmatpush.bf16.msrb.mxu1 %v3594_v1 }
 0x2e4   :  { %1124 = vmatpush.bf16.msrb.mxu2 %v3612_v7  ;;  %1137 = vmatpush.bf16.msrb.mxu3 %v3616_v8 }
 0x2e7   :  { %1099 = vmatpush.bf16.msrb.mxu0 %v3618_v9  ;;  %1112 = vmatpush.bf16.msrb.mxu1 %v3630_v13 }
 0x2e8   :  { %1125 = vmatpush.bf16.msrb.mxu2 %v3651_v20  ;;  %1138 = vmatpush.bf16.msrb.mxu3 %v3655_v21 }
 0x2eb   :  { %1100 = vmatpush.bf16.msrb.mxu0 %v3657_v22  ;;  %1113 = vmatpush.bf16.msrb.mxu1 %v3669_v26 }
 0x2ec   :  { %1126 = vmatpush.bf16.msrb.mxu2 %v3687_v32  ;;  %1139 = vmatpush.bf16.msrb.mxu3 %v3691_v33 }
 0x2ef   :  { %1101 = vmatpush.bf16.msrb.mxu0 %v3693_v34  ;;  %1114 = vmatpush.bf16.msrb.mxu1 %v3702_v38 }
 0x2f0   :  { %1127 = vmatpush.bf16.msrb.mxu2 %v3711_v42  ;;  %1140 = vmatpush.bf16.msrb.mxu3 %v3724_v46 }
 0x2f3   :  { %1102 = vmatpush.bf16.msrb.mxu0 %v3726_v50  ;;  %1115 = vmatpush.bf16.msrb.mxu1 %v3738_v55 }
 0x2f4   :  { %1128 = vmatpush.bf16.msrb.mxu2 %v3759_v2  ;;  %1141 = vmatpush.bf16.msrb.mxu3 %v3763_v3 }
 0x2f7   :  { %1103 = vmatpush.bf16.msrb.mxu0 %v3765_v4  ;;  %1116 = vmatpush.bf16.msrb.mxu1 %v3774_v10 }
 0x2f8   :  { %1129 = vmatpush.bf16.msrb.mxu2 %v3783_v14  ;;  %1142 = vmatpush.bf16.msrb.mxu3 %v3787_v15 }
 0x356   :  { %v941_v27 = vpop.f32.mrf.mxu0  ;;  %v954_v6 = vpop.f32.mrf.mxu1 }
 0x357   :  { %v984_v24 = vadd.f32 %v941_v27, %v5110_v0  ;;  %v985_v54 = vadd.f32 %v954_v6, %v5111_v43 }
 0x359   :  { %v988_v63 = vmul.f32 0.5, %v984_v24  ;;  %v989_v17 = vmul.f32 0.5, %v985_v54 }
 0x35b   :  { %3145 = vtanh.f32 %v988_v63 }
 0x35c   :  { %3147 = vtanh.f32 %v989_v17 }
 0x35d   :  { %v967_v28 = vpop.f32.mrf.mxu2  ;;  %v980_v52 = vpop.f32.mrf.mxu3 }
 0x35e   :  { %v986_v56 = vadd.f32 %v967_v28, %v5112_v16  ;;  %v987_v12 = vadd.f32 %v980_v52, %v5113_v18  ;;  %v943_v57 = vpop.f32.mrf.mxu0  ;;  %v956_v58 = vpop.f32.mrf.mxu1 }
 0x360   :  { %v990_v31 = vmul.f32 0.5, %v986_v56  ;;  %3149 = vtanh.f32 %v987_v12 }
 0x361   :  { %v3146_v29 = vpop.eup %3145 }
 0x362   :  { %v3148_v19 = vpop.eup %3147  ;;  %v994_v23 = vmul.f32 0.5, %v3146_v29  ;;  %3151 = vtanh.f32 %v990_v31 }
 0x363   :  { %v995_v40 = vmul.f32 0.5, %v3148_v19  ;;  %v2830_v19 = vld [vmem:[%s5078_s4 + $0xe0] sm:$0xf] }
 0x364   :  { %v997_v44 = vadd.f32 0.5, %v994_v23  ;;  %v3070_v23 = vld [vmem:[%s5078_s4 + $0xec] sm:$0xf0] }
 0x365   :  { %v998_v11 = vadd.f32 0.5, %v995_v40  ;;  %v969_v27 = vpop.f32.mrf.mxu2  ;;  %v982_v6 = vpop.f32.mrf.mxu3  ;;  %v3068_v40 = vld [vmem:[%s5078_s4 + $0xe4] sm:$0xf] }
 0x366   :  { %v3150_v0 = vpop.eup %3149  ;;  %v2838_v27 = vld [vmem:[%s5078_s4 + $0xe8] sm:$0xf]  ;;  %v3071_v6 = vld [vmem:[%s5078_s4 + $0xf4] sm:$0xf0] }
 0x367   :  { %v1001_v24 = vmul.f32 %v998_v11, %v4089_v36  ;;  %v1002_v43 = vmul.f32 %v3150_v0, %v997_v44  ;;  %v2831_v44 = vor.u32 %v3070_v23, %v2830_v19  ;;  %v2832_v11 = vld [vmem:[%s5078_s4 + $0xf0] sm:$0xf0] }
 0x368   :  { %v3152_v54 = vpop.eup %3151  ;;  %v2835_v0 = vor.u32 %v3068_v40, %v2832_v11  ;;  %v2768_v23 = vld [vmem:[%s5078_s4 + $0x70] sm:$0xf0]  ;;  %v2774_v40 = vld [vmem:[%s5078_s4 + $0x68] sm:$0xf] }
 0x369   :  { %v4133_v63 = vadd.f32 %v1002_v43, %v1001_v24  ;;  %v996_v17 = vmul.f32 0.5, %v3152_v54  ;;  %v2839_v24 = vor.u32 %v3071_v6, %v2838_v27  ;;  %v3069_v43 = vld [vmem:[%s5078_s4 + $0xec] sm:$0xf]  ;;  %v2840_v54 = vld [vmem:[%s5078_s4 + $0xf8] sm:$0xf0]  ;;  %v5119_v6 = vld [vmem:[#allocation18_spill] sm:$0xff] }
 0x36a   :  { %v5118_v11 = vld [vmem:[#allocation17_spill] sm:$0xff] }
 0x36b   :  { %3153 = vtanh.f32 %v4133_v63  ;;  %v999_v28 = vadd.f32 0.5, %v996_v17  ;;  %v2814_v17 = vld [vmem:[%s5078_s4 + $0xc0] sm:$0xf] }
 0x371   :  { %v3154_v52 = vpop.eup %3153 }
 0x372   :  { %v4136_v16 = vmul.f32 %v3154_v52, %v999_v28  ;;  %v3066_v28 = vld [vmem:[%s5078_s4 + $0xcc] sm:$0xf0]  ;;  %v3064_v52 = vld [vmem:[%s5078_s4 + $0xc4] sm:$0xf] }
 0x374   :  { %v1013_v56 = vpack.c.bf16 %v4136_v16, %v4136_v16 }
 0x376   :  { %1022 = vmatmul.bf16.vlgmr.msra.gmra.mxu0 %v1013_v56  ;;  %1035 = vmatmul.bf16.vlgmr.msra.gmra.mxu1 %v1013_v56 }
 0x377   :  { %1048 = vmatmul.bf16.vlgmr.msra.gmra.mxu2 %v1013_v56  ;;  %1061 = vmatmul.bf16.vlgmr.msra.gmra.mxu3 %v1013_v56  ;;  %v2815_v56 = vor.u32 %v3066_v28, %v2814_v17  ;;  %v2750_v17 = vld [vmem:[%s5078_s4 + $0x40] sm:$0xf] }
 0x378   :  { %1178 = vmatpush.bf16.msra.mxu0 %v3513_v37  ;;  %1191 = vmatpush.bf16.msra.mxu1 %v3524_v41  ;;  %v5114_v37 = vld [vmem:[#allocation12_spill] sm:$0xff] }
 0x379   :  { %1204 = vmatpush.bf16.msra.mxu2 %v3541_v47  ;;  %1217 = vmatpush.bf16.msra.mxu3 %v3544_v48  ;;  %v283_v41 = vadd.f32 %v5114_v37, %v3873_v30  ;;  %v5115_v47 = vld [vmem:[#allocation14_spill] sm:$0xff] }
 0x37a   :  { %v312_v48 = vadd.f32 %v5115_v47, %v3877_v35  ;;  %v2816_v37 = vld [vmem:[%s5078_s4 + $0xd0] sm:$0xf0]  ;;  %v3067_v47 = vld [vmem:[%s5078_s4 + $0xd4] sm:$0xf0] }
 0x37c   :  { %1179 = vmatpush.bf16.msra.mxu0 %v3546_v49  ;;  %1192 = vmatpush.bf16.msra.mxu1 %v3558_v53 }
 0x37d   :  { %1205 = vmatpush.bf16.msra.mxu2 %v3576_v59  ;;  %1218 = vmatpush.bf16.msra.mxu3 %v3580_v60 }
 0x380   :  { %1180 = vmatpush.bf16.msra.mxu0 %v3582_v61  ;;  %1193 = vmatpush.bf16.msra.mxu1 %v3594_v1 }
 0x381   :  { %1206 = vmatpush.bf16.msra.mxu2 %v3612_v7  ;;  %1219 = vmatpush.bf16.msra.mxu3 %v3616_v8  ;;  %v5116_v7 = vld [vmem:[#allocation15_spill] sm:$0xff] }
 0x382   :  { %v341_v8 = vadd.f32 %v5116_v7, %v3887_v45  ;;  %v3060_v7 = vld [vmem:[%s5078_s4 + $0xa4] sm:$0xf] }
 0x384   :  { %1181 = vmatpush.bf16.msra.mxu0 %v3618_v9  ;;  %1194 = vmatpush.bf16.msra.mxu1 %v3630_v13  ;;  %v5117_v9 = vld [vmem:[#allocation16_spill] sm:$0xff] }
 0x385   :  { %1207 = vmatpush.bf16.msra.mxu2 %v3651_v20  ;;  %1220 = vmatpush.bf16.msra.mxu3 %v3655_v21  ;;  %v370_v13 = vadd.f32 %v5117_v9, %v3889_v51  ;;  %v2800_v9 = vld [vmem:[%s5078_s4 + $0xb0] sm:$0xf0] }
 0x388   :  { %1182 = vmatpush.bf16.msra.mxu0 %v3657_v22  ;;  %1195 = vmatpush.bf16.msra.mxu1 %v3669_v26 }
 0x389   :  { %1208 = vmatpush.bf16.msra.mxu2 %v3687_v32  ;;  %1221 = vmatpush.bf16.msra.mxu3 %v3691_v33 }
 0x38c   :  { %1183 = vmatpush.bf16.msra.mxu0 %v3693_v34  ;;  %1196 = vmatpush.bf16.msra.mxu1 %v3702_v38 }
 0x38d   :  { %1209 = vmatpush.bf16.msra.mxu2 %v3711_v42  ;;  %1222 = vmatpush.bf16.msra.mxu3 %v3724_v46 }
 0x390   :  { %1184 = vmatpush.bf16.msra.mxu0 %v3726_v50  ;;  %1197 = vmatpush.bf16.msra.mxu1 %v3738_v55 }
 0x391   :  { %1210 = vmatpush.bf16.msra.mxu2 %v3759_v2  ;;  %1223 = vmatpush.bf16.msra.mxu3 %v3763_v3 }
 0x394   :  { %1185 = vmatpush.bf16.msra.mxu0 %v3765_v4  ;;  %1198 = vmatpush.bf16.msra.mxu1 %v3774_v10 }
 0x395   :  { %1211 = vmatpush.bf16.msra.mxu2 %v3783_v14  ;;  %1224 = vmatpush.bf16.msra.mxu3 %v3787_v15 }
 0x3f3   :  { %v1023_v49 = vpop.f32.mrf.mxu0  ;;  %v1036_v53 = vpop.f32.mrf.mxu1 }
 0x3f4   :  { %v1066_v59 = vadd.f32 %v1023_v49, %v283_v41  ;;  %v1067_v60 = vadd.f32 %v1036_v53, %v312_v48  ;;  %v2822_v41 = vld [vmem:[%s5078_s4 + $0xc8] sm:$0xf]  ;;  %v2819_v48 = vor.u32 %v3064_v52, %v2816_v37  ;;  %v3065_v53 = vld [vmem:[%s5078_s4 + $0xcc] sm:$0xf]  ;;  %v3050_v52 = vld [vmem:[%s5078_s4 + $0x4c] sm:$0xf0] }
 0x3f5   :  { %v2823_v49 = vor.u32 %v3067_v47, %v2822_v41  ;;  %v2752_v37 = vld [vmem:[%s5078_s4 + $0x50] sm:$0xf0] }
 0x3f6   :  { %v1070_v61 = vmul.f32 0.5, %v1066_v59  ;;  %v1071_v1 = vmul.f32 0.5, %v1067_v60  ;;  %v2824_v59 = vld [vmem:[%s5078_s4 + $0xd8] sm:$0xf0] }
 0x3f7   :  { %v2827_v60 = vor.u32 %v3065_v53, %v2824_v59  ;;  %v2758_v53 = vld [vmem:[%s5078_s4 + $0x48] sm:$0xf]  ;;  %v3051_v59 = vld [vmem:[%s5078_s4 + $0x54] sm:$0xf0] }
 0x3f8   :  { %3155 = vtanh.f32 %v1070_v61  ;;  %v2798_v61 = vld [vmem:[%s5078_s4 + $0xa0] sm:$0xf] }
 0x3f9   :  { %3157 = vtanh.f32 %v1071_v1  ;;  %v3062_v1 = vld [vmem:[%s5078_s4 + $0xac] sm:$0xf0] }
 0x3fa   :  { %v1049_v20 = vpop.f32.mrf.mxu2  ;;  %v1062_v21 = vpop.f32.mrf.mxu3 }
 0x3fb   :  { %v1068_v22 = vadd.f32 %v1049_v20, %v341_v8  ;;  %v1069_v26 = vadd.f32 %v1062_v21, %v370_v13  ;;  %v1025_v32 = vpop.f32.mrf.mxu0  ;;  %v1038_v33 = vpop.f32.mrf.mxu1  ;;  %v2799_v8 = vor.u32 %v3062_v1, %v2798_v61  ;;  %v2806_v13 = vld [vmem:[%s5078_s4 + $0xa8] sm:$0xf]  ;;  %v3063_v20 = vld [vmem:[%s5078_s4 + $0xb4] sm:$0xf0]  ;;  %v2803_v21 = vor.u32 %v3060_v7, %v2800_v9  ;;  %v3049_v61 = vld [vmem:[%s5078_s4 + $0x4c] sm:$0xf] }
 0x3fc   :  { %v2808_v32 = vld [vmem:[%s5078_s4 + $0xb8] sm:$0xf0]  ;;  %v2782_v33 = vld [vmem:[%s5078_s4 + $0x80] sm:$0xf]  ;;  %v3046_v9 = vld [vmem:[%s5078_s4 + $0x2c] sm:$0xf0] }
 0x3fd   :  { %v1072_v34 = vmul.f32 0.5, %v1068_v22  ;;  %3159 = vtanh.f32 %v1069_v26  ;;  %v2807_v22 = vor.u32 %v3063_v20, %v2806_v13  ;;  %v3061_v26 = vld [vmem:[%s5078_s4 + $0xac] sm:$0xf]  ;;  %v2760_v1 = vld [vmem:[%s5078_s4 + $0x58] sm:$0xf0] }
 0x3fe   :  { %v3156_v38 = vpop.eup %3155  ;;  %v2734_v7 = vld [vmem:[%s5078_s4 + $0x20] sm:$0xf]  ;;  %v3044_v13 = vld [vmem:[%s5078_s4 + $0x24] sm:$0xf]  ;;  %v2736_v20 = vld [vmem:[%s5078_s4 + $0x30] sm:$0xf0] }
 0x3ff   :  { %v3158_v42 = vpop.eup %3157  ;;  %v1076_v46 = vmul.f32 0.5, %v3156_v38  ;;  %3161 = vtanh.f32 %v1072_v34  ;;  %v2811_v34 = vor.u32 %v3061_v26, %v2808_v32  ;;  %v3058_v38 = vld [vmem:[%s5078_s4 + $0x8c] sm:$0xf0]  ;;  %v3047_v26 = vld [vmem:[%s5078_s4 + $0x34] sm:$0xf0] }
 0x400   :  { %v1077_v50 = vmul.f32 0.5, %v3158_v42  ;;  %v3056_v42 = vld [vmem:[%s5078_s4 + $0x84] sm:$0xf]  ;;  %v3045_v32 = vld [vmem:[%s5078_s4 + $0x2c] sm:$0xf] }
 0x401   :  { %v1079_v55 = vadd.f32 0.5, %v1076_v46  ;;  %v2784_v46 = vld [vmem:[%s5078_s4 + $0x90] sm:$0xf0] }
 0x402   :  { %v1080_v2 = vadd.f32 0.5, %v1077_v50  ;;  %v1051_v3 = vpop.f32.mrf.mxu2  ;;  %v1064_v4 = vpop.f32.mrf.mxu3  ;;  %v2783_v50 = vor.u32 %v3058_v38, %v2782_v33  ;;  %v2739_v38 = vor.u32 %v3044_v13, %v2736_v20  ;;  %v2968_v13 = vld [vmem:[%s5079_s5 + $0xf8] sm:$0xf0] }
 0x403   :  { %v3160_v10 = vpop.eup %3159  ;;  %v3057_v3 = vld [vmem:[%s5078_s4 + $0x8c] sm:$0xf]  ;;  %v2787_v4 = vor.u32 %v3056_v42, %v2784_v46  ;;  %v2744_v46 = vld [vmem:[%s5078_s4 + $0x38] sm:$0xf0] }
 0x404   :  { %v1083_v14 = vmul.f32 %v1080_v2, %v4133_v63  ;;  %v1084_v15 = vmul.f32 %v3160_v10, %v1079_v55  ;;  %v2843_v63 = vor.u32 %v3069_v43, %v2840_v54  ;;  %v2790_v55 = vld [vmem:[%s5078_s4 + $0x88] sm:$0xf]  ;;  %v3059_v2 = vld [vmem:[%s5078_s4 + $0x94] sm:$0xf0]  ;;  %v3053_v54 = vld [vmem:[%s5078_s4 + $0x6c] sm:$0xf] }
 0x405   :  { %v3162_v36 = vpop.eup %3161  ;;  %v2791_v10 = vor.u32 %v3059_v2, %v2790_v55  ;;  %v3042_v55 = vld [vmem:[%s5078_s4 + $0xc] sm:$0xf0]  ;;  %v5120_v2 = vld [vmem:[#allocation19_spill] sm:$0xff] }
 0x406   :  { %v4181_v18 = vadd.f32 %v1084_v15, %v1083_v14  ;;  %v1078_v12 = vmul.f32 0.5, %v3162_v36  ;;  %v2792_v14 = vld [vmem:[%s5078_s4 + $0x98] sm:$0xf0]  ;;  %v2766_v36 = vld [vmem:[%s5078_s4 + $0x60] sm:$0xf] }
 0x407   :  { %v2795_v15 = vor.u32 %v3057_v3, %v2792_v14 }
 0x408   :  { %3163 = vtanh.f32 %v4181_v18  ;;  %v1081_v57 = vadd.f32 0.5, %v1078_v12  ;;  %v3054_v12 = vld [vmem:[%s5078_s4 + $0x6c] sm:$0xf0] }
 0x409   :  { %v2767_v19 = vor.u32 %v3054_v12, %v2766_v36  ;;  %v2747_v36 = vor.u32 %v3045_v32, %v2744_v46  ;;  %v3040_v12 = vld [vmem:[%s5078_s4 + $0x4] sm:$0xf]  ;;  %v2942_v32 = vld [vmem:[%s5079_s5 + $0xc0] sm:$0xf] }
 0x40e   :  { %v3164_v58 = vpop.eup %3163 }
 0x40f   :  { %v4184_v31 = vmul.f32 %v3164_v58, %v1081_v57  ;;  %v3052_v57 = vld [vmem:[%s5078_s4 + $0x64] sm:$0xf] }
 0x411   :  { %v1095_v29 = vpack.c.bf16 %v4184_v31, %v4184_v31 }
 0x413   :  { %1104 = vmatmul.bf16.vlgmr.msrb.gmra.mxu0 %v1095_v29  ;;  %1117 = vmatmul.bf16.vlgmr.msrb.gmra.mxu1 %v1095_v29 }
 0x414   :  { %1130 = vmatmul.bf16.vlgmr.msrb.gmra.mxu2 %v1095_v29  ;;  %1143 = vmatmul.bf16.vlgmr.msrb.gmra.mxu3 %v1095_v29 }
 0x415   :  { %1468 = vmatpush.bf16.msrb.mxu0 %v2831_v44  ;;  %1497 = vmatpush.bf16.msrb.mxu1 %v2835_v0  ;;  %v3055_v44 = vld [vmem:[%s5078_s4 + $0x74] sm:$0xf0] }
 0x416   :  { %1526 = vmatpush.bf16.msrb.mxu2 %v2839_v24  ;;  %1555 = vmatpush.bf16.msrb.mxu3 %v2843_v63  ;;  %v2771_v24 = vor.u32 %v3052_v57, %v2768_v23  ;;  %v2775_v43 = vor.u32 %v3055_v44, %v2774_v40  ;;  %v2776_v63 = vld [vmem:[%s5078_s4 + $0x78] sm:$0xf0]  ;;  %v2720_v57 = vld [vmem:[%s5078_s4 + $0x10] sm:$0xf0] }
 0x417   :  { %v2779_v28 = vor.u32 %v3053_v54, %v2776_v63  ;;  %v2728_v23 = vld [vmem:[%s5078_s4 + $0x18] sm:$0xf0] }
 0x419   :  { %1469 = vmatpush.bf16.msrb.mxu0 %v2815_v56  ;;  %1498 = vmatpush.bf16.msrb.mxu1 %v2819_v48  ;;  %v3048_v56 = vld [vmem:[%s5078_s4 + $0x44] sm:$0xf]  ;;  %v2751_v48 = vor.u32 %v3050_v52, %v2750_v17 }
 0x41a   :  { %1527 = vmatpush.bf16.msrb.mxu2 %v2823_v49  ;;  %1556 = vmatpush.bf16.msrb.mxu3 %v2827_v60  ;;  %v2755_v49 = vor.u32 %v3048_v56, %v2752_v37  ;;  %v2759_v60 = vor.u32 %v3051_v59, %v2758_v53 }
 0x41d   :  { %1470 = vmatpush.bf16.msrb.mxu0 %v2799_v8  ;;  %1499 = vmatpush.bf16.msrb.mxu1 %v2803_v21  ;;  %v2763_v8 = vor.u32 %v3049_v61, %v2760_v1  ;;  %v2735_v21 = vor.u32 %v3046_v9, %v2734_v7  ;;  %v2958_v1 = vld [vmem:[%s5079_s5 + $0xe0] sm:$0xf]  ;;  %v3102_v7 = vld [vmem:[%s5079_s5 + $0xec] sm:$0xf0] }
 0x41e   :  { %1528 = vmatpush.bf16.msrb.mxu2 %v2807_v22  ;;  %1557 = vmatpush.bf16.msrb.mxu3 %v2811_v34  ;;  %v2742_v22 = vld [vmem:[%s5078_s4 + $0x28] sm:$0xf]  ;;  %v4403_v9 = vor.u32 %v3102_v7, %v2958_v1 }
 0x41f   :  { %v2743_v42 = vor.u32 %v3047_v26, %v2742_v22  ;;  %v2966_v22 = vld [vmem:[%s5079_s5 + $0xe8] sm:$0xf]  ;;  %v3103_v26 = vld [vmem:[%s5079_s5 + $0xf4] sm:$0xf0] }
 0x420   :  { %v2902_v1 = vld [vmem:[%s5079_s5 + $0x68] sm:$0xf] }
 0x421   :  { %1471 = vmatpush.bf16.msrb.mxu0 %v2783_v50  ;;  %1500 = vmatpush.bf16.msrb.mxu1 %v2787_v4  ;;  %v2718_v50 = vld [vmem:[%s5078_s4] sm:$0xf]  ;;  %v5121_v4 = vld [vmem:[#allocation21_spill] sm:$0xff] }
 0x422   :  { %1529 = vmatpush.bf16.msrb.mxu2 %v2791_v10  ;;  %1558 = vmatpush.bf16.msrb.mxu3 %v2795_v15  ;;  %v2719_v44 = vor.u32 %v3042_v55, %v2718_v50  ;;  %v3097_v55 = vld [vmem:[%s5079_s5 + $0xcc] sm:$0xf] }
 0x425   :  { %1472 = vmatpush.bf16.msrb.mxu0 %v2767_v19  ;;  %1501 = vmatpush.bf16.msrb.mxu1 %v2771_v24  ;;  %v3041_v19 = vld [vmem:[%s5078_s4 + $0xc] sm:$0xf] }
 0x426   :  { %1530 = vmatpush.bf16.msrb.mxu2 %v2775_v43  ;;  %1559 = vmatpush.bf16.msrb.mxu3 %v2779_v28  ;;  %v2731_v43 = vor.u32 %v3041_v19, %v2728_v23  ;;  %v2936_v19 = vld [vmem:[%s5079_s5 + $0xb8] sm:$0xf0] }
 0x429   :  { %1473 = vmatpush.bf16.msrb.mxu0 %v2751_v48  ;;  %1502 = vmatpush.bf16.msrb.mxu1 %v2755_v49 }
 0x42a   :  { %1531 = vmatpush.bf16.msrb.mxu2 %v2759_v60  ;;  %1560 = vmatpush.bf16.msrb.mxu3 %v2763_v8  ;;  %v3100_v8 = vld [vmem:[%s5079_s5 + $0xe4] sm:$0xf] }
 0x42d   :  { %1474 = vmatpush.bf16.msrb.mxu0 %v2735_v21  ;;  %1503 = vmatpush.bf16.msrb.mxu1 %v2739_v38  ;;  %v3096_v38 = vld [vmem:[%s5079_s5 + $0xc4] sm:$0xf] }
 0x42e   :  { %1532 = vmatpush.bf16.msrb.mxu2 %v2743_v42  ;;  %1561 = vmatpush.bf16.msrb.mxu3 %v2747_v36  ;;  %v2944_v42 = vld [vmem:[%s5079_s5 + $0xd0] sm:$0xf0] }
 0x42f   :  { %v4443_v50 = vor.u32 %v3096_v38, %v2944_v42  ;;  %v2888_v38 = vld [vmem:[%s5079_s5 + $0x58] sm:$0xf0]  ;;  %v2886_v42 = vld [vmem:[%s5079_s5 + $0x48] sm:$0xf] }
 0x431   :  { %1475 = vmatpush.bf16.msrb.mxu0 %v2719_v44  ;;  %v1263_v44 = vpack.c.bf16 %v4092_v5, %v4044_v25  ;;  %v2910_v5 = vld [vmem:[%s5079_s5 + $0x80] sm:$0xf] }
 0x432   :  { %1562 = vmatpush.bf16.msrb.mxu3 %v2731_v43  ;;  %v3089_v43 = vld [vmem:[%s5079_s5 + $0x8c] sm:$0xf] }
 0x490   :  { %v1105_v58 = vpop.f32.mrf.mxu0  ;;  %v1118_v29 = vpop.f32.mrf.mxu1 }
 0x491   :  { %v1148_v27 = vadd.f32 %v1105_v58, %v5118_v11  ;;  %v1149_v0 = vadd.f32 %v1118_v29, %v5119_v6  ;;  %v2726_v58 = vld [vmem:[%s5078_s4 + $0x8] sm:$0xf]  ;;  %v3043_v29 = vld [vmem:[%s5078_s4 + $0x14] sm:$0xf0] }
 0x492   :  { %v2727_v6 = vor.u32 %v3043_v29, %v2726_v58  ;;  %v3093_v58 = vld [vmem:[%s5079_s5 + $0xac] sm:$0xf] }
 0x493   :  { %v1152_v41 = vmul.f32 0.5, %v1148_v27  ;;  %v1153_v47 = vmul.f32 0.5, %v1149_v0  ;;  %v2723_v27 = vor.u32 %v3040_v12, %v2720_v57  ;;  %v3092_v12 = vld [vmem:[%s5079_s5 + $0xa4] sm:$0xf]  ;;  %v2928_v57 = vld [vmem:[%s5079_s5 + $0xb0] sm:$0xf0] }
 0x494   :  { %1533 = vmatpush.bf16.msrb.mxu2 %v2727_v6  ;;  %v4485_v23 = vor.u32 %v3092_v12, %v2928_v57  ;;  %v3095_v6 = vld [vmem:[%s5079_s5 + $0xb4] sm:$0xf0]  ;;  %v5123_v12 = vld [vmem:[#allocation22_spill] sm:$0xff] }
 0x495   :  { %3165 = vtanh.f32 %v1152_v41  ;;  %1504 = vmatpush.bf16.msrb.mxu1 %v2723_v27  ;;  %v2934_v27 = vld [vmem:[%s5079_s5 + $0xa8] sm:$0xf]  ;;  %v317_v57 = vadd.f32 %v5123_v12, %v3877_v35  ;;  %v3076_v35 = vld [vmem:[%s5079_s5 + $0x24] sm:$0xf] }
 0x496   :  { %3167 = vtanh.f32 %v1153_v47  ;;  %v4503_v25 = vor.u32 %v3095_v6, %v2934_v27  ;;  %v2862_v27 = vld [vmem:[%s5079_s5 + $0x20] sm:$0xf] }
 0x497   :  { %v1131_v33 = vpop.f32.mrf.mxu2  ;;  %v1144_v34 = vpop.f32.mrf.mxu3 }
 0x498   :  { %v1150_v3 = vadd.f32 %v1131_v33, %v5120_v2  ;;  %v1151_v10 = vadd.f32 %v1144_v34, %v5121_v4  ;;  %v1107_v14 = vpop.f32.mrf.mxu0  ;;  %v1120_v15 = vpop.f32.mrf.mxu1  ;;  %v4428_v33 = vor.u32 %v3103_v26, %v2966_v22  ;;  %v3098_v34 = vld [vmem:[%s5079_s5 + $0xcc] sm:$0xf0]  ;;  %v2952_v2 = vld [vmem:[%s5079_s5 + $0xd8] sm:$0xf0]  ;;  %v3080_v22 = vld [vmem:[%s5079_s5 + $0x44] sm:$0xf] }
 0x499   :  { %v4441_v46 = vor.u32 %v3098_v34, %v2942_v32  ;;  %v4455_v4 = vor.u32 %v3097_v55, %v2952_v2  ;;  %v2926_v14 = vld [vmem:[%s5079_s5 + $0xa0] sm:$0xf]  ;;  %v3094_v15 = vld [vmem:[%s5079_s5 + $0xac] sm:$0xf0]  ;;  %v2880_v26 = vld [vmem:[%s5079_s5 + $0x50] sm:$0xf0] }
 0x49a   :  { %v1154_v40 = vmul.f32 0.5, %v1150_v3  ;;  %3169 = vtanh.f32 %v1151_v10  ;;  %v2950_v3 = vld [vmem:[%s5079_s5 + $0xc8] sm:$0xf]  ;;  %v3099_v10 = vld [vmem:[%s5079_s5 + $0xd4] sm:$0xf0]  ;;  %v4478_v29 = vor.u32 %v3094_v15, %v2926_v14  ;;  %v4600_v55 = vor.u32 %v3080_v22, %v2880_v26  ;;  %v5122_v14 = vld [vmem:[#allocation20_spill] sm:$0xff] }
 0x49b   :  { %v3166_v11 = vpop.eup %3165  ;;  %v4466_v36 = vor.u32 %v3099_v10, %v2950_v3  ;;  %v3081_v34 = vld [vmem:[%s5079_s5 + $0x4c] sm:$0xf]  ;;  %v3083_v3 = vld [vmem:[%s5079_s5 + $0x54] sm:$0xf0]  ;;  %v288_v15 = vadd.f32 %v5122_v14, %v3873_v30  ;;  %v3078_v30 = vld [vmem:[%s5079_s5 + $0x2c] sm:$0xf0] }
 0x49c   :  { %v3168_v0 = vpop.eup %3167  ;;  %v1158_v24 = vmul.f32 0.5, %v3166_v11  ;;  %3171 = vtanh.f32 %v1154_v40  ;;  %v4487_v40 = vor.u32 %v3093_v58, %v2936_v19  ;;  %v1264_v11 = vpack.c.bf16 %v4184_v31, %v4136_v16  ;;  %v3090_v16 = vld [vmem:[%s5079_s5 + $0x8c] sm:$0xf0]  ;;  %v3088_v31 = vld [vmem:[%s5079_s5 + $0x84] sm:$0xf] }
 0x49d   :  { %v1159_v54 = vmul.f32 0.5, %v3168_v0  ;;  %v4515_v0 = vor.u32 %v3090_v16, %v2910_v5  ;;  %v4602_v2 = vor.u32 %v3081_v34, %v2888_v38  ;;  %v4608_v10 = vor.u32 %v3083_v3, %v2886_v42  ;;  %v2864_v5 = vld [vmem:[%s5079_s5 + $0x30] sm:$0xf0]  ;;  %v3077_v16 = vld [vmem:[%s5079_s5 + $0x2c] sm:$0xf] }
 0x49e   :  { %v1161_v63 = vadd.f32 0.5, %v1158_v24  ;;  %v2912_v24 = vld [vmem:[%s5079_s5 + $0x90] sm:$0xf0]  ;;  %v4627_v6 = vor.u32 %v3078_v30, %v2862_v27  ;;  %v2846_v34 = vld [vmem:[%s5079_s5] sm:$0xf] }
 0x49f   :  { %v1162_v17 = vadd.f32 0.5, %v1159_v54  ;;  %v1133_v28 = vpop.f32.mrf.mxu2  ;;  %v1146_v52 = vpop.f32.mrf.mxu3  ;;  %v2920_v54 = vld [vmem:[%s5079_s5 + $0x98] sm:$0xf0]  ;;  %v2848_v42 = vld [vmem:[%s5079_s5 + $0x10] sm:$0xf0] }
 0x4a0   :  { %v3170_v56 = vpop.eup %3169  ;;  %v2918_v28 = vld [vmem:[%s5079_s5 + $0x88] sm:$0xf]  ;;  %v3091_v52 = vld [vmem:[%s5079_s5 + $0x94] sm:$0xf0]  ;;  %v3073_v3 = vld [vmem:[%s5079_s5 + $0xc] sm:$0xf] }
 0x4a1   :  { %v1165_v37 = vmul.f32 %v1162_v17, %v4181_v18  ;;  %v1166_v41 = vmul.f32 %v3170_v56, %v1161_v63  ;;  %v1262_v18 = vpack.c.bf16 %v4000_v39, %v3952_v62  ;;  %v2960_v62 = vld [vmem:[%s5079_s5 + $0xf0] sm:$0xf0]  ;;  %v3101_v39 = vld [vmem:[%s5079_s5 + $0xec] sm:$0xf]  ;;  %v4526_v63 = vor.u32 %v3088_v31, %v2912_v24  ;;  %v2894_v56 = vld [vmem:[%s5079_s5 + $0x60] sm:$0xf] }
 0x4a2   :  { %v3172_v47 = vpop.eup %3171  ;;  %v4414_v20 = vor.u32 %v3100_v8, %v2960_v62  ;;  %v4416_v21 = vor.u32 %v3101_v39, %v2968_v13  ;;  %v4528_v17 = vor.u32 %v3089_v43, %v2920_v54  ;;  %v3087_v8 = vld [vmem:[%s5079_s5 + $0x74] sm:$0xf0]  ;;  %v2878_v62 = vld [vmem:[%s5079_s5 + $0x40] sm:$0xf]  ;;  %v3082_v13 = vld [vmem:[%s5079_s5 + $0x4c] sm:$0xf0]  ;;  %v4638_v54 = vor.u32 %v3076_v35, %v2864_v5 }
 0x4a3   :  { %v4385_v48 = vadd.f32 %v1166_v41, %v1165_v37  ;;  %v1160_v49 = vmul.f32 0.5, %v3172_v47  ;;  %v4540_v37 = vor.u32 %v3091_v52, %v2918_v28  ;;  %v3086_v41 = vld [vmem:[%s5079_s5 + $0x6c] sm:$0xf0]  ;;  %v3084_v47 = vld [vmem:[%s5079_s5 + $0x64] sm:$0xf]  ;;  %v4575_v39 = vor.u32 %v3087_v8, %v2902_v1 }
 0x4a4   :  { %v4587_v32 = vor.u32 %v3082_v13, %v2878_v62  ;;  %v2872_v31 = vld [vmem:[%s5079_s5 + $0x38] sm:$0xf0]  ;;  %v2870_v52 = vld [vmem:[%s5079_s5 + $0x28] sm:$0xf] }
 0x4a5   :  { %3173 = vtanh.f32 %v4385_v48  ;;  %v1163_v53 = vadd.f32 0.5, %v1160_v49  ;;  %v2896_v49 = vld [vmem:[%s5079_s5 + $0x70] sm:$0xf0]  ;;  %v4640_v28 = vor.u32 %v3077_v16, %v2872_v31  ;;  %v2856_v14 = vld [vmem:[%s5079_s5 + $0x18] sm:$0xf0] }
 0x4ab   :  { %v3174_v59 = vpop.eup %3173 }
 0x4ac   :  { %v4388_v60 = vmul.f32 %v3174_v59, %v1163_v53  ;;  %v4553_v53 = vor.u32 %v3086_v41, %v2894_v56  ;;  %v4555_v59 = vor.u32 %v3084_v47, %v2896_v49  ;;  %v3079_v56 = vld [vmem:[%s5079_s5 + $0x34] sm:$0xf0] }
 0x4ad   :  { %v4649_v41 = vor.u32 %v3079_v56, %v2870_v52  ;;  %v5124_v47 = vld [vmem:[#allocation23_spill] sm:$0xff] }
 0x4ae   :  { %v1177_v61 = vpack.c.bf16 %v4388_v60, %v4388_v60  ;;  %v346_v49 = vadd.f32 %v5124_v47, %v3887_v45  ;;  %v3074_v45 = vld [vmem:[%s5079_s5 + $0xc] sm:$0xf0] }
 0x4af   :  { %v4667_v38 = vor.u32 %v3074_v45, %v2846_v34 }
 0x4b0   :  { %1186 = vmatmul.bf16.vlgmr.msra.gmra.mxu0 %v1177_v61  ;;  %1199 = vmatmul.bf16.vlgmr.msra.gmra.mxu1 %v1177_v61 }
 0x4b1   :  { %1212 = vmatmul.bf16.vlgmr.msra.gmra.mxu2 %v1177_v61  ;;  %1225 = vmatmul.bf16.vlgmr.msra.gmra.mxu3 %v1177_v61  ;;  %v3085_v61 = vld [vmem:[%s5079_s5 + $0x6c] sm:$0xf] }
 0x4b2   :  { %1812 = vmatpush.bf16.msra.mxu0 %v4403_v9  ;;  %1825 = vmatpush.bf16.msra.mxu1 %v4414_v20 }
 0x4b3   :  { %1851 = vmatpush.bf16.msra.mxu3 %v4416_v21  ;;  %1838 = vmatpush.bf16.msra.mxu2 %v4428_v33 }
 0x4b6   :  { %1813 = vmatpush.bf16.msra.mxu0 %v4441_v46  ;;  %1826 = vmatpush.bf16.msra.mxu1 %v4443_v50 }
 0x4b7   :  { %1852 = vmatpush.bf16.msra.mxu3 %v4455_v4  ;;  %1839 = vmatpush.bf16.msra.mxu2 %v4466_v36 }
 0x4ba   :  { %1814 = vmatpush.bf16.msra.mxu0 %v4478_v29  ;;  %1827 = vmatpush.bf16.msra.mxu1 %v4485_v23 }
 0x4bb   :  { %1853 = vmatpush.bf16.msra.mxu3 %v4487_v40  ;;  %1840 = vmatpush.bf16.msra.mxu2 %v4503_v25 }
 0x4be   :  { %1815 = vmatpush.bf16.msra.mxu0 %v4515_v0  ;;  %1828 = vmatpush.bf16.msra.mxu1 %v4526_v63 }
 0x4bf   :  { %1854 = vmatpush.bf16.msra.mxu3 %v4528_v17  ;;  %1841 = vmatpush.bf16.msra.mxu2 %v4540_v37 }
 0x4c0   :  { %1476 = vmatmul.bf16.vlgmr.msrb.gmra.mxu0 %v1262_v18  ;;  %1505 = vmatmul.bf16.vlgmr.msrb.gmra.mxu1 %v1262_v18 }
 0x4c1   :  { %1534 = vmatmul.bf16.vlgmr.msrb.gmra.mxu2 %v1262_v18  ;;  %1563 = vmatmul.bf16.vlgmr.msrb.gmra.mxu3 %v1262_v18  ;;  %v2904_v18 = vld [vmem:[%s5079_s5 + $0x78] sm:$0xf0] }
 0x4c2   :  { %v4567_v7 = vor.u32 %v3085_v61, %v2904_v18  ;;  %1816 = vmatpush.bf16.msra.mxu0 %v4553_v53  ;;  %1829 = vmatpush.bf16.msra.mxu1 %v4555_v59  ;;  %v5125_v61 = vld [vmem:[#allocation24_spill] sm:$0xff] }
 0x4c3   :  { %1842 = vmatpush.bf16.msra.mxu2 %v4575_v39  ;;  %v375_v18 = vadd.f32 %v5125_v61, %v3889_v51  ;;  %v3072_v51 = vld [vmem:[%s5079_s5 + $0x4] sm:$0xf] }
 0x4c4   :  { %1855 = vmatpush.bf16.msra.mxu3 %v4567_v7  ;;  %v4678_v12 = vor.u32 %v3072_v51, %v2848_v42 }
 0x4c6   :  { %1817 = vmatpush.bf16.msra.mxu0 %v4587_v32  ;;  %1830 = vmatpush.bf16.msra.mxu1 %v4600_v55 }
 0x4c7   :  { %1843 = vmatpush.bf16.msra.mxu2 %v4608_v10 }
 0x4c8   :  { %1856 = vmatpush.bf16.msra.mxu3 %v4602_v2 }
 0x4ca   :  { %1818 = vmatpush.bf16.msra.mxu0 %v4627_v6  ;;  %1831 = vmatpush.bf16.msra.mxu1 %v4638_v54 }
 0x4cb   :  { %1844 = vmatpush.bf16.msra.mxu2 %v4649_v41 }
 0x4cc   :  { %1857 = vmatpush.bf16.msra.mxu3 %v4640_v28 }
 0x4ce   :  { %1819 = vmatpush.bf16.msra.mxu0 %v4667_v38  ;;  %1832 = vmatpush.bf16.msra.mxu1 %v4678_v12 }
 0x4d0   :  { %1481 = vmatmul.bf16.gmra.mxu0 %v1263_v44  ;;  %1510 = vmatmul.bf16.gmra.mxu1 %v1263_v44 }
 0x4d1   :  { %1539 = vmatmul.bf16.gmra.mxu2 %v1263_v44  ;;  %1568 = vmatmul.bf16.gmra.mxu3 %v1263_v44 }
 0x4d2   :  { %1891 = vmatpush.bf16.msrb.mxu0 %v4403_v9  ;;  %1904 = vmatpush.bf16.msrb.mxu1 %v4414_v20 }
 0x4d6   :  { %1892 = vmatpush.bf16.msrb.mxu0 %v4441_v46  ;;  %1905 = vmatpush.bf16.msrb.mxu1 %v4443_v50 }
 0x4da   :  { %1893 = vmatpush.bf16.msrb.mxu0 %v4478_v29  ;;  %1906 = vmatpush.bf16.msrb.mxu1 %v4485_v23 }
 0x4de   :  { %1894 = vmatpush.bf16.msrb.mxu0 %v4515_v0  ;;  %1907 = vmatpush.bf16.msrb.mxu1 %v4526_v63 }
 0x4e0   :  { %1486 = vmatmul.bf16.gmra.mxu0 %v1264_v11  ;;  %1515 = vmatmul.bf16.gmra.mxu1 %v1264_v11 }
 0x4e1   :  { %1544 = vmatmul.bf16.gmra.mxu2 %v1264_v11  ;;  %1573 = vmatmul.bf16.gmra.mxu3 %v1264_v11 }
 0x4e2   :  { %1895 = vmatpush.bf16.msrb.mxu0 %v4553_v53  ;;  %1908 = vmatpush.bf16.msrb.mxu1 %v4555_v59 }
 0x4e6   :  { %1896 = vmatpush.bf16.msrb.mxu0 %v4587_v32  ;;  %1909 = vmatpush.bf16.msrb.mxu1 %v4600_v55 }
 0x4ea   :  { %1897 = vmatpush.bf16.msrb.mxu0 %v4627_v6  ;;  %1910 = vmatpush.bf16.msrb.mxu1 %v4638_v54 }
 0x4ee   :  { %1898 = vmatpush.bf16.msrb.mxu0 %v4667_v38  ;;  %1911 = vmatpush.bf16.msrb.mxu1 %v4678_v12 }
 0x52d   :  { %v1187_v58 = vpop.f32.mrf.mxu0  ;;  %v1200_v19 = vpop.f32.mrf.mxu1 }
 0x52e   :  { %v1230_v44 = vadd.f32 %v1187_v58, %v288_v15  ;;  %v1231_v11 = vadd.f32 %v1200_v19, %v317_v57  ;;  %v4680_v57 = vor.u32 %v3073_v3, %v2856_v14  ;;  %v2854_v58 = vld [vmem:[%s5079_s5 + $0x8] sm:$0xf]  ;;  %v3075_v19 = vld [vmem:[%s5079_s5 + $0x14] sm:$0xf0] }
 0x530   :  { %v1234_v24 = vmul.f32 0.5, %v1230_v44  ;;  %v1235_v43 = vmul.f32 0.5, %v1231_v11  ;;  %v4689_v11 = vor.u32 %v3075_v19, %v2854_v58  ;;  %1858 = vmatpush.bf16.msra.mxu3 %v4680_v57 }
 0x532   :  { %3175 = vtanh.f32 %v1234_v24  ;;  %1845 = vmatpush.bf16.msra.mxu2 %v4689_v11 }
 0x533   :  { %3177 = vtanh.f32 %v1235_v43 }
 0x534   :  { %v1213_v1 = vpop.f32.mrf.mxu2  ;;  %v1226_v8 = vpop.f32.mrf.mxu3  ;;  %1930 = vmatpush.bf16.msrb.mxu3 %v4416_v21 }
 0x535   :  { %v1232_v62 = vadd.f32 %v1213_v1, %v346_v49  ;;  %v1233_v13 = vadd.f32 %v1226_v8, %v375_v18  ;;  %v1189_v22 = vpop.f32.mrf.mxu0  ;;  %v1202_v26 = vpop.f32.mrf.mxu1 }
 0x536   :  { %1917 = vmatpush.bf16.msrb.mxu2 %v4428_v33 }
 0x537   :  { %v1236_v15 = vmul.f32 0.5, %v1232_v62  ;;  %3179 = vtanh.f32 %v1233_v13 }
 0x538   :  { %v3176_v44 = vpop.eup %3175  ;;  %1931 = vmatpush.bf16.msrb.mxu3 %v4455_v4 }
 0x539   :  { %v3178_v27 = vpop.eup %3177  ;;  %v1240_v30 = vmul.f32 0.5, %v3176_v44  ;;  %3181 = vtanh.f32 %v1236_v15 }
 0x53a   :  { %v1241_v35 = vmul.f32 0.5, %v3178_v27  ;;  %1918 = vmatpush.bf16.msrb.mxu2 %v4466_v36 }
 0x53b   :  { %v1243_v5 = vadd.f32 0.5, %v1240_v30 }
 0x53c   :  { %v1244_v16 = vadd.f32 0.5, %v1241_v35  ;;  %v1215_v31 = vpop.f32.mrf.mxu2  ;;  %v1228_v24 = vpop.f32.mrf.mxu3  ;;  %1932 = vmatpush.bf16.msrb.mxu3 %v4487_v40 }
 0x53d   :  { %v3180_v43 = vpop.eup %3179  ;;  %v1477_v62 = vpop.f32.mrf.mxu0 }
 0x53e   :  { %v1247_v52 = vmul.f32 %v1244_v16, %v4385_v48  ;;  %v1248_v56 = vmul.f32 %v3180_v43, %v1243_v5  ;;  %1919 = vmatpush.bf16.msrb.mxu2 %v4503_v25  ;;  %v1506_v13 = vpop.f32.mrf.mxu1 }
 0x53f   :  { %v3182_v47 = vpop.eup %3181 }
 0x540   :  { %v1249_v49 = vadd.f32 %v1248_v56, %v1247_v52  ;;  %v1242_v61 = vmul.f32 0.5, %v3182_v47  ;;  %1933 = vmatpush.bf16.msrb.mxu3 %v4528_v17 }
 0x542   :  { %3183 = vtanh.f32 %v1249_v49  ;;  %v1245_v48 = vadd.f32 0.5, %v1242_v61  ;;  %1920 = vmatpush.bf16.msrb.mxu2 %v4540_v37 }
 0x544   :  { %1934 = vmatpush.bf16.msrb.mxu3 %v4567_v7  ;;  %v1535_v22 = vpop.f32.mrf.mxu2  ;;  %v1564_v26 = vpop.f32.mrf.mxu3 }
 0x545   :  { %v4764_v34 = vpop.f32.mrf.mxu0 }
 0x546   :  { %1921 = vmatpush.bf16.msrb.mxu2 %v4575_v39  ;;  %v4766_v45 = vpop.f32.mrf.mxu1 }
 0x548   :  { %v3184_v18 = vpop.eup %3183  ;;  %1935 = vmatpush.bf16.msrb.mxu3 %v4602_v2 }
 0x549   :  { %v1251_v1 = vmul.f32 %v3184_v18, %v1245_v48  ;;  %v1298_v18 = vld [vmem:[%s5080_s6] sm:$0xf] }
 0x54a   :  { %1922 = vmatpush.bf16.msrb.mxu2 %v4608_v10 }
 0x54b   :  { %v1265_v8 = vpack.c.bf16 %v1251_v1, %v4388_v60  ;;  %v5126_v60 = vmov 0  }
 0x54c   :  { %1936 = vmatpush.bf16.msrb.mxu3 %v4640_v28  ;;  %v4768_v51 = vpop.f32.mrf.mxu2  ;;  %v4770_v42 = vpop.f32.mrf.mxu3 }
 0x54d   :  { %1491 = vmatmul.bf16.gmra.mxu0 %v1265_v8  ;;  %1520 = vmatmul.bf16.gmra.mxu1 %v1265_v8  ;;  %v4772_v3 = vpop.f32.mrf.mxu0 }
 0x54e   :  { %1549 = vmatmul.bf16.gmra.mxu2 %v1265_v8  ;;  %1578 = vmatmul.bf16.gmra.mxu3 %v1265_v8  ;;  %v4774_v14 = vpop.f32.mrf.mxu1 }
 0x54f   :  { %1923 = vmatpush.bf16.msrb.mxu2 %v4649_v41 }
 0x550   :  { %1937 = vmatpush.bf16.msrb.mxu3 %v4680_v57 }
 0x553   :  { %1924 = vmatpush.bf16.msrb.mxu2 %v4689_v11 }
 0x554   :  { %v4776_v15 = vpop.f32.mrf.mxu2  ;;  %v4778_v58 = vpop.f32.mrf.mxu3 }
 0x555   :  { %5127 = vst [vmem:[#allocation5_spill] sm:$0xff] %v4776_v15  ;;  %v4780_v19 = vpop.f32.mrf.mxu0 }
 0x556   :  { %5128 = vst [vmem:[#allocation4_spill] sm:$0xff] %v4778_v58  ;;  %v4782_v44 = vpop.f32.mrf.mxu1 }
 0x557   :  { %5129 = vst [vmem:[#allocation6_spill] sm:$0xff] %v4780_v19 }
 0x558   :  { %5130 = vst [vmem:[#allocation7_spill] sm:$0xff] %v4782_v44 }
 0x55c   :  { %v4784_v27 = vpop.f32.mrf.mxu2  ;;  %v4786_v30 = vpop.f32.mrf.mxu3 }
 0x55d   :  { %1820 = vmatmul.bf16.vlgmr.msra.gmra.mxu0 %v5126_v60  ;;  %1833 = vmatmul.bf16.vlgmr.msra.gmra.mxu1 %v5126_v60  ;;  %5131 = vst [vmem:[#allocation8_spill] sm:$0xff] %v4784_v27  ;;  %v4788_v35 = vpop.f32.mrf.mxu0 }
 0x55e   :  { %1846 = vmatmul.bf16.vlgmr.msra.gmra.mxu2 %v5126_v60  ;;  %1859 = vmatmul.bf16.vlgmr.msra.gmra.mxu3 %v5126_v60  ;;  %5132 = vst [vmem:[#allocation9_spill] sm:$0xff] %v4786_v30  ;;  %v4790_v5 = vpop.f32.mrf.mxu1  ;;  %v4819_v60 = vperm.slane %v1298_v18, 0 }
 0x55f   :  { %1970 = vmatpush.bf16.msra.mxu0 %v4403_v9  ;;  %1983 = vmatpush.bf16.msra.mxu1 %v4414_v20  ;;  %5133 = vst [vmem:[#allocation10_spill] sm:$0xff] %v4788_v35 }
 0x560   :  { %1996 = vmatpush.bf16.msra.mxu2 %v4428_v33  ;;  %2009 = vmatpush.bf16.msra.mxu3 %v4416_v21  ;;  %5134 = vst [vmem:[#allocation11_spill] sm:$0xff] %v4790_v5 }
 0x563   :  { %1971 = vmatpush.bf16.msra.mxu0 %v4441_v46  ;;  %1984 = vmatpush.bf16.msra.mxu1 %v4443_v50 }
 0x564   :  { %1997 = vmatpush.bf16.msra.mxu2 %v4466_v36  ;;  %2010 = vmatpush.bf16.msra.mxu3 %v4455_v4  ;;  %v4792_v16 = vpop.f32.mrf.mxu2  ;;  %v4794_v31 = vpop.f32.mrf.mxu3 }
 0x565   :  { %5135 = vst [vmem:[#allocation13_spill] sm:$0xff] %v4792_v16  ;;  %v4796_v24 = vpop.f32.mrf.mxu0  ;;  %v4829_v16 = vperm.slane %v1298_v18, 2 }
 0x566   :  { %5136 = vst [vmem:[#allocation12_spill] sm:$0xff] %v4794_v31  ;;  %v4798_v43 = vpop.f32.mrf.mxu1 }
 0x567   :  { %1972 = vmatpush.bf16.msra.mxu0 %v4478_v29  ;;  %1985 = vmatpush.bf16.msra.mxu1 %v4485_v23  ;;  %5137 = vst [vmem:[#allocation14_spill] sm:$0xff] %v4796_v24  ;;  %v1536_v35 = vadd.f32 %v1535_v22, %v4829_v16 }
 0x568   :  { %1998 = vmatpush.bf16.msra.mxu2 %v4503_v25  ;;  %2011 = vmatpush.bf16.msra.mxu3 %v4487_v40  ;;  %5138 = vst [vmem:[#allocation15_spill] sm:$0xff] %v4798_v43 }
 0x56b   :  { %1973 = vmatpush.bf16.msra.mxu0 %v4515_v0  ;;  %1986 = vmatpush.bf16.msra.mxu1 %v4526_v63 }
 0x56c   :  { %1999 = vmatpush.bf16.msra.mxu2 %v4540_v37  ;;  %2012 = vmatpush.bf16.msra.mxu3 %v4528_v17  ;;  %v4800_v52 = vpop.f32.mrf.mxu2  ;;  %v4802_v56 = vpop.f32.mrf.mxu3 }
 0x56d   :  { %5139 = vst [vmem:[#allocation16_spill] sm:$0xff] %v4800_v52  ;;  %v4821_v52 = vperm.slane %v1298_v18, 1 }
 0x56e   :  { %5140 = vst [vmem:[#allocation17_spill] sm:$0xff] %v4802_v56 }
 0x56f   :  { %1974 = vmatpush.bf16.msra.mxu0 %v4553_v53  ;;  %1987 = vmatpush.bf16.msra.mxu1 %v4555_v59 }
 0x570   :  { %2000 = vmatpush.bf16.msra.mxu2 %v4575_v39  ;;  %2013 = vmatpush.bf16.msra.mxu3 %v4567_v7 }
 0x573   :  { %1975 = vmatpush.bf16.msra.mxu0 %v4587_v32  ;;  %1988 = vmatpush.bf16.msra.mxu1 %v4600_v55 }
 0x574   :  { %2001 = vmatpush.bf16.msra.mxu2 %v4608_v10  ;;  %2014 = vmatpush.bf16.msra.mxu3 %v4602_v2 }
 0x577   :  { %1976 = vmatpush.bf16.msra.mxu0 %v4627_v6  ;;  %1989 = vmatpush.bf16.msra.mxu1 %v4638_v54 }
 0x578   :  { %2002 = vmatpush.bf16.msra.mxu2 %v4649_v41  ;;  %2015 = vmatpush.bf16.msra.mxu3 %v4640_v28 }
 0x57b   :  { %1977 = vmatpush.bf16.msra.mxu0 %v4667_v38  ;;  %1990 = vmatpush.bf16.msra.mxu1 %v4678_v12 }
 0x57c   :  { %2003 = vmatpush.bf16.msra.mxu2 %v4689_v11  ;;  %2016 = vmatpush.bf16.msra.mxu3 %v4680_v57 }
 0x5ca   :  { %v4804_v47 = vpop.f32.mrf.mxu0  ;;  %v4806_v49 = vpop.f32.mrf.mxu1 }
 0x5cb   :  { %5141 = vst [vmem:[#allocation18_spill] sm:$0xff] %v4804_v47  ;;  %v1478_v47 = vadd.f32 %v1477_v62, %v4819_v60 }
 0x5cc   :  { %5142 = vst [vmem:[#allocation19_spill] sm:$0xff] %v4806_v49  ;;  %v1507_v49 = vadd.f32 %v1506_v13, %v4821_v52 }
 0x5d1   :  { %v4808_v61 = vpop.f32.mrf.mxu2  ;;  %v4810_v48 = vpop.f32.mrf.mxu3 }
 0x5d2   :  { %5143 = vst [vmem:[#allocation21_spill] sm:$0xff] %v4808_v61  ;;  %v4815_v1 = vpop.f32.mrf.mxu0  ;;  %v4817_v8 = vpop.f32.mrf.mxu1 }
 0x5d3   :  { %5144 = vst [vmem:[#allocation20_spill] sm:$0xff] %v4810_v48 }
 0x5d4   :  { %5145 = vst [vmem:[#allocation22_spill] sm:$0xff] %v4815_v1  ;;  %v4831_v1 = vperm.slane %v1298_v18, 3 }
 0x5d5   :  { %5146 = vst [vmem:[#allocation23_spill] sm:$0xff] %v4817_v8 }
 0x5d6   :  { %v1565_v62 = vadd.f32 %v1564_v26, %v4831_v1 }
 0x5d9   :  { %v4825_v56 = vpop.f32.mrf.mxu2  ;;  %v4827_v61 = vpop.f32.mrf.mxu3 }
 0x5da   :  { %5147 = vst [vmem:[#allocation24_spill] sm:$0xff] %v4825_v56  ;;  %v1821_v48 = vpop.f32.mrf.mxu0  ;;  %v1834_v43 = vpop.f32.mrf.mxu1 }
 0x5db   :  { %5148 = vst [vmem:[#allocation25_spill] sm:$0xff] %v4827_v61  ;;  %v1864_v24 = vadd.f32 %v1821_v48, %v1478_v47  ;;  %v1865_v31 = vadd.f32 %v1834_v43, %v1507_v49 }
 0x5dd   :  { %v1868_v8 = vmul.f32 0.5, %v1864_v24  ;;  %v1869_v5 = vmul.f32 0.5, %v1865_v31 }
 0x5df   :  { %3185 = vtanh.f32 %v1868_v8 }
 0x5e0   :  { %3187 = vtanh.f32 %v1869_v5 }
 0x5e1   :  { %v1847_v13 = vpop.f32.mrf.mxu2  ;;  %v1860_v56 = vpop.f32.mrf.mxu3 }
 0x5e2   :  { %v1866_v30 = vadd.f32 %v1847_v13, %v1536_v35  ;;  %v1867_v61 = vadd.f32 %v1860_v56, %v1565_v62  ;;  %v1823_v27 = vpop.f32.mrf.mxu0  ;;  %v1836_v44 = vpop.f32.mrf.mxu1 }
 0x5e4   :  { %v1870_v47 = vmul.f32 0.5, %v1866_v30  ;;  %3189 = vtanh.f32 %v1867_v61 }
 0x5e5   :  { %v3186_v43 = vpop.eup %3185 }
 0x5e6   :  { %v3188_v49 = vpop.eup %3187  ;;  %v1874_v48 = vmul.f32 0.5, %v3186_v43  ;;  %3191 = vtanh.f32 %v1870_v47 }
 0x5e7   :  { %v1875_v18 = vmul.f32 0.5, %v3188_v49 }
 0x5e8   :  { %v1877_v31 = vadd.f32 0.5, %v1874_v48  ;;  %v1538_v48 = vadd.f32 %v4768_v51, %v4829_v16 }
 0x5e9   :  { %v1878_v24 = vadd.f32 0.5, %v1875_v18  ;;  %v1849_v8 = vpop.f32.mrf.mxu2  ;;  %v1862_v22 = vpop.f32.mrf.mxu3  ;;  %v1567_v18 = vadd.f32 %v4770_v42, %v4831_v1 }
 0x5ea   :  { %v3190_v19 = vpop.eup %3189 }
 0x5eb   :  { %v1881_v26 = vmul.f32 0.0, %v1878_v24  ;;  %v1882_v5 = vmul.f32 %v3190_v19, %v1877_v31  ;;  %v1509_v19 = vadd.f32 %v4766_v45, %v4821_v52 }
 0x5ec   :  { %v3192_v58 = vpop.eup %3191 }
 0x5ed   :  { %v4835_v15 = vadd.f32 %v1882_v5, %v1881_v26  ;;  %v1876_v44 = vmul.f32 0.5, %v3192_v58  ;;  %v1480_v58 = vadd.f32 %v4764_v34, %v4819_v60 }
 0x5ef   :  { %3193 = vtanh.f32 %v4835_v15  ;;  %v1879_v27 = vadd.f32 0.5, %v1876_v44 }
 0x5f5   :  { %v3194_v30 = vpop.eup %3193 }
 0x5f6   :  { %v1885_v35 = vmul.f32 %v3194_v30, %v1879_v27 }
 0x5f8   :  { %v1890_v56 = vpack.c.bf16 %v1885_v35, %v1885_v35 }
 0x5fa   :  { %1899 = vmatmul.bf16.vlgmr.msrb.gmra.mxu0 %v1890_v56  ;;  %1912 = vmatmul.bf16.vlgmr.msrb.gmra.mxu1 %v1890_v56 }
 0x5fb   :  { %1925 = vmatmul.bf16.vlgmr.msrb.gmra.mxu2 %v1890_v56  ;;  %1938 = vmatmul.bf16.vlgmr.msrb.gmra.mxu3 %v1890_v56 }
 0x5fc   :  { %2049 = vmatpush.bf16.msrb.mxu0 %v4403_v9  ;;  %2062 = vmatpush.bf16.msrb.mxu1 %v4414_v20 }
 0x5fd   :  { %2075 = vmatpush.bf16.msrb.mxu2 %v4428_v33  ;;  %2088 = vmatpush.bf16.msrb.mxu3 %v4416_v21 }
 0x600   :  { %2050 = vmatpush.bf16.msrb.mxu0 %v4441_v46  ;;  %2063 = vmatpush.bf16.msrb.mxu1 %v4443_v50 }
 0x601   :  { %2076 = vmatpush.bf16.msrb.mxu2 %v4466_v36  ;;  %2089 = vmatpush.bf16.msrb.mxu3 %v4455_v4 }
 0x604   :  { %2051 = vmatpush.bf16.msrb.mxu0 %v4478_v29  ;;  %2064 = vmatpush.bf16.msrb.mxu1 %v4485_v23 }
 0x605   :  { %2077 = vmatpush.bf16.msrb.mxu2 %v4503_v25  ;;  %2090 = vmatpush.bf16.msrb.mxu3 %v4487_v40 }
 0x608   :  { %2052 = vmatpush.bf16.msrb.mxu0 %v4515_v0  ;;  %2065 = vmatpush.bf16.msrb.mxu1 %v4526_v63 }
 0x609   :  { %2078 = vmatpush.bf16.msrb.mxu2 %v4540_v37  ;;  %2091 = vmatpush.bf16.msrb.mxu3 %v4528_v17 }
 0x60c   :  { %2053 = vmatpush.bf16.msrb.mxu0 %v4553_v53  ;;  %2066 = vmatpush.bf16.msrb.mxu1 %v4555_v59 }
 0x60d   :  { %2079 = vmatpush.bf16.msrb.mxu2 %v4575_v39  ;;  %2092 = vmatpush.bf16.msrb.mxu3 %v4567_v7 }
 0x610   :  { %2054 = vmatpush.bf16.msrb.mxu0 %v4587_v32  ;;  %2067 = vmatpush.bf16.msrb.mxu1 %v4600_v55 }
 0x611   :  { %2080 = vmatpush.bf16.msrb.mxu2 %v4608_v10  ;;  %2093 = vmatpush.bf16.msrb.mxu3 %v4602_v2 }
 0x614   :  { %2055 = vmatpush.bf16.msrb.mxu0 %v4627_v6  ;;  %2068 = vmatpush.bf16.msrb.mxu1 %v4638_v54 }
 0x615   :  { %2081 = vmatpush.bf16.msrb.mxu2 %v4649_v41  ;;  %2094 = vmatpush.bf16.msrb.mxu3 %v4640_v28 }
 0x618   :  { %2056 = vmatpush.bf16.msrb.mxu0 %v4667_v38  ;;  %2069 = vmatpush.bf16.msrb.mxu1 %v4678_v12 }
 0x619   :  { %2082 = vmatpush.bf16.msrb.mxu2 %v4689_v11  ;;  %2095 = vmatpush.bf16.msrb.mxu3 %v4680_v57 }
 0x677   :  { %v1900_v61 = vpop.f32.mrf.mxu0  ;;  %v1913_v62 = vpop.f32.mrf.mxu1 }
 0x678   :  { %v1943_v13 = vadd.f32 %v1900_v61, %v1480_v58  ;;  %v1944_v47 = vadd.f32 %v1913_v62, %v1509_v19 }
 0x67a   :  { %v1947_v43 = vmul.f32 0.5, %v1943_v13  ;;  %v1948_v49 = vmul.f32 0.5, %v1944_v47 }
 0x67c   :  { %3195 = vtanh.f32 %v1947_v43 }
 0x67d   :  { %3197 = vtanh.f32 %v1948_v49 }
 0x67e   :  { %v1926_v31 = vpop.f32.mrf.mxu2  ;;  %v1939_v24 = vpop.f32.mrf.mxu3 }
 0x67f   :  { %v1945_v34 = vadd.f32 %v1926_v31, %v1538_v48  ;;  %v1946_v8 = vadd.f32 %v1939_v24, %v1567_v18  ;;  %v1902_v22 = vpop.f32.mrf.mxu0  ;;  %v1915_v45 = vpop.f32.mrf.mxu1  ;;  %v1512_v31 = vadd.f32 %v4774_v14, %v4821_v52 }
 0x681   :  { %v1949_v26 = vmul.f32 0.5, %v1945_v34  ;;  %3199 = vtanh.f32 %v1946_v8 }
 0x682   :  { %v3196_v5 = vpop.eup %3195 }
 0x683   :  { %v3198_v44 = vpop.eup %3197  ;;  %v1953_v27 = vmul.f32 0.5, %v3196_v5  ;;  %3201 = vtanh.f32 %v1949_v26  ;;  %v5149_v5 = vld [vmem:[#allocation5_spill] sm:$0xff] }
 0x684   :  { %v1954_v30 = vmul.f32 0.5, %v3198_v44  ;;  %v1541_v44 = vadd.f32 %v5149_v5, %v4829_v16 }
 0x685   :  { %v1956_v35 = vadd.f32 0.5, %v1953_v27  ;;  %v5150_v27 = vld [vmem:[#allocation4_spill] sm:$0xff] }
 0x686   :  { %v1957_v56 = vadd.f32 0.5, %v1954_v30  ;;  %v1928_v51 = vpop.f32.mrf.mxu2  ;;  %v1941_v58 = vpop.f32.mrf.mxu3  ;;  %v1570_v30 = vadd.f32 %v5150_v27, %v4831_v1 }
 0x687   :  { %v3200_v19 = vpop.eup %3199 }
 0x688   :  { %v1960_v42 = vmul.f32 %v1957_v56, %v4835_v15  ;;  %v1961_v61 = vmul.f32 %v3200_v19, %v1956_v35  ;;  %v1483_v15 = vadd.f32 %v4772_v3, %v4819_v60 }
 0x689   :  { %v3202_v62 = vpop.eup %3201 }
 0x68a   :  { %v4879_v13 = vadd.f32 %v1961_v61, %v1960_v42  ;;  %v1955_v47 = vmul.f32 0.5, %v3202_v62 }
 0x68c   :  { %3203 = vtanh.f32 %v4879_v13  ;;  %v1958_v43 = vadd.f32 0.5, %v1955_v47 }
 0x692   :  { %v3204_v49 = vpop.eup %3203 }
 0x693   :  { %v1964_v48 = vmul.f32 %v3204_v49, %v1958_v43 }
 0x695   :  { %v1969_v18 = vpack.c.bf16 %v1964_v48, %v1964_v48 }
 0x697   :  { %1978 = vmatmul.bf16.vlgmr.msra.gmra.mxu0 %v1969_v18  ;;  %1991 = vmatmul.bf16.vlgmr.msra.gmra.mxu1 %v1969_v18 }
 0x698   :  { %2004 = vmatmul.bf16.vlgmr.msra.gmra.mxu2 %v1969_v18  ;;  %2017 = vmatmul.bf16.vlgmr.msra.gmra.mxu3 %v1969_v18 }
 0x699   :  { %2128 = vmatpush.bf16.msra.mxu0 %v4403_v9  ;;  %2141 = vmatpush.bf16.msra.mxu1 %v4414_v20 }
 0x69a   :  { %2154 = vmatpush.bf16.msra.mxu2 %v4428_v33  ;;  %2167 = vmatpush.bf16.msra.mxu3 %v4416_v21 }
 0x69d   :  { %2129 = vmatpush.bf16.msra.mxu0 %v4441_v46  ;;  %2142 = vmatpush.bf16.msra.mxu1 %v4443_v50 }
 0x69e   :  { %2155 = vmatpush.bf16.msra.mxu2 %v4466_v36  ;;  %2168 = vmatpush.bf16.msra.mxu3 %v4455_v4 }
 0x6a1   :  { %2130 = vmatpush.bf16.msra.mxu0 %v4478_v29  ;;  %2143 = vmatpush.bf16.msra.mxu1 %v4485_v23 }
 0x6a2   :  { %2156 = vmatpush.bf16.msra.mxu2 %v4503_v25  ;;  %2169 = vmatpush.bf16.msra.mxu3 %v4487_v40 }
 0x6a5   :  { %2131 = vmatpush.bf16.msra.mxu0 %v4515_v0  ;;  %2144 = vmatpush.bf16.msra.mxu1 %v4526_v63 }
 0x6a6   :  { %2157 = vmatpush.bf16.msra.mxu2 %v4540_v37  ;;  %2170 = vmatpush.bf16.msra.mxu3 %v4528_v17 }
 0x6a9   :  { %2132 = vmatpush.bf16.msra.mxu0 %v4553_v53  ;;  %2145 = vmatpush.bf16.msra.mxu1 %v4555_v59 }
 0x6aa   :  { %2158 = vmatpush.bf16.msra.mxu2 %v4575_v39  ;;  %2171 = vmatpush.bf16.msra.mxu3 %v4567_v7 }
 0x6ad   :  { %2133 = vmatpush.bf16.msra.mxu0 %v4587_v32  ;;  %2146 = vmatpush.bf16.msra.mxu1 %v4600_v55 }
 0x6ae   :  { %2159 = vmatpush.bf16.msra.mxu2 %v4608_v10  ;;  %2172 = vmatpush.bf16.msra.mxu3 %v4602_v2 }
 0x6b1   :  { %2134 = vmatpush.bf16.msra.mxu0 %v4627_v6  ;;  %2147 = vmatpush.bf16.msra.mxu1 %v4638_v54 }
 0x6b2   :  { %2160 = vmatpush.bf16.msra.mxu2 %v4649_v41  ;;  %2173 = vmatpush.bf16.msra.mxu3 %v4640_v28 }
 0x6b5   :  { %2135 = vmatpush.bf16.msra.mxu0 %v4667_v38  ;;  %2148 = vmatpush.bf16.msra.mxu1 %v4678_v12 }
 0x6b6   :  { %2161 = vmatpush.bf16.msra.mxu2 %v4689_v11  ;;  %2174 = vmatpush.bf16.msra.mxu3 %v4680_v57 }
 0x714   :  { %v1979_v24 = vpop.f32.mrf.mxu0  ;;  %v1992_v34 = vpop.f32.mrf.mxu1 }
 0x715   :  { %v2022_v8 = vadd.f32 %v1979_v24, %v1483_v15  ;;  %v2023_v22 = vadd.f32 %v1992_v34, %v1512_v31 }
 0x717   :  { %v2026_v45 = vmul.f32 0.5, %v2022_v8  ;;  %v2027_v26 = vmul.f32 0.5, %v2023_v22 }
 0x719   :  { %3205 = vtanh.f32 %v2026_v45 }
 0x71a   :  { %3207 = vtanh.f32 %v2027_v26 }
 0x71b   :  { %v2005_v35 = vpop.f32.mrf.mxu2  ;;  %v2018_v56 = vpop.f32.mrf.mxu3 }
 0x71c   :  { %v2024_v3 = vadd.f32 %v2005_v35, %v1541_v44  ;;  %v2025_v51 = vadd.f32 %v2018_v56, %v1570_v30  ;;  %v1981_v58 = vpop.f32.mrf.mxu0  ;;  %v1994_v14 = vpop.f32.mrf.mxu1  ;;  %v5152_v30 = vld [vmem:[#allocation7_spill] sm:$0xff] }
 0x71d   :  { %v1514_v35 = vadd.f32 %v5152_v30, %v4821_v52 }
 0x71e   :  { %v2028_v19 = vmul.f32 0.5, %v2024_v3  ;;  %3209 = vtanh.f32 %v2025_v51 }
 0x71f   :  { %v3206_v42 = vpop.eup %3205 }
 0x720   :  { %v3208_v61 = vpop.eup %3207  ;;  %v2032_v62 = vmul.f32 0.5, %v3206_v42  ;;  %3211 = vtanh.f32 %v2028_v19  ;;  %v5153_v42 = vld [vmem:[#allocation8_spill] sm:$0xff] }
 0x721   :  { %v2033_v47 = vmul.f32 0.5, %v3208_v61  ;;  %v1543_v61 = vadd.f32 %v5153_v42, %v4829_v16 }
 0x722   :  { %v2035_v43 = vadd.f32 0.5, %v2032_v62  ;;  %v5154_v62 = vld [vmem:[#allocation9_spill] sm:$0xff] }
 0x723   :  { %v2036_v49 = vadd.f32 0.5, %v2033_v47  ;;  %v2007_v48 = vpop.f32.mrf.mxu2  ;;  %v2020_v18 = vpop.f32.mrf.mxu3  ;;  %v1572_v47 = vadd.f32 %v5154_v62, %v4831_v1 }
 0x724   :  { %v3210_v15 = vpop.eup %3209 }
 0x725   :  { %v2039_v31 = vmul.f32 %v2036_v49, %v4879_v13  ;;  %v2040_v24 = vmul.f32 %v3210_v15, %v2035_v43  ;;  %v5151_v13 = vld [vmem:[#allocation6_spill] sm:$0xff] }
 0x726   :  { %v3212_v34 = vpop.eup %3211  ;;  %v1485_v27 = vadd.f32 %v5151_v13, %v4819_v60 }
 0x727   :  { %v4923_v8 = vadd.f32 %v2040_v24, %v2039_v31  ;;  %v2034_v22 = vmul.f32 0.5, %v3212_v34 }
 0x729   :  { %3213 = vtanh.f32 %v4923_v8  ;;  %v2037_v45 = vadd.f32 0.5, %v2034_v22 }
 0x72f   :  { %v3214_v26 = vpop.eup %3213 }
 0x730   :  { %v2043_v5 = vmul.f32 %v3214_v26, %v2037_v45 }
 0x732   :  { %v2048_v44 = vpack.c.bf16 %v2043_v5, %v2043_v5 }
 0x734   :  { %2057 = vmatmul.bf16.vlgmr.msrb.gmra.mxu0 %v2048_v44  ;;  %2070 = vmatmul.bf16.vlgmr.msrb.gmra.mxu1 %v2048_v44 }
 0x735   :  { %2083 = vmatmul.bf16.vlgmr.msrb.gmra.mxu2 %v2048_v44  ;;  %2096 = vmatmul.bf16.vlgmr.msrb.gmra.mxu3 %v2048_v44 }
 0x736   :  { %2207 = vmatpush.bf16.msrb.mxu0 %v4403_v9  ;;  %2220 = vmatpush.bf16.msrb.mxu1 %v4414_v20 }
 0x737   :  { %2233 = vmatpush.bf16.msrb.mxu2 %v4428_v33  ;;  %2246 = vmatpush.bf16.msrb.mxu3 %v4416_v21 }
 0x73a   :  { %2208 = vmatpush.bf16.msrb.mxu0 %v4441_v46  ;;  %2221 = vmatpush.bf16.msrb.mxu1 %v4443_v50 }
 0x73b   :  { %2234 = vmatpush.bf16.msrb.mxu2 %v4466_v36  ;;  %2247 = vmatpush.bf16.msrb.mxu3 %v4455_v4 }
 0x73e   :  { %2209 = vmatpush.bf16.msrb.mxu0 %v4478_v29  ;;  %2222 = vmatpush.bf16.msrb.mxu1 %v4485_v23 }
 0x73f   :  { %2235 = vmatpush.bf16.msrb.mxu2 %v4503_v25  ;;  %2248 = vmatpush.bf16.msrb.mxu3 %v4487_v40 }
 0x742   :  { %2210 = vmatpush.bf16.msrb.mxu0 %v4515_v0  ;;  %2223 = vmatpush.bf16.msrb.mxu1 %v4526_v63 }
 0x743   :  { %2236 = vmatpush.bf16.msrb.mxu2 %v4540_v37  ;;  %2249 = vmatpush.bf16.msrb.mxu3 %v4528_v17 }
 0x746   :  { %2211 = vmatpush.bf16.msrb.mxu0 %v4553_v53  ;;  %2224 = vmatpush.bf16.msrb.mxu1 %v4555_v59 }
 0x747   :  { %2237 = vmatpush.bf16.msrb.mxu2 %v4575_v39  ;;  %2250 = vmatpush.bf16.msrb.mxu3 %v4567_v7 }
 0x74a   :  { %2212 = vmatpush.bf16.msrb.mxu0 %v4587_v32  ;;  %2225 = vmatpush.bf16.msrb.mxu1 %v4600_v55 }
 0x74b   :  { %2238 = vmatpush.bf16.msrb.mxu2 %v4608_v10  ;;  %2251 = vmatpush.bf16.msrb.mxu3 %v4602_v2 }
 0x74e   :  { %2213 = vmatpush.bf16.msrb.mxu0 %v4627_v6  ;;  %2226 = vmatpush.bf16.msrb.mxu1 %v4638_v54 }
 0x74f   :  { %2239 = vmatpush.bf16.msrb.mxu2 %v4649_v41  ;;  %2252 = vmatpush.bf16.msrb.mxu3 %v4640_v28 }
 0x752   :  { %2214 = vmatpush.bf16.msrb.mxu0 %v4667_v38  ;;  %2227 = vmatpush.bf16.msrb.mxu1 %v4678_v12 }
 0x753   :  { %2240 = vmatpush.bf16.msrb.mxu2 %v4689_v11  ;;  %2253 = vmatpush.bf16.msrb.mxu3 %v4680_v57 }
 0x7b1   :  { %v2058_v56 = vpop.f32.mrf.mxu0  ;;  %v2071_v3 = vpop.f32.mrf.mxu1 }
 0x7b2   :  { %v2101_v51 = vadd.f32 %v2058_v56, %v1485_v27  ;;  %v2102_v58 = vadd.f32 %v2071_v3, %v1514_v35 }
 0x7b4   :  { %v2105_v14 = vmul.f32 0.5, %v2101_v51  ;;  %v2106_v19 = vmul.f32 0.5, %v2102_v58 }
 0x7b6   :  { %3215 = vtanh.f32 %v2105_v14 }
 0x7b7   :  { %3217 = vtanh.f32 %v2106_v19 }
 0x7b8   :  { %v2084_v43 = vpop.f32.mrf.mxu2  ;;  %v2097_v49 = vpop.f32.mrf.mxu3 }
 0x7b9   :  { %v2103_v48 = vadd.f32 %v2084_v43, %v1543_v61  ;;  %v2104_v18 = vadd.f32 %v2097_v49, %v1572_v47  ;;  %v2060_v15 = vpop.f32.mrf.mxu0  ;;  %v2073_v31 = vpop.f32.mrf.mxu1  ;;  %v5156_v47 = vld [vmem:[#allocation11_spill] sm:$0xff] }
 0x7ba   :  { %v1517_v43 = vadd.f32 %v5156_v47, %v4821_v52 }
 0x7bb   :  { %v2107_v24 = vmul.f32 0.5, %v2103_v48  ;;  %3219 = vtanh.f32 %v2104_v18 }
 0x7bc   :  { %v3216_v34 = vpop.eup %3215 }
 0x7bd   :  { %v3218_v22 = vpop.eup %3217  ;;  %v2111_v45 = vmul.f32 0.5, %v3216_v34  ;;  %3221 = vtanh.f32 %v2107_v24  ;;  %v5157_v34 = vld [vmem:[#allocation13_spill] sm:$0xff] }
 0x7be   :  { %v2112_v26 = vmul.f32 0.5, %v3218_v22  ;;  %v1546_v22 = vadd.f32 %v5157_v34, %v4829_v16 }
 0x7bf   :  { %v2114_v5 = vadd.f32 0.5, %v2111_v45  ;;  %v5158_v45 = vld [vmem:[#allocation12_spill] sm:$0xff] }
 0x7c0   :  { %v2115_v44 = vadd.f32 0.5, %v2112_v26  ;;  %v2086_v13 = vpop.f32.mrf.mxu2  ;;  %v2099_v27 = vpop.f32.mrf.mxu3  ;;  %v1575_v26 = vadd.f32 %v5158_v45, %v4831_v1 }
 0x7c1   :  { %v3220_v30 = vpop.eup %3219 }
 0x7c2   :  { %v2118_v35 = vmul.f32 %v2115_v44, %v4923_v8  ;;  %v2119_v56 = vmul.f32 %v3220_v30, %v2114_v5  ;;  %v5155_v8 = vld [vmem:[#allocation10_spill] sm:$0xff] }
 0x7c3   :  { %v3222_v3 = vpop.eup %3221  ;;  %v1488_v62 = vadd.f32 %v5155_v8, %v4819_v60 }
 0x7c4   :  { %v4967_v51 = vadd.f32 %v2119_v56, %v2118_v35  ;;  %v2113_v58 = vmul.f32 0.5, %v3222_v3 }
 0x7c6   :  { %3223 = vtanh.f32 %v4967_v51  ;;  %v2116_v14 = vadd.f32 0.5, %v2113_v58 }
 0x7cc   :  { %v3224_v19 = vpop.eup %3223 }
 0x7cd   :  { %v2122_v42 = vmul.f32 %v3224_v19, %v2116_v14 }
 0x7cf   :  { %v2127_v61 = vpack.c.bf16 %v2122_v42, %v2122_v42 }
 0x7d1   :  { %2136 = vmatmul.bf16.vlgmr.msra.gmra.mxu0 %v2127_v61  ;;  %2149 = vmatmul.bf16.vlgmr.msra.gmra.mxu1 %v2127_v61 }
 0x7d2   :  { %2162 = vmatmul.bf16.vlgmr.msra.gmra.mxu2 %v2127_v61  ;;  %2175 = vmatmul.bf16.vlgmr.msra.gmra.mxu3 %v2127_v61 }
 0x7d3   :  { %2286 = vmatpush.bf16.msra.mxu0 %v4403_v9  ;;  %2299 = vmatpush.bf16.msra.mxu1 %v4414_v20 }
 0x7d4   :  { %2312 = vmatpush.bf16.msra.mxu2 %v4428_v33  ;;  %2325 = vmatpush.bf16.msra.mxu3 %v4416_v21 }
 0x7d7   :  { %2287 = vmatpush.bf16.msra.mxu0 %v4441_v46  ;;  %2300 = vmatpush.bf16.msra.mxu1 %v4443_v50 }
 0x7d8   :  { %2313 = vmatpush.bf16.msra.mxu2 %v4466_v36  ;;  %2326 = vmatpush.bf16.msra.mxu3 %v4455_v4 }
 0x7db   :  { %2288 = vmatpush.bf16.msra.mxu0 %v4478_v29  ;;  %2301 = vmatpush.bf16.msra.mxu1 %v4485_v23 }
 0x7dc   :  { %2314 = vmatpush.bf16.msra.mxu2 %v4503_v25  ;;  %2327 = vmatpush.bf16.msra.mxu3 %v4487_v40 }
 0x7df   :  { %2289 = vmatpush.bf16.msra.mxu0 %v4515_v0  ;;  %2302 = vmatpush.bf16.msra.mxu1 %v4526_v63 }
 0x7e0   :  { %2315 = vmatpush.bf16.msra.mxu2 %v4540_v37  ;;  %2328 = vmatpush.bf16.msra.mxu3 %v4528_v17 }
 0x7e3   :  { %2290 = vmatpush.bf16.msra.mxu0 %v4553_v53  ;;  %2303 = vmatpush.bf16.msra.mxu1 %v4555_v59 }
 0x7e4   :  { %2316 = vmatpush.bf16.msra.mxu2 %v4575_v39  ;;  %2329 = vmatpush.bf16.msra.mxu3 %v4567_v7 }
 0x7e7   :  { %2291 = vmatpush.bf16.msra.mxu0 %v4587_v32  ;;  %2304 = vmatpush.bf16.msra.mxu1 %v4600_v55 }
 0x7e8   :  { %2317 = vmatpush.bf16.msra.mxu2 %v4608_v10  ;;  %2330 = vmatpush.bf16.msra.mxu3 %v4602_v2 }
 0x7eb   :  { %2292 = vmatpush.bf16.msra.mxu0 %v4627_v6  ;;  %2305 = vmatpush.bf16.msra.mxu1 %v4638_v54 }
 0x7ec   :  { %2318 = vmatpush.bf16.msra.mxu2 %v4649_v41  ;;  %2331 = vmatpush.bf16.msra.mxu3 %v4640_v28 }
 0x7ef   :  { %2293 = vmatpush.bf16.msra.mxu0 %v4667_v38  ;;  %2306 = vmatpush.bf16.msra.mxu1 %v4678_v12 }
 0x7f0   :  { %2319 = vmatpush.bf16.msra.mxu2 %v4689_v11  ;;  %2332 = vmatpush.bf16.msra.mxu3 %v4680_v57 }
 0x84e   :  { %v2137_v49 = vpop.f32.mrf.mxu0  ;;  %v2150_v48 = vpop.f32.mrf.mxu1 }
 0x84f   :  { %v2180_v18 = vadd.f32 %v2137_v49, %v1488_v62  ;;  %v2181_v15 = vadd.f32 %v2150_v48, %v1517_v43 }
 0x851   :  { %v2184_v31 = vmul.f32 0.5, %v2180_v18  ;;  %v2185_v24 = vmul.f32 0.5, %v2181_v15 }
 0x853   :  { %3225 = vtanh.f32 %v2184_v31 }
 0x854   :  { %3227 = vtanh.f32 %v2185_v24 }
 0x855   :  { %v2163_v5 = vpop.f32.mrf.mxu2  ;;  %v2176_v44 = vpop.f32.mrf.mxu3 }
 0x856   :  { %v2182_v13 = vadd.f32 %v2163_v5, %v1546_v22  ;;  %v2183_v27 = vadd.f32 %v2176_v44, %v1575_v26  ;;  %v2139_v30 = vpop.f32.mrf.mxu0  ;;  %v2152_v35 = vpop.f32.mrf.mxu1 }
 0x857   :  { %v5163_v30 = vld [vmem:[#allocation18_spill] sm:$0xff] }
 0x858   :  { %v2186_v56 = vmul.f32 0.5, %v2182_v13  ;;  %3229 = vtanh.f32 %v2183_v27  ;;  %v1493_v35 = vadd.f32 %v5163_v30, %v4819_v60 }
 0x859   :  { %v3226_v3 = vpop.eup %3225 }
 0x85a   :  { %v3228_v58 = vpop.eup %3227  ;;  %v2190_v14 = vmul.f32 0.5, %v3226_v3  ;;  %3231 = vtanh.f32 %v2186_v56  ;;  %v5164_v56 = vld [vmem:[#allocation19_spill] sm:$0xff] }
 0x85b   :  { %v2191_v19 = vmul.f32 0.5, %v3228_v58  ;;  %v1522_v3 = vadd.f32 %v5164_v56, %v4821_v52 }
 0x85c   :  { %v2193_v42 = vadd.f32 0.5, %v2190_v14 }
 0x85d   :  { %v2194_v61 = vadd.f32 0.5, %v2191_v19  ;;  %v2165_v8 = vpop.f32.mrf.mxu2  ;;  %v2178_v62 = vpop.f32.mrf.mxu3 }
 0x85e   :  { %v3230_v47 = vpop.eup %3229  ;;  %v5165_v62 = vld [vmem:[#allocation21_spill] sm:$0xff] }
 0x85f   :  { %v2197_v43 = vmul.f32 %v2194_v61, %v4967_v51  ;;  %v2198_v49 = vmul.f32 %v3230_v47, %v2193_v42  ;;  %v1551_v47 = vadd.f32 %v5165_v62, %v4829_v16 }
 0x860   :  { %v3232_v48 = vpop.eup %3231 }
 0x861   :  { %v5011_v18 = vadd.f32 %v2198_v49, %v2197_v43  ;;  %v2192_v15 = vmul.f32 0.5, %v3232_v48  ;;  %v5166_v43 = vld [vmem:[#allocation20_spill] sm:$0xff] }
 0x862   :  { %v1580_v49 = vadd.f32 %v5166_v43, %v4831_v1 }
 0x863   :  { %3233 = vtanh.f32 %v5011_v18  ;;  %v2195_v31 = vadd.f32 0.5, %v2192_v15 }
 0x869   :  { %v3234_v24 = vpop.eup %3233 }
 0x86a   :  { %v2201_v34 = vmul.f32 %v3234_v24, %v2195_v31 }
 0x86c   :  { %v2206_v22 = vpack.c.bf16 %v2201_v34, %v2201_v34 }
 0x86e   :  { %2215 = vmatmul.bf16.vlgmr.msrb.gmra.mxu0 %v2206_v22  ;;  %2228 = vmatmul.bf16.vlgmr.msrb.gmra.mxu1 %v2206_v22 }
 0x86f   :  { %2241 = vmatmul.bf16.vlgmr.msrb.gmra.mxu2 %v2206_v22  ;;  %2254 = vmatmul.bf16.vlgmr.msrb.gmra.mxu3 %v2206_v22 }
 0x870   :  { %2365 = vmatpush.bf16.msrb.mxu0 %v4403_v9  ;;  %2378 = vmatpush.bf16.msrb.mxu1 %v4414_v20  ;;  %v5159_v9 = vld [vmem:[#allocation14_spill] sm:$0xff] }
 0x871   :  { %2391 = vmatpush.bf16.msrb.mxu2 %v4428_v33  ;;  %2404 = vmatpush.bf16.msrb.mxu3 %v4416_v21  ;;  %v1490_v20 = vadd.f32 %v5159_v9, %v4819_v60  ;;  %v5160_v21 = vld [vmem:[#allocation15_spill] sm:$0xff] }
 0x872   :  { %v1519_v33 = vadd.f32 %v5160_v21, %v4821_v52 }
 0x874   :  { %2366 = vmatpush.bf16.msrb.mxu0 %v4441_v46  ;;  %2379 = vmatpush.bf16.msrb.mxu1 %v4443_v50 }
 0x875   :  { %2392 = vmatpush.bf16.msrb.mxu2 %v4466_v36  ;;  %2405 = vmatpush.bf16.msrb.mxu3 %v4455_v4 }
 0x878   :  { %2367 = vmatpush.bf16.msrb.mxu0 %v4478_v29  ;;  %2380 = vmatpush.bf16.msrb.mxu1 %v4485_v23 }
 0x879   :  { %2393 = vmatpush.bf16.msrb.mxu2 %v4503_v25  ;;  %2406 = vmatpush.bf16.msrb.mxu3 %v4487_v40  ;;  %v5161_v40 = vld [vmem:[#allocation16_spill] sm:$0xff] }
 0x87a   :  { %v1548_v25 = vadd.f32 %v5161_v40, %v4829_v16 }
 0x87c   :  { %2368 = vmatpush.bf16.msrb.mxu0 %v4515_v0  ;;  %2381 = vmatpush.bf16.msrb.mxu1 %v4526_v63  ;;  %v5162_v0 = vld [vmem:[#allocation17_spill] sm:$0xff] }
 0x87d   :  { %2394 = vmatpush.bf16.msrb.mxu2 %v4540_v37  ;;  %2407 = vmatpush.bf16.msrb.mxu3 %v4528_v17  ;;  %v1577_v63 = vadd.f32 %v5162_v0, %v4831_v1 }
 0x880   :  { %2369 = vmatpush.bf16.msrb.mxu0 %v4553_v53  ;;  %2382 = vmatpush.bf16.msrb.mxu1 %v4555_v59 }
 0x881   :  { %2395 = vmatpush.bf16.msrb.mxu2 %v4575_v39  ;;  %2408 = vmatpush.bf16.msrb.mxu3 %v4567_v7 }
 0x884   :  { %2370 = vmatpush.bf16.msrb.mxu0 %v4587_v32  ;;  %2383 = vmatpush.bf16.msrb.mxu1 %v4600_v55 }
 0x885   :  { %2396 = vmatpush.bf16.msrb.mxu2 %v4608_v10  ;;  %2409 = vmatpush.bf16.msrb.mxu3 %v4602_v2 }
 0x888   :  { %2371 = vmatpush.bf16.msrb.mxu0 %v4627_v6  ;;  %2384 = vmatpush.bf16.msrb.mxu1 %v4638_v54 }
 0x889   :  { %2397 = vmatpush.bf16.msrb.mxu2 %v4649_v41  ;;  %2410 = vmatpush.bf16.msrb.mxu3 %v4640_v28 }
 0x88c   :  { %2372 = vmatpush.bf16.msrb.mxu0 %v4667_v38  ;;  %2385 = vmatpush.bf16.msrb.mxu1 %v4678_v12 }
 0x88d   :  { %2398 = vmatpush.bf16.msrb.mxu2 %v4689_v11  ;;  %2411 = vmatpush.bf16.msrb.mxu3 %v4680_v57 }
 0x8eb   :  { %v2216_v46 = vpop.f32.mrf.mxu0  ;;  %v2229_v50 = vpop.f32.mrf.mxu1 }
 0x8ec   :  { %v2259_v4 = vadd.f32 %v2216_v46, %v1490_v20  ;;  %v2260_v36 = vadd.f32 %v2229_v50, %v1519_v33 }
 0x8ee   :  { %v2263_v29 = vmul.f32 0.5, %v2259_v4  ;;  %v2264_v23 = vmul.f32 0.5, %v2260_v36 }
 0x8f0   :  { %3235 = vtanh.f32 %v2263_v29 }
 0x8f1   :  { %3237 = vtanh.f32 %v2264_v23 }
 0x8f2   :  { %v2242_v17 = vpop.f32.mrf.mxu2  ;;  %v2255_v37 = vpop.f32.mrf.mxu3 }
 0x8f3   :  { %v2261_v53 = vadd.f32 %v2242_v17, %v1548_v25  ;;  %v2262_v59 = vadd.f32 %v2255_v37, %v1577_v63  ;;  %v2218_v7 = vpop.f32.mrf.mxu0  ;;  %v2231_v39 = vpop.f32.mrf.mxu1 }
 0x8f4   :  { %v5167_v7 = vld [vmem:[#allocation22_spill] sm:$0xff] }
 0x8f5   :  { %v2265_v32 = vmul.f32 0.5, %v2261_v53  ;;  %3239 = vtanh.f32 %v2262_v59  ;;  %v1495_v39 = vadd.f32 %v5167_v7, %v4819_v60 }
 0x8f6   :  { %v3236_v55 = vpop.eup %3235 }
 0x8f7   :  { %v3238_v2 = vpop.eup %3237  ;;  %v2269_v10 = vmul.f32 0.5, %v3236_v55  ;;  %3241 = vtanh.f32 %v2265_v32  ;;  %v5168_v32 = vld [vmem:[#allocation23_spill] sm:$0xff] }
 0x8f8   :  { %v2270_v6 = vmul.f32 0.5, %v3238_v2  ;;  %v1524_v55 = vadd.f32 %v5168_v32, %v4821_v52 }
 0x8f9   :  { %v2272_v54 = vadd.f32 0.5, %v2269_v10 }
 0x8fa   :  { %v2273_v28 = vadd.f32 0.5, %v2270_v6  ;;  %v2244_v41 = vpop.f32.mrf.mxu2  ;;  %v2257_v38 = vpop.f32.mrf.mxu3 }
 0x8fb   :  { %v3240_v12 = vpop.eup %3239  ;;  %v5169_v38 = vld [vmem:[#allocation24_spill] sm:$0xff] }
 0x8fc   :  { %v2276_v57 = vmul.f32 %v2273_v28, %v5011_v18  ;;  %v2277_v11 = vmul.f32 %v3240_v12, %v2272_v54  ;;  %v1553_v12 = vadd.f32 %v5169_v38, %v4829_v16 }
 0x8fd   :  { %v3242_v51 = vpop.eup %3241 }
 0x8fe   :  { %v2278_v45 = vadd.f32 %v2277_v11, %v2276_v57  ;;  %v2271_v26 = vmul.f32 0.5, %v3242_v51  ;;  %v5170_v57 = vld [vmem:[#allocation25_spill] sm:$0xff] }
 0x8ff   :  { %v1582_v11 = vadd.f32 %v5170_v57, %v4831_v1 }
 0x900   :  { %3243 = vtanh.f32 %v2278_v45  ;;  %v2274_v5 = vadd.f32 0.5, %v2271_v26 }
 0x906   :  { %v3244_v44 = vpop.eup %3243 }
 0x907   :  { %v2280_v13 = vmul.f32 %v3244_v44, %v2274_v5 }
 0x909   :  { %v2285_v27 = vpack.c.bf16 %v2280_v13, %v2280_v13 }
 0x90b   :  { %2294 = vmatmul.bf16.vlgmr.msra.gmra.mxu0 %v2285_v27  ;;  %2307 = vmatmul.bf16.vlgmr.msra.gmra.mxu1 %v2285_v27 }
 0x90c   :  { %2320 = vmatmul.bf16.vlgmr.msra.gmra.mxu2 %v2285_v27  ;;  %2333 = vmatmul.bf16.vlgmr.msra.gmra.mxu3 %v2285_v27 }
 0x988   :  { %v2295_v58 = vpop.f32.mrf.mxu0  ;;  %v2308_v14 = vpop.f32.mrf.mxu1 }
 0x989   :  { %v2338_v19 = vadd.f32 %v2295_v58, %v1493_v35  ;;  %v2339_v42 = vadd.f32 %v2308_v14, %v1522_v3 }
 0x98b   :  { %v2342_v61 = vmul.f32 0.5, %v2338_v19  ;;  %v2343_v8 = vmul.f32 0.5, %v2339_v42 }
 0x98d   :  { %3245 = vtanh.f32 %v2342_v61 }
 0x98e   :  { %3247 = vtanh.f32 %v2343_v8 }
 0x98f   :  { %v2321_v48 = vpop.f32.mrf.mxu2  ;;  %v2334_v18 = vpop.f32.mrf.mxu3 }
 0x990   :  { %v2340_v15 = vadd.f32 %v2321_v48, %v1551_v47  ;;  %v2341_v31 = vadd.f32 %v2334_v18, %v1580_v49  ;;  %v2297_v24 = vpop.f32.mrf.mxu0  ;;  %v2310_v34 = vpop.f32.mrf.mxu1 }
 0x992   :  { %v2344_v22 = vmul.f32 0.5, %v2340_v15  ;;  %3249 = vtanh.f32 %v2341_v31 }
 0x993   :  { %v3246_v9 = vpop.eup %3245 }
 0x994   :  { %v3248_v20 = vpop.eup %3247  ;;  %v2348_v21 = vmul.f32 0.5, %v3246_v9  ;;  %3251 = vtanh.f32 %v2344_v22 }
 0x995   :  { %v2349_v33 = vmul.f32 0.5, %v3248_v20 }
 0x996   :  { %v2351_v46 = vadd.f32 0.5, %v2348_v21 }
 0x997   :  { %v2352_v50 = vadd.f32 0.5, %v2349_v33  ;;  %v2323_v4 = vpop.f32.mrf.mxu2  ;;  %v2336_v36 = vpop.f32.mrf.mxu3 }
 0x998   :  { %v3250_v29 = vpop.eup %3249 }
 0x999   :  { %v2355_v23 = vmul.f32 %v2352_v50, %v2278_v45  ;;  %v2356_v40 = vmul.f32 %v3250_v29, %v2351_v46 }
 0x99a   :  { %v3252_v25 = vpop.eup %3251 }
 0x99b   :  { %v2357_v0 = vadd.f32 %v2356_v40, %v2355_v23  ;;  %v2350_v63 = vmul.f32 0.5, %v3252_v25 }
 0x99d   :  { %3253 = vtanh.f32 %v2357_v0  ;;  %v2353_v17 = vadd.f32 0.5, %v2350_v63 }
 0x9a3   :  { %v3254_v37 = vpop.eup %3253 }
 0x9a4   :  { %v2359_v53 = vmul.f32 %v3254_v37, %v2353_v17 }
 0x9a6   :  { %v2364_v59 = vpack.c.bf16 %v2359_v53, %v2359_v53 }
 0x9a8   :  { %2373 = vmatmul.bf16.vlgmr.msrb.gmra.mxu0 %v2364_v59  ;;  %2386 = vmatmul.bf16.vlgmr.msrb.gmra.mxu1 %v2364_v59 }
 0x9a9   :  { %2399 = vmatmul.bf16.vlgmr.msrb.gmra.mxu2 %v2364_v59  ;;  %2412 = vmatmul.bf16.vlgmr.msrb.gmra.mxu3 %v2364_v59 }
 0xa25   :  { %v2374_v2 = vpop.f32.mrf.mxu0  ;;  %v2387_v10 = vpop.f32.mrf.mxu1 }
 0xa26   :  { %v2417_v6 = vadd.f32 %v2374_v2, %v1495_v39  ;;  %v2418_v54 = vadd.f32 %v2387_v10, %v1524_v55 }
 0xa28   :  { %v2421_v28 = vmul.f32 0.5, %v2417_v6  ;;  %v2422_v41 = vmul.f32 0.5, %v2418_v54 }
 0xa2a   :  { %3255 = vtanh.f32 %v2421_v28 }
 0xa2b   :  { %3257 = vtanh.f32 %v2422_v41 }
 0xa2c   :  { %v2400_v51 = vpop.f32.mrf.mxu2  ;;  %v2413_v45 = vpop.f32.mrf.mxu3 }
 0xa2d   :  { %v2419_v60 = vadd.f32 %v2400_v51, %v1553_v12  ;;  %v2420_v26 = vadd.f32 %v2413_v45, %v1582_v11  ;;  %v2376_v5 = vpop.f32.mrf.mxu0  ;;  %v2389_v52 = vpop.f32.mrf.mxu1 }
 0xa2f   :  { %v2423_v44 = vmul.f32 0.5, %v2419_v60  ;;  %3259 = vtanh.f32 %v2420_v26 }
 0xa30   :  { %v3256_v13 = vpop.eup %3255 }
 0xa31   :  { %v3258_v27 = vpop.eup %3257  ;;  %v2427_v30 = vmul.f32 0.5, %v3256_v13  ;;  %3261 = vtanh.f32 %v2423_v44 }
 0xa32   :  { %v2428_v35 = vmul.f32 0.5, %v3258_v27 }
 0xa33   :  { %v2430_v56 = vadd.f32 0.5, %v2427_v30 }
 0xa34   :  { %v2431_v3 = vadd.f32 0.5, %v2428_v35  ;;  %v2402_v16 = vpop.f32.mrf.mxu2  ;;  %v2415_v58 = vpop.f32.mrf.mxu3 }
 0xa35   :  { %v3260_v14 = vpop.eup %3259 }
 0xa36   :  { %v2434_v1 = vmul.f32 %v2431_v3, %v2357_v0  ;;  %v2435_v19 = vmul.f32 %v3260_v14, %v2430_v56 }
 0xa37   :  { %v3262_v42 = vpop.eup %3261 }
 0xa38   :  { %v2436_v61 = vadd.f32 %v2435_v19, %v2434_v1  ;;  %v2429_v8 = vmul.f32 0.5, %v3262_v42 }
 0xa3a   :  { %3263 = vtanh.f32 %v2436_v61  ;;  %v2432_v62 = vadd.f32 0.5, %v2429_v8 }
 0xa40   :  { %v3264_v47 = vpop.eup %3263 }
 0xa41   :  { %v2438_v43 = vmul.f32 %v3264_v47, %v2432_v62 }
 0xa43   :  { %2439 = vst [vmem:[%s5081_s7] sm:$0xff] %v2438_v43 }

</bundles_post_ra>
